<compile_context>
chip_gen: v7x
topology: tpu7x:2x2x1
jax: 0.10.0
libtpu: 0.0.40
codegen_flags: <defaults>
</compile_context>

<pallas_src>
import jax
import jax.numpy as jnp
from jax import lax
from jax.experimental import pallas as pl
from jax.experimental.pallas import tpu as pltpu


def _resblock_kernel(xc_ref, xt_ref, xb_ref, w1_ref, b1_ref, w2_ref, b2_ref,
                     o_ref, xbuf_ref, out1_ref, acc1_ref, acc2_ref):
    """One (batch, row-tile) step of Conv3x3 -> ReLU -> Conv3x3 -> +identity.

    xc_ref : (1, TH, W, C) f32   center row tile of x (also the residual identity)
    xt_ref : (1, 2,  W, C) f32   2 rows directly above the tile (clamped at r == 0)
    xb_ref : (1, 2,  W, C) f32   2 rows directly below the tile (clamped at r == R-1)
    w1_ref/w2_ref : (3, C, 3C) bf16   taps folded into N: [dy, cin, dx*C + cout]
    b1_ref/b2_ref : (1, C) f32
    o_ref  : (1, TH, W, C) f32
    xbuf_ref : (TH+4, W, C) bf16  scratch: x rows with a 2-row halo (zeros at edges)
    out1_ref : (TH+2, W, C) bf16  scratch: relu(conv1) rows with a 1-row halo
    acc1_ref : (TH+2, W, C) f32   scratch accumulator (conv1)
    acc2_ref : (TH,   W, C) f32   scratch accumulator (conv2)
    """
    _, TH, W, C = xc_ref.shape
    r = pl.program_id(1)
    nr = pl.num_programs(1)

    # ---- assemble bf16 input slab with a 2-row halo (zero rows at image edges) ----
    xbuf_ref[2:TH + 2, :, :] = xc_ref[0].astype(jnp.bfloat16)

    @pl.when(r > 0)
    def _():
        xbuf_ref[0:2, :, :] = xt_ref[0].astype(jnp.bfloat16)

    @pl.when(r == 0)
    def _():
        xbuf_ref[0:2, :, :] = jnp.zeros((2, W, C), jnp.bfloat16)

    @pl.when(r < nr - 1)
    def _():
        xbuf_ref[TH + 2:TH + 4, :, :] = xb_ref[0].astype(jnp.bfloat16)

    @pl.when(r == nr - 1)
    def _():
        xbuf_ref[TH + 2:TH + 4, :, :] = jnp.zeros((2, W, C), jnp.bfloat16)

    def conv3x3(src_ref, w_ref, acc_ref):
        # src_ref: (n_out + 2, W, C) bf16 rows; acc_ref: (n_out, W, C) f32.
        n_out = acc_ref.shape[0]
        for dy in range(3):
            xs = src_ref[dy:dy + n_out, :, :].reshape(n_out * W, C)
            # one MXU pass per dy: K = C, N = 3C (dx taps folded into the output dim)
            y = jnp.dot(xs, w_ref[dy], preferred_element_type=jnp.float32)
            y = y.reshape(n_out, W, 3 * C)
            if dy == 0:
                acc_ref[...] = y[:, :, C:2 * C]               # dx = 1 (no shift), init
            else:
                acc_ref[...] += y[:, :, C:2 * C]              # dx = 1
            acc_ref[:, 1:W, :] += y[:, 0:W - 1, 0:C]          # dx = 0 (shift right)
            acc_ref[:, 0:W - 1, :] += y[:, 1:W, 2 * C:3 * C]  # dx = 2 (shift left)

    # ---- conv1 + bias + ReLU on TH+2 rows (1-row halo that conv2 needs) ----
    conv3x3(xbuf_ref, w1_ref, acc1_ref)
    out1_ref[...] = jnp.maximum(acc1_ref[...] + b1_ref[...], 0.0).astype(jnp.bfloat16)

    # conv2's zero padding at the image top / bottom edges
    @pl.when(r == 0)
    def _():
        out1_ref[0:1, :, :] = jnp.zeros((1, W, C), jnp.bfloat16)

    @pl.when(r == nr - 1)
    def _():
        out1_ref[TH + 1:TH + 2, :, :] = jnp.zeros((1, W, C), jnp.bfloat16)

    # ---- conv2 + bias + residual add ----
    conv3x3(out1_ref, w2_ref, acc2_ref)
    res = acc2_ref[...] + b2_ref[...] + xc_ref[0]
    # TODO(synk): a lane-dense (1, TH, W*C) output block would avoid half-masked stores
    # for C=64, but requires a minor-dim-merging relayout in-kernel; kept NHWC block here.
    o_ref[...] = res.reshape(o_ref.shape)


def _pick_tile_h(h):
    """Largest even divisor of h that is <= 64 and gives at least 2 row tiles."""
    for th in range(min(h, 64), 1, -1):
        if th % 2 == 0 and h % th == 0 and h // th >= 2:
            return th
    return h


def residual_block_nobn(x_nchw, w1, b1, w2, b2):
    """ResidualBlock_noBN forward. x_nchw: (B,C,H,W) f32; w1/w2: (3,3,C,C) HWIO; b: (C,)."""
    x = jnp.transpose(x_nchw, (0, 2, 3, 1)).astype(jnp.float32)   # NCHW -> NHWC
    B, H, W, C = x.shape
    th = _pick_tile_h(H)
    assert H % th == 0 and th % 2 == 0, "H must be even and divisible by the row tile"
    nr = H // th

    # Fold the 3 dx taps into the matmul output dim; bf16 operands for the MXU.
    w1c = jnp.transpose(w1, (0, 2, 1, 3)).reshape(3, C, 3 * C).astype(jnp.bfloat16)
    w2c = jnp.transpose(w2, (0, 2, 1, 3)).reshape(3, C, 3 * C).astype(jnp.bfloat16)
    b1r = b1.reshape(1, C).astype(jnp.float32)
    b2r = b2.reshape(1, C).astype(jnp.float32)

    def center_map(b, r):
        return (b, r, 0, 0)

    def top_map(b, r):   # 2 rows above the tile, addressed in 2-row blocks (clamped)
        return (b, jnp.maximum(r * (th // 2) - 1, 0), 0, 0)

    def bot_map(b, r):   # 2 rows below the tile (clamped)
        return (b, jnp.minimum((r + 1) * (th // 2), H // 2 - 1), 0, 0)

    out = pl.pallas_call(
        _resblock_kernel,
        out_shape=jax.ShapeDtypeStruct((B, H, W, C), jnp.float32),
        grid_spec=pltpu.PrefetchScalarGridSpec(
            num_scalar_prefetch=0,
            grid=(B, nr),
            in_specs=[
                pl.BlockSpec((1, th, W, C), center_map),
                pl.BlockSpec((1, 2, W, C), top_map),
                pl.BlockSpec((1, 2, W, C), bot_map),
                pl.BlockSpec((3, C, 3 * C), lambda b, r: (0, 0, 0)),
                pl.BlockSpec((1, C), lambda b, r: (0, 0)),
                pl.BlockSpec((3, C, 3 * C), lambda b, r: (0, 0, 0)),
                pl.BlockSpec((1, C), lambda b, r: (0, 0)),
            ],
            out_specs=pl.BlockSpec((1, th, W, C), center_map),
            scratch_shapes=[
                pltpu.VMEM((th + 4, W, C), jnp.bfloat16),
                pltpu.VMEM((th + 2, W, C), jnp.bfloat16),
                pltpu.VMEM((th + 2, W, C), jnp.float32),
                pltpu.VMEM((th, W, C), jnp.float32),
            ],
        ),
        compiler_params=pltpu.CompilerParams(
            dimension_semantics=("parallel", "parallel")),
    )(x, x, x, w1c, b1r, w2c, b2r)

    return jnp.transpose(out, (0, 3, 1, 2))   # NHWC -> NCHW


def _make_params(key, nf, scale=0.1):
    """Kaiming-normal (fan_in, a=0) * scale, bias = 0, matching initialize_weights()."""
    k1, k2 = jax.random.split(key)
    fan_in = nf * 3 * 3
    std = (2.0 / fan_in) ** 0.5
    w1 = jax.random.normal(k1, (3, 3, nf, nf), jnp.float32) * std * scale  # HWIO
    w2 = jax.random.normal(k2, (3, 3, nf, nf), jnp.float32) * std * scale
    b1 = jnp.zeros((nf,), jnp.float32)
    b2 = jnp.zeros((nf,), jnp.float32)
    return w1, b1, w2, b2


def _reference(x_nchw, w1, b1, w2, b2):
    """Pure-JAX reference matching PyTorch semantics (NCHW convs, f32)."""
    def conv(x, w_hwio, b):
        w_oihw = jnp.transpose(w_hwio, (3, 2, 0, 1))
        y = lax.conv_general_dilated(
            x, w_oihw, window_strides=(1, 1), padding=((1, 1), (1, 1)),
            dimension_numbers=("NCHW", "OIHW", "NCHW"))
        return y + b.reshape(1, -1, 1, 1)
    out = jnp.maximum(conv(x_nchw, w1, b1), 0.0)
    out = conv(out, w2, b2)
    return x_nchw + out


if __name__ == "__main__":
    key = jax.random.PRNGKey(0)
    kx, kp = jax.random.split(key)

    B, nf, H, W = 2, 64, 16, 16  # nf matches the module default; H=16 -> 2 row tiles
    x = jax.random.normal(kx, (B, nf, H, W), jnp.float32)
    w1, b1, w2, b2 = _make_params(kp, nf, scale=0.1)

    y = jax.block_until_ready(residual_block_nobn(x, w1, b1, w2, b2))
    y_ref = _reference(x, w1, b1, w2, b2)

    assert y.shape == (B, nf, H, W)
    # bf16 MXU operands with f32 accumulation -> slightly looser tolerance than pure f32.
    assert jnp.allclose(y, y_ref, atol=2e-2, rtol=2e-2), (
        "mismatch vs reference: max abs err "
        f"{float(jnp.max(jnp.abs(y - y_ref)))}")

    print("KERNEL_OK")
</pallas_src>

<mosaic_0001>
module attributes {stable_mosaic.version = 11 : i64} {
  func.func @_resblock_kernel(%arg0: i32, %arg1: i32, %arg2: memref<1x8x16x64xf32, #tpu.memory_space<vmem>>, %arg3: memref<1x2x16x64xf32, #tpu.memory_space<vmem>>, %arg4: memref<1x2x16x64xf32, #tpu.memory_space<vmem>>, %arg5: memref<3x64x192xbf16, #tpu.memory_space<vmem>>, %arg6: memref<1x64xf32, #tpu.memory_space<vmem>>, %arg7: memref<3x64x192xbf16, #tpu.memory_space<vmem>>, %arg8: memref<1x64xf32, #tpu.memory_space<vmem>>, %arg9: memref<1x8x16x64xf32, #tpu.memory_space<vmem>>, %arg10: memref<12x16x64xbf16, #tpu.memory_space<vmem>>, %arg11: memref<10x16x64xbf16, #tpu.memory_space<vmem>>, %arg12: memref<10x16x64xf32, #tpu.memory_space<vmem>>, %arg13: memref<8x16x64xf32, #tpu.memory_space<vmem>>) attributes {dimension_semantics = [#tpu.dimension_semantics<parallel>, #tpu.dimension_semantics<parallel>], iteration_bounds = array<i64: 2, 2>, scalar_prefetch = 0 : i64, scratch_operands = 4 : i64, tpu.core_type = #tpu.core_type<tc>, window_params = [{transform_indices = @transform_0, window_bounds = array<i64: 1, 8, 16, 64>}, {transform_indices = @transform_1, window_bounds = array<i64: 1, 2, 16, 64>}, {transform_indices = @transform_2, window_bounds = array<i64: 1, 2, 16, 64>}, {pipeline_mode = #tpu.pipeline_mode<synchronous>, transform_indices = @transform_3, window_bounds = array<i64: 3, 64, 192>}, {pipeline_mode = #tpu.pipeline_mode<synchronous>, transform_indices = @transform_4, window_bounds = array<i64: 1, 64>}, {pipeline_mode = #tpu.pipeline_mode<synchronous>, transform_indices = @transform_5, window_bounds = array<i64: 3, 64, 192>}, {pipeline_mode = #tpu.pipeline_mode<synchronous>, transform_indices = @transform_6, window_bounds = array<i64: 1, 64>}, {transform_indices = @transform_7, window_bounds = array<i64: 1, 8, 16, 64>}]} {
    %c0 = arith.constant 0 : index
    %c0_0 = arith.constant 0 : index
    %c0_1 = arith.constant 0 : index
    %c0_2 = arith.constant 0 : index
    %0 = vector.load %arg2[%c0, %c0_0, %c0_1, %c0_2] : memref<1x8x16x64xf32, #tpu.memory_space<vmem>>, vector<1x8x16x64xf32>
    %1 = vector.shape_cast %0 : vector<1x8x16x64xf32> to vector<8x16x64xf32>
    %2 = arith.truncf %1 : vector<8x16x64xf32> to vector<8x16x64xbf16>
    %c2 = arith.constant 2 : index
    %c0_3 = arith.constant 0 : index
    %c0_4 = arith.constant 0 : index
    %3 = vector.load %arg10[%c2, %c0_3, %c0_4] : memref<12x16x64xbf16, #tpu.memory_space<vmem>>, vector<8x16x64xbf16>
    tpu.vector_store %arg10[%c2, %c0_3, %c0_4], %2 {strides = array<i32>} : memref<12x16x64xbf16, #tpu.memory_space<vmem>>, vector<8x16x64xbf16>,
    %c0_i32 = arith.constant 0 : i32
    %4 = arith.cmpi sgt, %arg1, %c0_i32 : i32
    %5 = arith.extui %4 : i1 to i32
    %c0_i32_5 = arith.constant 0 : i32
    %6 = arith.cmpi ne, %5, %c0_i32_5 : i32
    scf.if %6 {
      %c0_179 = arith.constant 0 : index
      %c0_180 = arith.constant 0 : index
      %c0_181 = arith.constant 0 : index
      %c0_182 = arith.constant 0 : index
      %145 = vector.load %arg3[%c0_179, %c0_180, %c0_181, %c0_182] : memref<1x2x16x64xf32, #tpu.memory_space<vmem>>, vector<1x2x16x64xf32>
      %146 = vector.shape_cast %145 : vector<1x2x16x64xf32> to vector<2x16x64xf32>
      %147 = arith.truncf %146 : vector<2x16x64xf32> to vector<2x16x64xbf16>
      %c0_183 = arith.constant 0 : index
      %c0_184 = arith.constant 0 : index
      %c0_185 = arith.constant 0 : index
      %148 = vector.load %arg10[%c0_183, %c0_184, %c0_185] : memref<12x16x64xbf16, #tpu.memory_space<vmem>>, vector<2x16x64xbf16>
      tpu.vector_store %arg10[%c0_183, %c0_184, %c0_185], %147 {strides = array<i32>} : memref<12x16x64xbf16, #tpu.memory_space<vmem>>, vector<2x16x64xbf16>,
    } else {
    }
    %c0_i32_6 = arith.constant 0 : i32
    %7 = arith.cmpi eq, %arg1, %c0_i32_6 : i32
    %8 = arith.extui %7 : i1 to i32
    %c0_i32_7 = arith.constant 0 : i32
    %9 = arith.cmpi ne, %8, %c0_i32_7 : i32
    scf.if %9 {
      %cst_179 = arith.constant 0.000000e+00 : bf16
      %145 = vector.broadcast %cst_179 : bf16 to vector<2x16x64xbf16>
      %c0_180 = arith.constant 0 : index
      %c0_181 = arith.constant 0 : index
      %c0_182 = arith.constant 0 : index
      %146 = vector.load %arg10[%c0_180, %c0_181, %c0_182] : memref<12x16x64xbf16, #tpu.memory_space<vmem>>, vector<2x16x64xbf16>
      tpu.vector_store %arg10[%c0_180, %c0_181, %c0_182], %145 {strides = array<i32>} : memref<12x16x64xbf16, #tpu.memory_space<vmem>>, vector<2x16x64xbf16>,
    } else {
    }
    %c1_i32 = arith.constant 1 : i32
    %10 = arith.cmpi slt, %arg1, %c1_i32 : i32
    %11 = arith.extui %10 : i1 to i32
    %c0_i32_8 = arith.constant 0 : i32
    %12 = arith.cmpi ne, %11, %c0_i32_8 : i32
    scf.if %12 {
      %c0_179 = arith.constant 0 : index
      %c0_180 = arith.constant 0 : index
      %c0_181 = arith.constant 0 : index
      %c0_182 = arith.constant 0 : index
      %145 = vector.load %arg4[%c0_179, %c0_180, %c0_181, %c0_182] : memref<1x2x16x64xf32, #tpu.memory_space<vmem>>, vector<1x2x16x64xf32>
      %146 = vector.shape_cast %145 : vector<1x2x16x64xf32> to vector<2x16x64xf32>
      %147 = arith.truncf %146 : vector<2x16x64xf32> to vector<2x16x64xbf16>
      %c10 = arith.constant 10 : index
      %c0_183 = arith.constant 0 : index
      %c0_184 = arith.constant 0 : index
      %148 = vector.load %arg10[%c10, %c0_183, %c0_184] : memref<12x16x64xbf16, #tpu.memory_space<vmem>>, vector<2x16x64xbf16>
      tpu.vector_store %arg10[%c10, %c0_183, %c0_184], %147 {strides = array<i32>} : memref<12x16x64xbf16, #tpu.memory_space<vmem>>, vector<2x16x64xbf16>,
    } else {
    }
    %c1_i32_9 = arith.constant 1 : i32
    %13 = arith.cmpi eq, %arg1, %c1_i32_9 : i32
    %14 = arith.extui %13 : i1 to i32
    %c0_i32_10 = arith.constant 0 : i32
    %15 = arith.cmpi ne, %14, %c0_i32_10 : i32
    scf.if %15 {
      %cst_179 = arith.constant 0.000000e+00 : bf16
      %145 = vector.broadcast %cst_179 : bf16 to vector<2x16x64xbf16>
      %c10 = arith.constant 10 : index
      %c0_180 = arith.constant 0 : index
      %c0_181 = arith.constant 0 : index
      %146 = vector.load %arg10[%c10, %c0_180, %c0_181] : memref<12x16x64xbf16, #tpu.memory_space<vmem>>, vector<2x16x64xbf16>
      tpu.vector_store %arg10[%c10, %c0_180, %c0_181], %145 {strides = array<i32>} : memref<12x16x64xbf16, #tpu.memory_space<vmem>>, vector<2x16x64xbf16>,
    } else {
    }
    %c0_11 = arith.constant 0 : index
    %c0_12 = arith.constant 0 : index
    %c0_13 = arith.constant 0 : index
    %16 = vector.load %arg10[%c0_11, %c0_12, %c0_13] : memref<12x16x64xbf16, #tpu.memory_space<vmem>>, vector<10x16x64xbf16>
    %17 = vector.shape_cast %16 : vector<10x16x64xbf16> to vector<160x64xbf16>
    %c0_14 = arith.constant 0 : index
    %c0_15 = arith.constant 0 : index
    %c0_16 = arith.constant 0 : index
    %18 = vector.load %arg5[%c0_14, %c0_15, %c0_16] : memref<3x64x192xbf16, #tpu.memory_space<vmem>>, vector<1x64x192xbf16>
    %19 = vector.shape_cast %18 : vector<1x64x192xbf16> to vector<64x192xbf16>
    %cst = arith.constant dense<0.000000e+00> : vector<160x192xf32>
    %20 = tpu.matmul %17, %19, %cst {dimension_numbers = #tpu.dot_dimension_numbers<[1], [0], [0], [1], [0, 0, 1, 1], [], []>} : vector<160x64xbf16>, vector<64x192xbf16>, vector<160x192xf32> -> vector<160x192xf32>
    %21 = vector.shape_cast %20 : vector<160x192xf32> to vector<10x16x192xf32>
    %22 = vector.extract_strided_slice %21 {offsets = [0, 0, 64], sizes = [10, 16, 64], strides = [1, 1, 1]} : vector<10x16x192xf32> to vector<10x16x64xf32>
    %c0_17 = arith.constant 0 : index
    %c0_18 = arith.constant 0 : index
    %c0_19 = arith.constant 0 : index
    %23 = vector.load %arg12[%c0_17, %c0_18, %c0_19] : memref<10x16x64xf32, #tpu.memory_space<vmem>>, vector<10x16x64xf32>
    tpu.vector_store %arg12[%c0_17, %c0_18, %c0_19], %22 {strides = array<i32>} : memref<10x16x64xf32, #tpu.memory_space<vmem>>, vector<10x16x64xf32>,
    %c0_20 = arith.constant 0 : index
    %c1 = arith.constant 1 : index
    %c0_21 = arith.constant 0 : index
    %24 = vector.load %arg12[%c0_20, %c1, %c0_21] : memref<10x16x64xf32, #tpu.memory_space<vmem>>, vector<10x15x64xf32>
    %25 = vector.extract_strided_slice %21 {offsets = [0, 0, 0], sizes = [10, 15, 64], strides = [1, 1, 1]} : vector<10x16x192xf32> to vector<10x15x64xf32>
    %26 = arith.addf %24, %25 : vector<10x15x64xf32>
    %c0_22 = arith.constant 0 : index
    %c1_23 = arith.constant 1 : index
    %c0_24 = arith.constant 0 : index
    %27 = vector.load %arg12[%c0_22, %c1_23, %c0_24] : memref<10x16x64xf32, #tpu.memory_space<vmem>>, vector<10x15x64xf32>
    tpu.vector_store %arg12[%c0_22, %c1_23, %c0_24], %26 {strides = array<i32>} : memref<10x16x64xf32, #tpu.memory_space<vmem>>, vector<10x15x64xf32>,
    %c0_25 = arith.constant 0 : index
    %c0_26 = arith.constant 0 : index
    %c0_27 = arith.constant 0 : index
    %28 = vector.load %arg12[%c0_25, %c0_26, %c0_27] : memref<10x16x64xf32, #tpu.memory_space<vmem>>, vector<10x15x64xf32>
    %29 = vector.extract_strided_slice %21 {offsets = [0, 1, 128], sizes = [10, 15, 64], strides = [1, 1, 1]} : vector<10x16x192xf32> to vector<10x15x64xf32>
    %30 = arith.addf %28, %29 : vector<10x15x64xf32>
    %c0_28 = arith.constant 0 : index
    %c0_29 = arith.constant 0 : index
    %c0_30 = arith.constant 0 : index
    %31 = vector.load %arg12[%c0_28, %c0_29, %c0_30] : memref<10x16x64xf32, #tpu.memory_space<vmem>>, vector<10x15x64xf32>
    tpu.vector_store %arg12[%c0_28, %c0_29, %c0_30], %30 {strides = array<i32>} : memref<10x16x64xf32, #tpu.memory_space<vmem>>, vector<10x15x64xf32>,
    %c1_31 = arith.constant 1 : index
    %c0_32 = arith.constant 0 : index
    %c0_33 = arith.constant 0 : index
    %32 = vector.load %arg10[%c1_31, %c0_32, %c0_33] : memref<12x16x64xbf16, #tpu.memory_space<vmem>>, vector<10x16x64xbf16>
    %33 = vector.shape_cast %32 : vector<10x16x64xbf16> to vector<160x64xbf16>
    %c1_34 = arith.constant 1 : index
    %c0_35 = arith.constant 0 : index
    %c0_36 = arith.constant 0 : index
    %34 = vector.load %arg5[%c1_34, %c0_35, %c0_36] : memref<3x64x192xbf16, #tpu.memory_space<vmem>>, vector<1x64x192xbf16>
    %35 = vector.shape_cast %34 : vector<1x64x192xbf16> to vector<64x192xbf16>
    %cst_37 = arith.constant dense<0.000000e+00> : vector<160x192xf32>
    %36 = tpu.matmul %33, %35, %cst_37 {dimension_numbers = #tpu.dot_dimension_numbers<[1], [0], [0], [1], [0, 0, 1, 1], [], []>} : vector<160x64xbf16>, vector<64x192xbf16>, vector<160x192xf32> -> vector<160x192xf32>
    %37 = vector.shape_cast %36 : vector<160x192xf32> to vector<10x16x192xf32>
    %c0_38 = arith.constant 0 : index
    %c0_39 = arith.constant 0 : index
    %c0_40 = arith.constant 0 : index
    %38 = vector.load %arg12[%c0_38, %c0_39, %c0_40] : memref<10x16x64xf32, #tpu.memory_space<vmem>>, vector<10x16x64xf32>
    %39 = vector.extract_strided_slice %37 {offsets = [0, 0, 64], sizes = [10, 16, 64], strides = [1, 1, 1]} : vector<10x16x192xf32> to vector<10x16x64xf32>
    %40 = arith.addf %38, %39 : vector<10x16x64xf32>
    %c0_41 = arith.constant 0 : index
    %c0_42 = arith.constant 0 : index
    %c0_43 = arith.constant 0 : index
    %41 = vector.load %arg12[%c0_41, %c0_42, %c0_43] : memref<10x16x64xf32, #tpu.memory_space<vmem>>, vector<10x16x64xf32>
    tpu.vector_store %arg12[%c0_41, %c0_42, %c0_43], %40 {strides = array<i32>} : memref<10x16x64xf32, #tpu.memory_space<vmem>>, vector<10x16x64xf32>,
    %c0_44 = arith.constant 0 : index
    %c1_45 = arith.constant 1 : index
    %c0_46 = arith.constant 0 : index
    %42 = vector.load %arg12[%c0_44, %c1_45, %c0_46] : memref<10x16x64xf32, #tpu.memory_space<vmem>>, vector<10x15x64xf32>
    %43 = vector.extract_strided_slice %37 {offsets = [0, 0, 0], sizes = [10, 15, 64], strides = [1, 1, 1]} : vector<10x16x192xf32> to vector<10x15x64xf32>
    %44 = arith.addf %42, %43 : vector<10x15x64xf32>
    %c0_47 = arith.constant 0 : index
    %c1_48 = arith.constant 1 : index
    %c0_49 = arith.constant 0 : index
    %45 = vector.load %arg12[%c0_47, %c1_48, %c0_49] : memref<10x16x64xf32, #tpu.memory_space<vmem>>, vector<10x15x64xf32>
    tpu.vector_store %arg12[%c0_47, %c1_48, %c0_49], %44 {strides = array<i32>} : memref<10x16x64xf32, #tpu.memory_space<vmem>>, vector<10x15x64xf32>,
    %c0_50 = arith.constant 0 : index
    %c0_51 = arith.constant 0 : index
    %c0_52 = arith.constant 0 : index
    %46 = vector.load %arg12[%c0_50, %c0_51, %c0_52] : memref<10x16x64xf32, #tpu.memory_space<vmem>>, vector<10x15x64xf32>
    %47 = vector.extract_strided_slice %37 {offsets = [0, 1, 128], sizes = [10, 15, 64], strides = [1, 1, 1]} : vector<10x16x192xf32> to vector<10x15x64xf32>
    %48 = arith.addf %46, %47 : vector<10x15x64xf32>
    %c0_53 = arith.constant 0 : index
    %c0_54 = arith.constant 0 : index
    %c0_55 = arith.constant 0 : index
    %49 = vector.load %arg12[%c0_53, %c0_54, %c0_55] : memref<10x16x64xf32, #tpu.memory_space<vmem>>, vector<10x15x64xf32>
    tpu.vector_store %arg12[%c0_53, %c0_54, %c0_55], %48 {strides = array<i32>} : memref<10x16x64xf32, #tpu.memory_space<vmem>>, vector<10x15x64xf32>,
    %c2_56 = arith.constant 2 : index
    %c0_57 = arith.constant 0 : index
    %c0_58 = arith.constant 0 : index
    %50 = vector.load %arg10[%c2_56, %c0_57, %c0_58] : memref<12x16x64xbf16, #tpu.memory_space<vmem>>, vector<10x16x64xbf16>
    %51 = vector.shape_cast %50 : vector<10x16x64xbf16> to vector<160x64xbf16>
    %c2_59 = arith.constant 2 : index
    %c0_60 = arith.constant 0 : index
    %c0_61 = arith.constant 0 : index
    %52 = vector.load %arg5[%c2_59, %c0_60, %c0_61] : memref<3x64x192xbf16, #tpu.memory_space<vmem>>, vector<1x64x192xbf16>
    %53 = vector.shape_cast %52 : vector<1x64x192xbf16> to vector<64x192xbf16>
    %cst_62 = arith.constant dense<0.000000e+00> : vector<160x192xf32>
    %54 = tpu.matmul %51, %53, %cst_62 {dimension_numbers = #tpu.dot_dimension_numbers<[1], [0], [0], [1], [0, 0, 1, 1], [], []>} : vector<160x64xbf16>, vector<64x192xbf16>, vector<160x192xf32> -> vector<160x192xf32>
    %55 = vector.shape_cast %54 : vector<160x192xf32> to vector<10x16x192xf32>
    %c0_63 = arith.constant 0 : index
    %c0_64 = arith.constant 0 : index
    %c0_65 = arith.constant 0 : index
    %56 = vector.load %arg12[%c0_63, %c0_64, %c0_65] : memref<10x16x64xf32, #tpu.memory_space<vmem>>, vector<10x16x64xf32>
    %57 = vector.extract_strided_slice %55 {offsets = [0, 0, 64], sizes = [10, 16, 64], strides = [1, 1, 1]} : vector<10x16x192xf32> to vector<10x16x64xf32>
    %58 = arith.addf %56, %57 : vector<10x16x64xf32>
    %c0_66 = arith.constant 0 : index
    %c0_67 = arith.constant 0 : index
    %c0_68 = arith.constant 0 : index
    %59 = vector.load %arg12[%c0_66, %c0_67, %c0_68] : memref<10x16x64xf32, #tpu.memory_space<vmem>>, vector<10x16x64xf32>
    tpu.vector_store %arg12[%c0_66, %c0_67, %c0_68], %58 {strides = array<i32>} : memref<10x16x64xf32, #tpu.memory_space<vmem>>, vector<10x16x64xf32>,
    %c0_69 = arith.constant 0 : index
    %c1_70 = arith.constant 1 : index
    %c0_71 = arith.constant 0 : index
    %60 = vector.load %arg12[%c0_69, %c1_70, %c0_71] : memref<10x16x64xf32, #tpu.memory_space<vmem>>, vector<10x15x64xf32>
    %61 = vector.extract_strided_slice %55 {offsets = [0, 0, 0], sizes = [10, 15, 64], strides = [1, 1, 1]} : vector<10x16x192xf32> to vector<10x15x64xf32>
    %62 = arith.addf %60, %61 : vector<10x15x64xf32>
    %c0_72 = arith.constant 0 : index
    %c1_73 = arith.constant 1 : index
    %c0_74 = arith.constant 0 : index
    %63 = vector.load %arg12[%c0_72, %c1_73, %c0_74] : memref<10x16x64xf32, #tpu.memory_space<vmem>>, vector<10x15x64xf32>
    tpu.vector_store %arg12[%c0_72, %c1_73, %c0_74], %62 {strides = array<i32>} : memref<10x16x64xf32, #tpu.memory_space<vmem>>, vector<10x15x64xf32>,
    %c0_75 = arith.constant 0 : index
    %c0_76 = arith.constant 0 : index
    %c0_77 = arith.constant 0 : index
    %64 = vector.load %arg12[%c0_75, %c0_76, %c0_77] : memref<10x16x64xf32, #tpu.memory_space<vmem>>, vector<10x15x64xf32>
    %65 = vector.extract_strided_slice %55 {offsets = [0, 1, 128], sizes = [10, 15, 64], strides = [1, 1, 1]} : vector<10x16x192xf32> to vector<10x15x64xf32>
    %66 = arith.addf %64, %65 : vector<10x15x64xf32>
    %c0_78 = arith.constant 0 : index
    %c0_79 = arith.constant 0 : index
    %c0_80 = arith.constant 0 : index
    %67 = vector.load %arg12[%c0_78, %c0_79, %c0_80] : memref<10x16x64xf32, #tpu.memory_space<vmem>>, vector<10x15x64xf32>
    tpu.vector_store %arg12[%c0_78, %c0_79, %c0_80], %66 {strides = array<i32>} : memref<10x16x64xf32, #tpu.memory_space<vmem>>, vector<10x15x64xf32>,
    %c0_81 = arith.constant 0 : index
    %c0_82 = arith.constant 0 : index
    %c0_83 = arith.constant 0 : index
    %68 = vector.load %arg12[%c0_81, %c0_82, %c0_83] : memref<10x16x64xf32, #tpu.memory_space<vmem>>, vector<10x16x64xf32>
    %c0_84 = arith.constant 0 : index
    %c0_85 = arith.constant 0 : index
    %69 = vector.load %arg6[%c0_84, %c0_85] : memref<1x64xf32, #tpu.memory_space<vmem>>, vector<1x64xf32>
    %70 = vector.shape_cast %69 : vector<1x64xf32> to vector<1x1x64xf32>
    %71 = vector.broadcast %70 : vector<1x1x64xf32> to vector<10x16x64xf32>
    %72 = arith.addf %68, %71 : vector<10x16x64xf32>
    %cst_86 = arith.constant 0.000000e+00 : f32
    %73 = vector.broadcast %cst_86 : f32 to vector<10x16x64xf32>
    %74 = arith.maximumf %72, %73 : vector<10x16x64xf32>
    %75 = arith.truncf %74 : vector<10x16x64xf32> to vector<10x16x64xbf16>
    %c0_87 = arith.constant 0 : index
    %c0_88 = arith.constant 0 : index
    %c0_89 = arith.constant 0 : index
    %76 = vector.load %arg11[%c0_87, %c0_88, %c0_89] : memref<10x16x64xbf16, #tpu.memory_space<vmem>>, vector<10x16x64xbf16>
    tpu.vector_store %arg11[%c0_87, %c0_88, %c0_89], %75 {strides = array<i32>} : memref<10x16x64xbf16, #tpu.memory_space<vmem>>, vector<10x16x64xbf16>,
    %c0_i32_90 = arith.constant 0 : i32
    %77 = arith.cmpi eq, %arg1, %c0_i32_90 : i32
    %78 = arith.extui %77 : i1 to i32
    %c0_i32_91 = arith.constant 0 : i32
    %79 = arith.cmpi ne, %78, %c0_i32_91 : i32
    scf.if %79 {
      %cst_179 = arith.constant 0.000000e+00 : bf16
      %145 = vector.broadcast %cst_179 : bf16 to vector<1x16x64xbf16>
      %c0_180 = arith.constant 0 : index
      %c0_181 = arith.constant 0 : index
      %c0_182 = arith.constant 0 : index
      %146 = vector.load %arg11[%c0_180, %c0_181, %c0_182] : memref<10x16x64xbf16, #tpu.memory_space<vmem>>, vector<1x16x64xbf16>
      tpu.vector_store %arg11[%c0_180, %c0_181, %c0_182], %145 {strides = array<i32>} : memref<10x16x64xbf16, #tpu.memory_space<vmem>>, vector<1x16x64xbf16>,
    } else {
    }
    %c1_i32_92 = arith.constant 1 : i32
    %80 = arith.cmpi eq, %arg1, %c1_i32_92 : i32
    %81 = arith.extui %80 : i1 to i32
    %c0_i32_93 = arith.constant 0 : i32
    %82 = arith.cmpi ne, %81, %c0_i32_93 : i32
    scf.if %82 {
      %cst_179 = arith.constant 0.000000e+00 : bf16
      %145 = vector.broadcast %cst_179 : bf16 to vector<1x16x64xbf16>
      %c9 = arith.constant 9 : index
      %c0_180 = arith.constant 0 : index
      %c0_181 = arith.constant 0 : index
      %146 = vector.load %arg11[%c9, %c0_180, %c0_181] : memref<10x16x64xbf16, #tpu.memory_space<vmem>>, vector<1x16x64xbf16>
      tpu.vector_store %arg11[%c9, %c0_180, %c0_181], %145 {strides = array<i32>} : memref<10x16x64xbf16, #tpu.memory_space<vmem>>, vector<1x16x64xbf16>,
    } else {
    }
    %c0_94 = arith.constant 0 : index
    %c0_95 = arith.constant 0 : index
    %c0_96 = arith.constant 0 : index
    %83 = vector.load %arg11[%c0_94, %c0_95, %c0_96] : memref<10x16x64xbf16, #tpu.memory_space<vmem>>, vector<8x16x64xbf16>
    %84 = vector.shape_cast %83 : vector<8x16x64xbf16> to vector<128x64xbf16>
    %c0_97 = arith.constant 0 : index
    %c0_98 = arith.constant 0 : index
    %c0_99 = arith.constant 0 : index
    %85 = vector.load %arg7[%c0_97, %c0_98, %c0_99] : memref<3x64x192xbf16, #tpu.memory_space<vmem>>, vector<1x64x192xbf16>
    %86 = vector.shape_cast %85 : vector<1x64x192xbf16> to vector<64x192xbf16>
    %cst_100 = arith.constant dense<0.000000e+00> : vector<128x192xf32>
    %87 = tpu.matmul %84, %86, %cst_100 {dimension_numbers = #tpu.dot_dimension_numbers<[1], [0], [0], [1], [0, 0, 1, 1], [], []>} : vector<128x64xbf16>, vector<64x192xbf16>, vector<128x192xf32> -> vector<128x192xf32>
    %88 = vector.shape_cast %87 : vector<128x192xf32> to vector<8x16x192xf32>
    %89 = vector.extract_strided_slice %88 {offsets = [0, 0, 64], sizes = [8, 16, 64], strides = [1, 1, 1]} : vector<8x16x192xf32> to vector<8x16x64xf32>
    %c0_101 = arith.constant 0 : index
    %c0_102 = arith.constant 0 : index
    %c0_103 = arith.constant 0 : index
    %90 = vector.load %arg13[%c0_101, %c0_102, %c0_103] : memref<8x16x64xf32, #tpu.memory_space<vmem>>, vector<8x16x64xf32>
    tpu.vector_store %arg13[%c0_101, %c0_102, %c0_103], %89 {strides = array<i32>} : memref<8x16x64xf32, #tpu.memory_space<vmem>>, vector<8x16x64xf32>,
    %c0_104 = arith.constant 0 : index
    %c1_105 = arith.constant 1 : index
    %c0_106 = arith.constant 0 : index
    %91 = vector.load %arg13[%c0_104, %c1_105, %c0_106] : memref<8x16x64xf32, #tpu.memory_space<vmem>>, vector<8x15x64xf32>
    %92 = vector.extract_strided_slice %88 {offsets = [0, 0, 0], sizes = [8, 15, 64], strides = [1, 1, 1]} : vector<8x16x192xf32> to vector<8x15x64xf32>
    %93 = arith.addf %91, %92 : vector<8x15x64xf32>
    %c0_107 = arith.constant 0 : index
    %c1_108 = arith.constant 1 : index
    %c0_109 = arith.constant 0 : index
    %94 = vector.load %arg13[%c0_107, %c1_108, %c0_109] : memref<8x16x64xf32, #tpu.memory_space<vmem>>, vector<8x15x64xf32>
    tpu.vector_store %arg13[%c0_107, %c1_108, %c0_109], %93 {strides = array<i32>} : memref<8x16x64xf32, #tpu.memory_space<vmem>>, vector<8x15x64xf32>,
    %c0_110 = arith.constant 0 : index
    %c0_111 = arith.constant 0 : index
    %c0_112 = arith.constant 0 : index
    %95 = vector.load %arg13[%c0_110, %c0_111, %c0_112] : memref<8x16x64xf32, #tpu.memory_space<vmem>>, vector<8x15x64xf32>
    %96 = vector.extract_strided_slice %88 {offsets = [0, 1, 128], sizes = [8, 15, 64], strides = [1, 1, 1]} : vector<8x16x192xf32> to vector<8x15x64xf32>
    %97 = arith.addf %95, %96 : vector<8x15x64xf32>
    %c0_113 = arith.constant 0 : index
    %c0_114 = arith.constant 0 : index
    %c0_115 = arith.constant 0 : index
    %98 = vector.load %arg13[%c0_113, %c0_114, %c0_115] : memref<8x16x64xf32, #tpu.memory_space<vmem>>, vector<8x15x64xf32>
    tpu.vector_store %arg13[%c0_113, %c0_114, %c0_115], %97 {strides = array<i32>} : memref<8x16x64xf32, #tpu.memory_space<vmem>>, vector<8x15x64xf32>,
    %c1_116 = arith.constant 1 : index
    %c0_117 = arith.constant 0 : index
    %c0_118 = arith.constant 0 : index
    %99 = vector.load %arg11[%c1_116, %c0_117, %c0_118] : memref<10x16x64xbf16, #tpu.memory_space<vmem>>, vector<8x16x64xbf16>
    %100 = vector.shape_cast %99 : vector<8x16x64xbf16> to vector<128x64xbf16>
    %c1_119 = arith.constant 1 : index
    %c0_120 = arith.constant 0 : index
    %c0_121 = arith.constant 0 : index
    %101 = vector.load %arg7[%c1_119, %c0_120, %c0_121] : memref<3x64x192xbf16, #tpu.memory_space<vmem>>, vector<1x64x192xbf16>
    %102 = vector.shape_cast %101 : vector<1x64x192xbf16> to vector<64x192xbf16>
    %cst_122 = arith.constant dense<0.000000e+00> : vector<128x192xf32>
    %103 = tpu.matmul %100, %102, %cst_122 {dimension_numbers = #tpu.dot_dimension_numbers<[1], [0], [0], [1], [0, 0, 1, 1], [], []>} : vector<128x64xbf16>, vector<64x192xbf16>, vector<128x192xf32> -> vector<128x192xf32>
    %104 = vector.shape_cast %103 : vector<128x192xf32> to vector<8x16x192xf32>
    %c0_123 = arith.constant 0 : index
    %c0_124 = arith.constant 0 : index
    %c0_125 = arith.constant 0 : index
    %105 = vector.load %arg13[%c0_123, %c0_124, %c0_125] : memref<8x16x64xf32, #tpu.memory_space<vmem>>, vector<8x16x64xf32>
    %106 = vector.extract_strided_slice %104 {offsets = [0, 0, 64], sizes = [8, 16, 64], strides = [1, 1, 1]} : vector<8x16x192xf32> to vector<8x16x64xf32>
    %107 = arith.addf %105, %106 : vector<8x16x64xf32>
    %c0_126 = arith.constant 0 : index
    %c0_127 = arith.constant 0 : index
    %c0_128 = arith.constant 0 : index
    %108 = vector.load %arg13[%c0_126, %c0_127, %c0_128] : memref<8x16x64xf32, #tpu.memory_space<vmem>>, vector<8x16x64xf32>
    tpu.vector_store %arg13[%c0_126, %c0_127, %c0_128], %107 {strides = array<i32>} : memref<8x16x64xf32, #tpu.memory_space<vmem>>, vector<8x16x64xf32>,
    %c0_129 = arith.constant 0 : index
    %c1_130 = arith.constant 1 : index
    %c0_131 = arith.constant 0 : index
    %109 = vector.load %arg13[%c0_129, %c1_130, %c0_131] : memref<8x16x64xf32, #tpu.memory_space<vmem>>, vector<8x15x64xf32>
    %110 = vector.extract_strided_slice %104 {offsets = [0, 0, 0], sizes = [8, 15, 64], strides = [1, 1, 1]} : vector<8x16x192xf32> to vector<8x15x64xf32>
    %111 = arith.addf %109, %110 : vector<8x15x64xf32>
    %c0_132 = arith.constant 0 : index
    %c1_133 = arith.constant 1 : index
    %c0_134 = arith.constant 0 : index
    %112 = vector.load %arg13[%c0_132, %c1_133, %c0_134] : memref<8x16x64xf32, #tpu.memory_space<vmem>>, vector<8x15x64xf32>
    tpu.vector_store %arg13[%c0_132, %c1_133, %c0_134], %111 {strides = array<i32>} : memref<8x16x64xf32, #tpu.memory_space<vmem>>, vector<8x15x64xf32>,
    %c0_135 = arith.constant 0 : index
    %c0_136 = arith.constant 0 : index
    %c0_137 = arith.constant 0 : index
    %113 = vector.load %arg13[%c0_135, %c0_136, %c0_137] : memref<8x16x64xf32, #tpu.memory_space<vmem>>, vector<8x15x64xf32>
    %114 = vector.extract_strided_slice %104 {offsets = [0, 1, 128], sizes = [8, 15, 64], strides = [1, 1, 1]} : vector<8x16x192xf32> to vector<8x15x64xf32>
    %115 = arith.addf %113, %114 : vector<8x15x64xf32>
    %c0_138 = arith.constant 0 : index
    %c0_139 = arith.constant 0 : index
    %c0_140 = arith.constant 0 : index
    %116 = vector.load %arg13[%c0_138, %c0_139, %c0_140] : memref<8x16x64xf32, #tpu.memory_space<vmem>>, vector<8x15x64xf32>
    tpu.vector_store %arg13[%c0_138, %c0_139, %c0_140], %115 {strides = array<i32>} : memref<8x16x64xf32, #tpu.memory_space<vmem>>, vector<8x15x64xf32>,
    %c2_141 = arith.constant 2 : index
    %c0_142 = arith.constant 0 : index
    %c0_143 = arith.constant 0 : index
    %117 = vector.load %arg11[%c2_141, %c0_142, %c0_143] : memref<10x16x64xbf16, #tpu.memory_space<vmem>>, vector<8x16x64xbf16>
    %118 = vector.shape_cast %117 : vector<8x16x64xbf16> to vector<128x64xbf16>
    %c2_144 = arith.constant 2 : index
    %c0_145 = arith.constant 0 : index
    %c0_146 = arith.constant 0 : index
    %119 = vector.load %arg7[%c2_144, %c0_145, %c0_146] : memref<3x64x192xbf16, #tpu.memory_space<vmem>>, vector<1x64x192xbf16>
    %120 = vector.shape_cast %119 : vector<1x64x192xbf16> to vector<64x192xbf16>
    %cst_147 = arith.constant dense<0.000000e+00> : vector<128x192xf32>
    %121 = tpu.matmul %118, %120, %cst_147 {dimension_numbers = #tpu.dot_dimension_numbers<[1], [0], [0], [1], [0, 0, 1, 1], [], []>} : vector<128x64xbf16>, vector<64x192xbf16>, vector<128x192xf32> -> vector<128x192xf32>
    %122 = vector.shape_cast %121 : vector<128x192xf32> to vector<8x16x192xf32>
    %c0_148 = arith.constant 0 : index
    %c0_149 = arith.constant 0 : index
    %c0_150 = arith.constant 0 : index
    %123 = vector.load %arg13[%c0_148, %c0_149, %c0_150] : memref<8x16x64xf32, #tpu.memory_space<vmem>>, vector<8x16x64xf32>
    %124 = vector.extract_strided_slice %122 {offsets = [0, 0, 64], sizes = [8, 16, 64], strides = [1, 1, 1]} : vector<8x16x192xf32> to vector<8x16x64xf32>
    %125 = arith.addf %123, %124 : vector<8x16x64xf32>
    %c0_151 = arith.constant 0 : index
    %c0_152 = arith.constant 0 : index
    %c0_153 = arith.constant 0 : index
    %126 = vector.load %arg13[%c0_151, %c0_152, %c0_153] : memref<8x16x64xf32, #tpu.memory_space<vmem>>, vector<8x16x64xf32>
    tpu.vector_store %arg13[%c0_151, %c0_152, %c0_153], %125 {strides = array<i32>} : memref<8x16x64xf32, #tpu.memory_space<vmem>>, vector<8x16x64xf32>,
    %c0_154 = arith.constant 0 : index
    %c1_155 = arith.constant 1 : index
    %c0_156 = arith.constant 0 : index
    %127 = vector.load %arg13[%c0_154, %c1_155, %c0_156] : memref<8x16x64xf32, #tpu.memory_space<vmem>>, vector<8x15x64xf32>
    %128 = vector.extract_strided_slice %122 {offsets = [0, 0, 0], sizes = [8, 15, 64], strides = [1, 1, 1]} : vector<8x16x192xf32> to vector<8x15x64xf32>
    %129 = arith.addf %127, %128 : vector<8x15x64xf32>
    %c0_157 = arith.constant 0 : index
    %c1_158 = arith.constant 1 : index
    %c0_159 = arith.constant 0 : index
    %130 = vector.load %arg13[%c0_157, %c1_158, %c0_159] : memref<8x16x64xf32, #tpu.memory_space<vmem>>, vector<8x15x64xf32>
    tpu.vector_store %arg13[%c0_157, %c1_158, %c0_159], %129 {strides = array<i32>} : memref<8x16x64xf32, #tpu.memory_space<vmem>>, vector<8x15x64xf32>,
    %c0_160 = arith.constant 0 : index
    %c0_161 = arith.constant 0 : index
    %c0_162 = arith.constant 0 : index
    %131 = vector.load %arg13[%c0_160, %c0_161, %c0_162] : memref<8x16x64xf32, #tpu.memory_space<vmem>>, vector<8x15x64xf32>
    %132 = vector.extract_strided_slice %122 {offsets = [0, 1, 128], sizes = [8, 15, 64], strides = [1, 1, 1]} : vector<8x16x192xf32> to vector<8x15x64xf32>
    %133 = arith.addf %131, %132 : vector<8x15x64xf32>
    %c0_163 = arith.constant 0 : index
    %c0_164 = arith.constant 0 : index
    %c0_165 = arith.constant 0 : index
    %134 = vector.load %arg13[%c0_163, %c0_164, %c0_165] : memref<8x16x64xf32, #tpu.memory_space<vmem>>, vector<8x15x64xf32>
    tpu.vector_store %arg13[%c0_163, %c0_164, %c0_165], %133 {strides = array<i32>} : memref<8x16x64xf32, #tpu.memory_space<vmem>>, vector<8x15x64xf32>,
    %c0_166 = arith.constant 0 : index
    %c0_167 = arith.constant 0 : index
    %c0_168 = arith.constant 0 : index
    %135 = vector.load %arg13[%c0_166, %c0_167, %c0_168] : memref<8x16x64xf32, #tpu.memory_space<vmem>>, vector<8x16x64xf32>
    %c0_169 = arith.constant 0 : index
    %c0_170 = arith.constant 0 : index
    %136 = vector.load %arg8[%c0_169, %c0_170] : memref<1x64xf32, #tpu.memory_space<vmem>>, vector<1x64xf32>
    %137 = vector.shape_cast %136 : vector<1x64xf32> to vector<1x1x64xf32>
    %138 = vector.broadcast %137 : vector<1x1x64xf32> to vector<8x16x64xf32>
    %139 = arith.addf %135, %138 : vector<8x16x64xf32>
    %c0_171 = arith.constant 0 : index
    %c0_172 = arith.constant 0 : index
    %c0_173 = arith.constant 0 : index
    %c0_174 = arith.constant 0 : index
    %140 = vector.load %arg2[%c0_171, %c0_172, %c0_173, %c0_174] : memref<1x8x16x64xf32, #tpu.memory_space<vmem>>, vector<1x8x16x64xf32>
    %141 = vector.shape_cast %140 : vector<1x8x16x64xf32> to vector<8x16x64xf32>
    %142 = arith.addf %139, %141 : vector<8x16x64xf32>
    %143 = vector.shape_cast %142 : vector<8x16x64xf32> to vector<1x8x16x64xf32>
    %c0_175 = arith.constant 0 : index
    %c0_176 = arith.constant 0 : index
    %c0_177 = arith.constant 0 : index
    %c0_178 = arith.constant 0 : index
    %144 = vector.load %arg9[%c0_175, %c0_176, %c0_177, %c0_178] : memref<1x8x16x64xf32, #tpu.memory_space<vmem>>, vector<1x8x16x64xf32>
    tpu.vector_store %arg9[%c0_175, %c0_176, %c0_177, %c0_178], %143 {strides = array<i32>} : memref<1x8x16x64xf32, #tpu.memory_space<vmem>>, vector<1x8x16x64xf32>,
    return
  }
  func.func @transform_0(%arg0: i32, %arg1: i32) -> (i32, i32, i32, i32) {
    %c0_i32 = arith.constant 0 : i32
    %c0_i32_0 = arith.constant 0 : i32
    %c0_i32_1 = arith.constant 0 : i32
    return %arg0, %arg1, %c0_i32, %c0_i32_0 : i32, i32, i32, i32
  }
  func.func @transform_1(%arg0: i32, %arg1: i32) -> (i32, i32, i32, i32) {
    %c4_i32 = arith.constant 4 : i32
    %0 = arith.muli %arg1, %c4_i32 : i32
    %c1_i32 = arith.constant 1 : i32
    %1 = arith.subi %0, %c1_i32 : i32
    %c0_i32 = arith.constant 0 : i32
    %2 = arith.maxsi %1, %c0_i32 : i32
    %c0_i32_0 = arith.constant 0 : i32
    %c0_i32_1 = arith.constant 0 : i32
    %c0_i32_2 = arith.constant 0 : i32
    return %arg0, %2, %c0_i32_0, %c0_i32_1 : i32, i32, i32, i32
  }
  func.func @transform_2(%arg0: i32, %arg1: i32) -> (i32, i32, i32, i32) {
    %c1_i32 = arith.constant 1 : i32
    %0 = arith.addi %arg1, %c1_i32 : i32
    %c4_i32 = arith.constant 4 : i32
    %1 = arith.muli %0, %c4_i32 : i32
    %c7_i32 = arith.constant 7 : i32
    %2 = arith.minsi %1, %c7_i32 : i32
    %c0_i32 = arith.constant 0 : i32
    %c0_i32_0 = arith.constant 0 : i32
    %c0_i32_1 = arith.constant 0 : i32
    return %arg0, %2, %c0_i32, %c0_i32_0 : i32, i32, i32, i32
  }
  func.func @transform_3(%arg0: i32, %arg1: i32) -> (i32, i32, i32) {
    %c0_i32 = arith.constant 0 : i32
    %c0_i32_0 = arith.constant 0 : i32
    %c0_i32_1 = arith.constant 0 : i32
    %c0_i32_2 = arith.constant 0 : i32
    return %c0_i32, %c0_i32_0, %c0_i32_1 : i32, i32, i32
  }
  func.func @transform_4(%arg0: i32, %arg1: i32) -> (i32, i32) {
    %c0_i32 = arith.constant 0 : i32
    %c0_i32_0 = arith.constant 0 : i32
    %c0_i32_1 = arith.constant 0 : i32
    return %c0_i32, %c0_i32_0 : i32, i32
  }
  func.func @transform_5(%arg0: i32, %arg1: i32) -> (i32, i32, i32) {
    %c0_i32 = arith.constant 0 : i32
    %c0_i32_0 = arith.constant 0 : i32
    %c0_i32_1 = arith.constant 0 : i32
    %c0_i32_2 = arith.constant 0 : i32
    return %c0_i32, %c0_i32_0, %c0_i32_1 : i32, i32, i32
  }
  func.func @transform_6(%arg0: i32, %arg1: i32) -> (i32, i32) {
    %c0_i32 = arith.constant 0 : i32
    %c0_i32_0 = arith.constant 0 : i32
    %c0_i32_1 = arith.constant 0 : i32
    return %c0_i32, %c0_i32_0 : i32, i32
  }
  func.func @transform_7(%arg0: i32, %arg1: i32) -> (i32, i32, i32, i32) {
    %c0_i32 = arith.constant 0 : i32
    %c0_i32_0 = arith.constant 0 : i32
    %c0_i32_1 = arith.constant 0 : i32
    return %arg0, %arg1, %c0_i32, %c0_i32_0 : i32, i32, i32, i32
  }
}

</mosaic_0001>

<bundles_post_ra>
// kernel: tpu_custom_call.1
= control target key start
LH: loop header
LB: loop body
LE: loop exit
PB: predicated region body
PF: predicated region fallthrough
CT: control target
= control target key end

     0   :  { %s6922_s0 = inlined_call_operand.hbm [shape: f32[2,16,16,64], index: 0, kind: input, shape index: {}]   ;;  %s6923_s1 = inlined_call_operand.hbm [shape: f32[2,16,16,64], index: 1, kind: input, shape index: {}]   ;;  %s6924_s2 = inlined_call_operand.hbm [shape: f32[2,16,16,64], index: 2, kind: input, shape index: {}]   ;;  %s6925_s3 = inlined_call_operand.hbm [shape: bf16[3,64,192], index: 3, kind: input, shape index: {}]   ;;  %s6926_s4 = inlined_call_operand.vmem [shape: f32[1,64], index: 4, kind: input, shape index: {}]   ;;  %s6927_s5 = inlined_call_operand.hbm [shape: bf16[3,64,192], index: 5, kind: input, shape index: {}]   ;;  %s6928_s6 = inlined_call_operand.vmem [shape: f32[1,64], index: 6, kind: input, shape index: {}]   ;;  %s6929_s7 = inlined_call_operand.hbm [shape: f32[2,16,16,64], index: 7, kind: output, shape index: {}]  }
   0x1   :  { %7083 = sst [smem:[#allocation98_spill]] %s6922_s0 }
   0x2   :  { %7084 = sst [smem:[#allocation99_spill]] %s6923_s1 }
   0x3   :  { %7085 = sst [smem:[#allocation100_spill]] %s6924_s2 }
   0x4   :  { %7086 = sst [smem:[#allocation101_spill]] %s6925_s3 }
   0x5   :  { %7087 = sst [smem:[#allocation102_spill]] %s6926_s4 }
   0x6   :  { %7088 = sst [smem:[#allocation103_spill]] %s6927_s5 }
   0x7   :  { %7089 = sst [smem:[#allocation104_spill]] %s6928_s6 }
   0x8   :  { %7090 = sst [smem:[#allocation105_spill]] %s6929_s7 }
   0x9   :  { %12 = vsyncpa [#allocation7], 0 }
   0xa   :  { %14 = vsyncpa [#allocation7 + $0x1], 0 }
   0xb   :  { %15 = vsyncpa [#allocation10], 0 }
   0xc   :  { %17 = vsyncpa [#allocation10 + $0x1], 0 }
   0xd   :  { %18 = vsyncpa [#allocation13], 0 }
   0xe   :  { %19 = vsyncpa [#allocation8], 0 }
   0xf   :  { %21 = vsyncpa [#allocation8 + $0x1], 0  ;;  %s4633_s24 = smov 0   ;;  %s4635_s25 = smov 0  }
  0x10   :  { %s4637_s26 = smov 0   ;;  %s4639_s27 = smov 0  }
  0x11   :  { %s4641_s28 = smov 0   ;;  %s4643_s29 = smov 0  }
  0x12   :  { %s4645_s30 = smov 0   ;;  %s4647_s8 = smov 0  }
  0x13   :  { %s4649_s9 = smov 0   ;;  %s4651_s10 = smov 0  }
  0x14   :  { %s4653_s11 = smov 0   ;;  %s4655_s12 = smov 0  }
  0x15   :  { %s4657_s13 = smov 0   ;;  %s4659_s14 = smov 0  }
  0x16 LB: > { %7091 = sst [smem:[#allocation21_spill]] %s4523_s24  ;;  %s4704_s15 = sadd.s32 4294967295, %s4575_s14   ;;  %s4575_s14 = sphi %s4659_s14, %s27_s14   ;;  %s4571_s13 = sphi %s4657_s13, %s7441_s13   ;;  %s4567_s12 = sphi %s4655_s12, %s7431_s12   ;;  %s4563_s11 = sphi %s4653_s11, %s7430_s11   ;;  %s4559_s10 = sphi %s4651_s10, %s7429_s10   ;;  %s4555_s9 = sphi %s4649_s9, %s7440_s9   ;;  %s4551_s8 = sphi %s4647_s8, %s7439_s8   ;;  %s4547_s30 = sphi %s4645_s30, %s7438_s30   ;;  %s4543_s29 = sphi %s4643_s29, %s7437_s29   ;;  %s4539_s28 = sphi %s4641_s28, %s7436_s28   ;;  %s4535_s27 = sphi %s4639_s27, %s7435_s27   ;;  %s4531_s26 = sphi %s4637_s26, %s7434_s26   ;;  %s4527_s25 = sphi %s4635_s25, %s7426_s25   ;;  %s4523_s24 = sphi %s4633_s24, %s7425_s24  }
  0x17   : > { %7092 = sst [smem:[#allocation22_spill]] %s4527_s25  ;;  %p3868_p0 = scmp.ge.s32.totalorder %s4575_s14, 1 }
  0x18   : > { %7093 = sst [smem:[#allocation23_spill]] %s4531_s26  ;;  %p6931_p1 = scmp.eq.s32.totalorder %s4704_s15, 0 }
  0x19   : > { %7094 = sst [smem:[#allocation24_spill]] %s4539_s28  ;;  %p256_p3 = scmp.lt.s32.totalorder %s4575_s14, 5 }
  0x1a   : > { %7095 = sst [smem:[#allocation25_spill]] %s4559_s10  ;;  %s4577_s17 = smov [#allocation12]  }
  0x1b   : > { %7096 = sst [smem:[#allocation26_spill]] %s4563_s11  ;;  %p4710_p4 = pnand %p3868_p0, %p256_p3 }
  0x1c   : > { %7097 = sst [smem:[#allocation27_spill]] %s4567_s12  ;;  %s268_s18 = sshll.u32 %s4577_s17, 4  ;;  %s269_s18 = int_to_ptr.vmem [resolvable:$true] %s268_s18 }
  0x1d   : > { %7098 = sst [smem:[#allocation28_spill]] %s4571_s13  ;;  %p4048_p5 = pneg %p4710_p4 }
  0x1e   : > { %s7099_s16 = scalar_select %p4710_p4, 1, 0 }
  0x1f   : > { %p4718_p6 = pnand %p4048_p5, %p6931_p1  ;;  %s7102_s3 = sld [smem:[#allocation101_spill]] }
  0x20   : > { %7100 = sst [smem:[#allocation29_spill]] %s7099_s16 }
  0x21   : > { %p6951_p8 = pneg %p4718_p6 }
  0x25   : > { %s4271_s22 = scalar_lea.hbm %s7102_s3, 3072 }
  0x26   : > { %p4272_p7 = scmp.ne.s32.totalorder %s7102_s3, %s4271_s22  ;;  %p4278_p11 = scmp.lt.u32.totalorder %s4271_s22, %s7102_s3 }
  0x28   : > { %p4274_p9 = pnand %p6951_p8, %p4272_p7 }
  0x2a   : > { %p4275_p10 = pneg %p4274_p9 }
  0x2c   : > { %p4280_p12 = pnand %p4278_p11, %p4275_p10 }
  0x2e   : > { %4283 = shalt.err (!%p4280_p12)
}
  0x2f   : > { %s4284_s20 = scalar_lea.vmem %s269_s18, 3072  ;;  %p4292_p5 = scmp.lt.s32.totalorder %s269_s18, %s269_s18 }
  0x30   : > { %p4285_p13 = scmp.ne.s32.totalorder %s269_s18, %s4284_s20  ;;  %p4293_p2 = scmp.lt.s32.totalorder %s4284_s20, %s4284_s20 }
  0x32   : > { %p4287_p0 = pnand %p4285_p13, %p6951_p8  ;;  %p4294_p1 = por %p4293_p2, %p4292_p5 }
  0x34   : > { %p4288_p3 = pneg %p4287_p0 }
  0x36   : > { %p4295_p4 = pnand %p4294_p1, %p4288_p3 }
  0x38   : > { %4298 = shalt.err (!%p4295_p4)
}
  0x39   : > { %s6935_s7 = smov 128   ;;  %s6937_s11 = smov 8  }
  0x3a   : > { %4051 = dma.hbm_to_vmem [thread:$0]  (!%p4718_p6), %s7102_s3, 3072, %s269_s18, [#allocation13], %s6935_s7, %s6935_s7, %s6937_s11  }
  0x3b   : > { %s36_s23 = sadd.s32 1, %s4567_s12  ;;  %s39_s17 = sadd.s32 1, %s4571_s13 }
  0x3c   : > { %p37_p1 = scmp.ge.s32.totalorder %s36_s23, 2  ;;  %p6950_p2 = scmp.eq.s32.totalorder %s4575_s14, 0 }
  0x3d   : > { %s3862_s20 = sshll.u32 %s4567_s12, 2  ;;  %s84_s6 = sadd.s32 1, %s4543_s29 }
  0x3e   : > { %s7443_s23 = smov (%p37_p1, %s36_s23), 0  ;;  %s7445_s17 = smov (!%p37_p1, %s39_s17), %s4571_s13 }
  0x3f   : > { %7103 = sst [smem:[#allocation30_spill]] %s7443_s23  ;;  %s44_s4 = ssub.s32 %s4567_s12, %s7443_s23 }
  0x40   : > { %s3863_s10 = sadd.s32 4294967295, %s3862_s20  ;;  %p41_p4 = scmp.ge.s32.totalorder %s7445_s17, 2 }
  0x41   : > { %p73_p7 = scmp.gt.s32.totalorder %s3863_s10, 0  ;;  %s3864_s18 = sshll.u32 %s7443_s23, 2 }
  0x42   : > { %p91_p9 = scmp.ne.s32.totalorder %s4543_s29, %s4539_s28  ;;  %s7447_s17 = smov (%p41_p4, %s7445_s17), 0 }
  0x43   : > { %7104 = sst [smem:[#allocation31_spill]] %s7447_s17  ;;  %s7449_s10 = smov (!%p73_p7, %s3863_s10), 0 }
  0x44   : > { %s4764_s21 = ssub.s32 %s4571_s13, %s7447_s17  ;;  %s3865_s22 = sadd.s32 4294967295, %s3864_s18 }
  0x45   : > { %7105 = sst [smem:[#allocation32_spill]] %s4764_s21  ;;  %s4767_s7 = sor.u32 %s44_s4, %s4764_s21 }
  0x46   : > { %p77_p10 = scmp.gt.s32.totalorder %s3865_s22, 0  ;;  %p4772_p12 = por %p91_p9, %p6950_p2 }
  0x47   : > { %p97_p13 = scmp.ne.s32.totalorder %s4539_s28, %s4535_s27  ;;  %s4778_s3 = sadd.s32 4, %s3862_s20 }
  0x48   : > { %s7451_s22 = smov (!%p77_p10, %s3865_s22), 0  ;;  %p7107_p3 = scmp.eq.s32.totalorder %s4704_s15, 0 }
  0x49   : > { %s80_s17 = ssub.s32 %s7449_s10, %s7451_s22  ;;  %s4788_s16 = sadd.s32 4, %s3864_s18 }
  0x4a   : > { %s81_s4 = sor.u32 %s80_s17, %s4764_s21  ;;  %p4784_p5 = por %p97_p13, %p7107_p3 }
  0x4b   : > { %p82_p1 = scmp.eq.s32.totalorder %s81_s4, 0  ;;  %p6949_p7 = scmp.lt.s32.totalorder %s4575_s14, 4 }
  0x4c   : > { %s7108_s23 = scalar_select %p4784_p5, 1, 0 }
  0x4d   : > { %s4793_s27 = scalar_select %p82_p1, %s4543_s29, %s84_s6  }
  0x4e   : > { %7109 = sst [smem:[#allocation33_spill]] %s7108_s23  ;;  %s4796_s20 = sshll.u32 %s4571_s13, 5 }
  0x4f   : > { %s325_s22 = sand.u32 1, %s4575_s14   ;;  %s327_s17 = sand.u32 1, %s4543_s29  }
  0x50   : > { %s3877_s28 = sshll.u32 %s327_s17, 5  ;;  %s4019_s2 = sshll.u32 %s7449_s10, 2 }
  0x51   : > { %s340_s21 = sadd.s32 %s4019_s2, %s4796_s20  ;;  %s329_s23 = scalar_lea.vmem [#allocation9], %s3877_s28 }
  0x52   : > { %s3883_s24 = sshll.u32 %s340_s21, 7  ;;  %s343_s4 = sshll.u32 %s329_s23, 4  ;;  %s4806_s4 = int_to_ptr.vmem [resolvable:$true] %s343_s4 }
  0x53   : > { %s7110_s1 = sld [smem:[#allocation99_spill]]  ;;  %p4812_p9 = pnand %p6949_p7, %p4772_p12 }
  0x54   : > { %s4580_s2 = smov [#allocation14]  }
  0x55   : > { %s284_s28 = sshll.u32 %s4580_s2, 4  ;;  %p4301_p13 = pneg %p4812_p9  ;;  %s4816_s28 = int_to_ptr.vmem [resolvable:$true] %s284_s28 }
  0x59   : > { %s4804_s18 = scalar_lea.hbm %s7110_s1, %s3883_s24  ;;  %s4818_s24 = scalar_lea.sflag [#allocation10], %s325_s22 }
  0x5a   : > { %s4299_s25 = scalar_lea.hbm %s4804_s18, 512  ;;  %s4304_s11 = scalar_lea.hbm %s7110_s1, 8192 }
  0x5b   : > { %p4300_p10 = scmp.ne.s32.totalorder %s4804_s18, %s4299_s25  ;;  %p4305_p12 = scmp.lt.u32.totalorder %s4804_s18, %s7110_s1 }
  0x5c   : > { %p4306_p4 = scmp.lt.u32.totalorder %s4304_s11, %s4299_s25  ;;  %p4308_p7 = scmp.lt.u32.totalorder %s4299_s25, %s4804_s18 }
  0x5d   : > { %p4302_p3 = pnand %p4301_p13, %p4300_p10 }
  0x5e   : > { %p4307_p0 = por %p4306_p4, %p4305_p12 }
  0x5f   : > { %p4303_p1 = pneg %p4302_p3 }
  0x60   : > { %p4309_p2 = por %p4308_p7, %p4307_p0 }
  0x62   : > { %p4310_p11 = pnand %p4309_p2, %p4303_p1 }
  0x64   : > { %4313 = shalt.err (!%p4310_p11)
}
  0x65   : > { %s4314_s22 = scalar_lea.vmem %s4806_s4, 512  ;;  %s4581_s17 = smov [#allocation9]  }
  0x66   : > { %p4315_p10 = scmp.ne.s32.totalorder %s4806_s4, %s4314_s22  ;;  %s4319_s2 = sshll.u32 %s4581_s17, 4  ;;  %s4320_s2 = int_to_ptr.vmem [resolvable:$false] %s4319_s2 }
  0x67   : > { %s4321_s26 = scalar_lea.vmem %s4320_s2, 1024  ;;  %p4322_p5 = scmp.lt.s32.totalorder %s4806_s4, %s4320_s2 }
  0x68   : > { %p4317_p3 = pnand %p4315_p10, %p4301_p13  ;;  %p4323_p4 = scmp.lt.s32.totalorder %s4321_s26, %s4314_s22 }
  0x6a   : > { %p4318_p8 = pneg %p4317_p3  ;;  %p4324_p12 = por %p4323_p4, %p4322_p5 }
  0x6c   : > { %p4325_p0 = pnand %p4324_p12, %p4318_p8 }
  0x6e   : > { %4328 = shalt.err (!%p4325_p0)
}
  0x6f   : > { %s7112_s25 = smov 8   ;;  %s7113_s10 = smov 128  }
  0x70   : > { %4061 = dma.hbm_to_vmem [thread:$0]  (!%p4812_p9), %s4804_s18, 512, %s4806_s4, %s4818_s24, %s7113_s10, %s7113_s10, %s7112_s25  }
  0x71   : > { %s7114_s5 = sld [smem:[#allocation103_spill]]  ;;  %p7115_p8 = pneg %p4718_p6 }
  0x77   : > { %s4329_s21 = scalar_lea.hbm %s7114_s5, 3072 }
  0x78   : > { %p4330_p2 = scmp.ne.s32.totalorder %s7114_s5, %s4329_s21  ;;  %p4336_p7 = scmp.lt.u32.totalorder %s4329_s21, %s7114_s5 }
  0x7a   : > { %p4332_p11 = pnand %p4330_p2, %p7115_p8 }
  0x7c   : > { %p4333_p5 = pneg %p4332_p11 }
  0x7e   : > { %p4338_p13 = pnand %p4336_p7, %p4333_p5 }
  0x80   : > { %4341 = shalt.err (!%p4338_p13)
}
  0x81   : > { %s4342_s4 = scalar_lea.vmem %s4816_s28, 3072  ;;  %p7116_p1 = pmov %p7115_p8 }
  0x82   : > { %p4343_p9 = scmp.ne.s32.totalorder %s4816_s28, %s4342_s4  ;;  %p4350_p4 = scmp.lt.s32.totalorder %s4816_s28, %s4816_s28 }
  0x83   : > { %p4351_p12 = scmp.lt.s32.totalorder %s4342_s4, %s4342_s4 }
  0x84   : > { %p4345_p10 = pnand %p4343_p9, %p7116_p1 }
  0x85   : > { %p4352_p0 = por %p4351_p12, %p4350_p4 }
  0x86   : > { %p4346_p3 = pneg %p4345_p10 }
  0x88   : > { %p4353_p2 = pnand %p4352_p0, %p4346_p3 }
  0x8a   : > { %4356 = shalt.err (!%p4353_p2)
}
  0x8b   : > { %4054 = dma.hbm_to_vmem [thread:$0]  (!%p4718_p6), %s7114_s5, 3072, %s4816_s28, [#allocation13], %s7113_s10, %s7113_s10, %s7112_s25  }
  0x8c   : > { %s3861_s19 = sadd.s32 4294967294, %s4575_s14   ;;  %s48_s11 = sadd.s32 1, %s4555_s9 }
  0x8d   : > { %p55_p8 = scmp.ne.s32.totalorder %s4555_s9, %s4551_s8  ;;  %p7117_p11 = scmp.eq.s32.totalorder %s4767_s7, 0 }
  0x8e   : > { %p7118_p5 = scmp.eq.s32.totalorder %s4575_s14, 0  ;;  %p61_p13 = scmp.ne.s32.totalorder %s4551_s8, %s4547_s30 }
  0x8f   : > { %s4884_s23 = scalar_select %p7117_p11, %s4555_s9, %s48_s11  }
  0x90   : > { %p4888_p7 = por %p7118_p5, %p55_p8  ;;  %p7120_p9 = scmp.eq.s32.totalorder %s4704_s15, 3 }
  0x91   : > { %p249_p6 = scmp.eq.s32.totalorder %s3861_s19, 3  ;;  %p7122_p10 = scmp.eq.s32.totalorder %s4704_s15, 0 }
  0x92   : > { %p4896_p1 = por %p7120_p9, %p55_p8  ;;  %s301_s7 = sand.u32 1, %s4555_s9  }
  0x93   : > { %p4902_p3 = por %p7122_p10, %p61_p13  ;;  %p4907_p4 = por %p249_p6, %p61_p13 }
  0x94   : > { %s7121_s17 = scalar_select %p4896_p1, 1, 0 }
  0x95   : > { %s7124_s2 = scalar_select %p4907_p4, 1, 0 }
  0x96   : > { %s3872_s6 = sshll.u32 %s301_s7, 7  ;;  %s4018_s22 = sshll.u32 %s4567_s12, 4 }
  0x97   : > { %s312_s4 = sadd.s32 %s4018_s22, %s4796_s20  ;;  %s305_s26 = scalar_lea.vmem [#allocation6], %s3872_s6 }
  0x98   : > { %s3876_s18 = sshll.u32 %s312_s4, 7  ;;  %s315_s11 = sshll.u32 %s305_s26, 4  ;;  %s4918_s11 = int_to_ptr.vmem [resolvable:$true] %s315_s11 }
  0x99   : > { %s7125_s0 = sld [smem:[#allocation98_spill]]  ;;  %p7126_p12 = scmp.lt.s32.totalorder %s4575_s14, 4 }
  0x9a   : > { %s4928_s6 = scalar_lea.sflag [#allocation7], %s301_s7 }
  0x9b   : > { %p4924_p0 = pnand %p7126_p12, %p4888_p7 }
  0x9d   : > { %p4359_p8 = pneg %p4924_p0 }
  0x9f   : > { %s4916_s19 = scalar_lea.hbm %s7125_s0, %s3876_s18  ;;  %s4362_s21 = scalar_lea.hbm %s7125_s0, 8192 }
  0xa0   : > { %s4357_s22 = scalar_lea.hbm %s4916_s19, 2048  ;;  %p4363_p7 = scmp.lt.u32.totalorder %s4916_s19, %s7125_s0 }
  0xa1   : > { %p4358_p2 = scmp.ne.s32.totalorder %s4916_s19, %s4357_s22  ;;  %p4364_p13 = scmp.lt.u32.totalorder %s4362_s21, %s4357_s22 }
  0xa2   : > { %p4366_p6 = scmp.lt.u32.totalorder %s4357_s22, %s4916_s19 }
  0xa3   : > { %p4360_p11 = pnand %p4359_p8, %p4358_p2  ;;  %p4365_p9 = por %p4364_p13, %p4363_p7 }
  0xa5   : > { %p4361_p5 = pneg %p4360_p11  ;;  %p4367_p10 = por %p4366_p6, %p4365_p9 }
  0xa7   : > { %p4368_p12 = pnand %p4367_p10, %p4361_p5 }
  0xa9   : > { %4371 = shalt.err (!%p4368_p12)
}
  0xaa   : > { %s4372_s7 = scalar_lea.vmem %s4918_s11, 2048  ;;  %s4582_s26 = smov [#allocation6]  }
  0xab   : > { %p4373_p2 = scmp.ne.s32.totalorder %s4918_s11, %s4372_s7  ;;  %s4377_s1 = sshll.u32 %s4582_s26, 4  ;;  %s4378_s1 = int_to_ptr.vmem [resolvable:$false] %s4377_s1 }
  0xac   : > { %s4379_s5 = scalar_lea.vmem %s4378_s1, 4096  ;;  %p4380_p1 = scmp.lt.s32.totalorder %s4918_s11, %s4378_s1 }
  0xad   : > { %p4375_p11 = pnand %p4373_p2, %p4359_p8  ;;  %p4381_p7 = scmp.lt.s32.totalorder %s4379_s5, %s4372_s7 }
  0xaf   : > { %p4376_p4 = pneg %p4375_p11  ;;  %p4382_p13 = por %p4381_p7, %p4380_p1 }
  0xb1   : > { %p4383_p9 = pnand %p4382_p13, %p4376_p4 }
  0xb3   : > { %4386 = shalt.err (!%p4383_p9)
}
  0xb4   : > { %s7128_s22 = sld [smem:[#allocation23_spill]]  ;;  %s7129_s21 = sld [smem:[#allocation22_spill]] }
  0xb5   : > { %s7130_s4 = sld [smem:[#allocation21_spill]]  ;;  %s7131_s18 = sld [smem:[#allocation32_spill]] }
  0xb6   : > { %4058 = dma.hbm_to_vmem [thread:$0]  (!%p4924_p0), %s4916_s19, 2048, %s4918_s11, %s4928_s6, %s7113_s10, %s7113_s10, %s7112_s25  }
  0xb7   : > { %p7132_p1 = scmp.lt.s32.totalorder %s4778_s3, 7  ;;  %p7133_p4 = scmp.lt.s32.totalorder %s4788_s16, 7 }
  0xb8   : > { %p7134_p6 = scmp.eq.s32.totalorder %s4575_s14, 0  ;;  %p7136_p2 = scmp.eq.s32.totalorder %s4704_s15, 0 }
  0xb9   : > { %s7453_s3 = smov (!%p7132_p1, %s4778_s3), 7  ;;  %s7455_s16 = smov (!%p7133_p4, %s4788_s16), 7 }
  0xba   : > { %s120_s13 = sadd.s32 1, %s7128_s22  ;;  %p127_p8 = scmp.ne.s32.totalorder %s7128_s22, %s7129_s21 }
  0xbb   : > { %s116_s7 = ssub.s32 %s7453_s3, %s7455_s16  ;;  %p133_p5 = scmp.ne.s32.totalorder %s7129_s21, %s7130_s4 }
  0xbc   : > { %s117_s26 = sor.u32 %s116_s7, %s7131_s18  ;;  %p4973_p10 = por %p127_p8, %p7134_p6 }
  0xbd   : > { %p118_p12 = scmp.eq.s32.totalorder %s117_s26, 0  ;;  %p4979_p11 = por %p133_p5, %p7136_p2 }
  0xbe   : > { %s355_s19 = sand.u32 1, %s7128_s22   ;;  %s4022_s6 = sshll.u32 %s7453_s3, 2 }
  0xbf   : > { %s7137_s11 = scalar_select %p4979_p11, 1, 0 }
  0xc0   : > { %s7457_s22 = smov (!%p118_p12, %s7128_s22), %s120_s13  ;;  %s3884_s16 = sshll.u32 %s355_s19, 5 }
  0xc1   : > { %s368_s5 = sadd.s32 %s4022_s6, %s4796_s20  ;;  %s7138_s7 = sld [smem:[#allocation100_spill]] }
  0xc2   : > { %s3889_s21 = sshll.u32 %s368_s5, 7  ;;  %s357_s26 = scalar_lea.vmem [#allocation11], %s3884_s16 }
  0xc3   : > { %s371_s12 = sshll.u32 %s357_s26, 4  ;;  %p7139_p0 = scmp.lt.s32.totalorder %s4575_s14, 4  ;;  %s4993_s12 = int_to_ptr.vmem [resolvable:$true] %s371_s12 }
  0xc5   : > { %p4999_p7 = pnand %p7139_p0, %p4973_p10 }
  0xc7   : > { %s4991_s0 = scalar_lea.hbm %s7138_s7, %s3889_s21  ;;  %p4389_p9 = pneg %p4999_p7 }
  0xc8   : > { %s4387_s20 = scalar_lea.hbm %s4991_s0, 512  ;;  %s4392_s6 = scalar_lea.hbm %s7138_s7, 8192 }
  0xc9   : > { %p4388_p13 = scmp.ne.s32.totalorder %s4991_s0, %s4387_s20  ;;  %p4393_p8 = scmp.lt.u32.totalorder %s4991_s0, %s7138_s7 }
  0xca   : > { %p4394_p5 = scmp.lt.u32.totalorder %s4392_s6, %s4387_s20  ;;  %p4396_p10 = scmp.lt.u32.totalorder %s4387_s20, %s4991_s0 }
  0xcb   : > { %p4390_p1 = pnand %p4389_p9, %p4388_p13 }
  0xcc   : > { %p4395_p6 = por %p4394_p5, %p4393_p8 }
  0xcd   : > { %p4391_p4 = pneg %p4390_p1 }
  0xce   : > { %p4397_p12 = por %p4396_p10, %p4395_p6 }
  0xd0   : > { %p4398_p2 = pnand %p4397_p12, %p4391_p4 }
  0xd2   : > { %4401 = shalt.err (!%p4398_p2)
}
  0xd3   : > { %s4402_s5 = scalar_lea.vmem %s4993_s12, 512  ;;  %s4583_s21 = smov [#allocation11]  }
  0xd4   : > { %p4403_p0 = scmp.ne.s32.totalorder %s4993_s12, %s4402_s5  ;;  %s4407_s4 = sshll.u32 %s4583_s21, 4  ;;  %s4408_s4 = int_to_ptr.vmem [resolvable:$false] %s4407_s4 }
  0xd5   : > { %s4409_s18 = scalar_lea.vmem %s4408_s4, 1024  ;;  %p4410_p11 = scmp.lt.s32.totalorder %s4993_s12, %s4408_s4 }
  0xd6   : > { %p4405_p13 = pnand %p4403_p0, %p4389_p9  ;;  %p4411_p8 = scmp.lt.s32.totalorder %s4409_s18, %s4402_s5 }
  0xd8   : > { %p4406_p1 = pneg %p4405_p13  ;;  %p4412_p5 = por %p4411_p8, %p4410_p11 }
  0xda   : > { %p4413_p6 = pnand %p4412_p5, %p4406_p1 }
  0xdc   : > { %4416 = shalt.err (!%p4413_p6)
}
  0xdd   : > { %4064 = dma.hbm_to_vmem [thread:$0]  (!%p4999_p7), %s4991_s0, 512, %s4993_s12, %s4818_s24, %s7113_s10, %s7113_s10, %s7112_s25  }
  0xde   : > { %s7141_s26 = sld [smem:[#allocation29_spill]] }
  0xe4   : > { %p7142_p9 = scmp.ne.s32.totalorder %s7141_s26, 0 }
  0xe6   : > { %383 = sbr.rel (%p7142_p9) target bundleno = 1419 (0x58b), region = 48 }
  0xed   : > { %s5035_s20 = sand.u32 1, %s4551_s8  }
  0xee   : > { %s3891_s13 = sshll.u32 %s5035_s20, 7  ;;  %s386_s19 = scalar_lea.sflag [#allocation7], %s5035_s20 }
  0xef   : > { %s5041_s3 = scalar_lea.vmem [#allocation6], %s3891_s13 }
  0xf0   : > { %4502 = dma.done.wait (%p4902_p3), %s386_s19, 2048  }
  0xf1   : > { %4504 = vsyncadd (%p4902_p3), %s386_s19, 4294965248  ;;  %s7143_s0 = sld [smem:[#allocation24_spill]]  ;;  %s7144_s12 = sld [smem:[#allocation33_spill]] }
  0xf2   : > { %s394_s24 = sand.u32 1, %s4704_s15  }
  0xf3   : > { %s395_s6 = scalar_lea.sflag [#allocation10], %s394_s24 }
  0xf7   : > { %s396_s25 = sand.u32 1, %s7143_s0   ;;  %p7145_p11 = scmp.ne.s32.totalorder %s7144_s12, 0 }
  0xf8   : > { %s3892_s10 = sshll.u32 %s396_s25, 5 }
  0xf9   : > { %s5049_s1 = scalar_lea.vmem [#allocation9], %s3892_s10 }
  0xfa   : > { %4506 = dma.done.wait (%p7145_p11), %s395_s6, 512  }
  0xfb   : > { %4508 = vsyncadd (%p7145_p11), %s395_s6, 4294966784  ;;  %s7146_s16 = sld [smem:[#allocation22_spill]]  ;;  %p7147_p3 = scmp.ne.s32.totalorder %s7137_s11, 0 }
 0x101   : > { %s405_s5 = sand.u32 1, %s7146_s16  }
 0x102   : > { %s3893_s21 = sshll.u32 %s405_s5, 5 }
 0x103   : > { %s5056_s28 = scalar_lea.vmem [#allocation11], %s3893_s21 }
 0x104   : > { %4510 = dma.done.wait (%p7147_p3), %s395_s6, 512  }
 0x105   : > { %4512 = vsyncadd (%p7147_p3), %s395_s6, 4294966784  ;;  %p7148_p7 = scmp.eq.s32.totalorder %s4704_s15, 0 }
 0x107   : > { %4514 = dma.done.wait (%p7148_p7), [#allocation13], 6144   ;;  %p7149_p4 = pmov %p7148_p7 }
 0x108   : > { %v469_v0 = vld [vmem:[%s5041_s3] sm:$0xff]  ;;  %v470_v1 = vld [vmem:[%s5041_s3 + $0x8] sm:$0xff]  ;;  %vm494_vm0 = vcmask 523264   ;;  %v471_v2 = vld [vmem:[%s5041_s3 + $0x10] sm:$0xff]  ;;  %s5092_s15 = scalar_lea.vmem [#allocation15], %s3891_s13  ;;  %s7150_s11 = sld [smem:[#allocation25_spill]] }
 0x109   : > { %4516 = vsyncadd (%p7149_p4), [#allocation13], 4294961152  ;;  %v485_v3 = vpack.c.bf16 %v470_v1, %v469_v0  ;;  %v472_v4 = vld [vmem:[%s5041_s3 + $0x18] sm:$0xff]  ;;  %v473_v5 = vld [vmem:[%s5041_s3 + $0x20] sm:$0xff] }
 0x10a   : > { %v474_v6 = vld [vmem:[%s5041_s3 + $0x28] sm:$0xff]  ;;  %v486_v7 = vpack.c.bf16 %v472_v4, %v471_v2  ;;  %v475_v9 = vld [vmem:[%s5041_s3 + $0x30] sm:$0xff]  ;;  %v476_v10 = vld [vmem:[%s5041_s3 + $0x38] sm:$0xff] }
 0x10b   : > { %v487_v8 = vpack.c.bf16 %v474_v6, %v473_v5  ;;  %v477_v11 = vld [vmem:[%s5041_s3 + $0x40] sm:$0xff]  ;;  %495 = vst.msk [vmem:[#allocation2 + $0x10] sm:$0xff] %vm494_vm0, %v485_v3  ;;  %v488_v12 = vpack.c.bf16 %v476_v10, %v475_v9  ;;  %v478_v13 = vld [vmem:[%s5041_s3 + $0x48] sm:$0xff]  ;;  %v479_v14 = vld [vmem:[%s5041_s3 + $0x50] sm:$0xff] }
 0x10c   : > { %v480_v15 = vld [vmem:[%s5041_s3 + $0x58] sm:$0xff]  ;;  %496 = vst.msk [vmem:[#allocation2 + $0x18] sm:$0xff] %vm494_vm0, %v486_v7  ;;  %v489_v16 = vpack.c.bf16 %v478_v13, %v477_v11  ;;  %v481_v18 = vld [vmem:[%s5041_s3 + $0x60] sm:$0xff]  ;;  %v482_v19 = vld [vmem:[%s5041_s3 + $0x68] sm:$0xff] }
 0x10d   : > { %497 = vst.msk [vmem:[#allocation2 + $0x20] sm:$0xff] %vm494_vm0, %v487_v8  ;;  %v490_v17 = vpack.c.bf16 %v480_v15, %v479_v14  ;;  %v483_v20 = vld [vmem:[%s5041_s3 + $0x70] sm:$0xff]  ;;  %498 = vst.msk [vmem:[#allocation2 + $0x28] sm:$0xff] %vm494_vm0, %v488_v12  ;;  %v491_v21 = vpack.c.bf16 %v482_v19, %v481_v18  ;;  %v484_v22 = vld [vmem:[%s5041_s3 + $0x78] sm:$0xff] }
 0x10e   : > { %499 = vst.msk [vmem:[#allocation2 + $0x30] sm:$0xff] %vm494_vm0, %v489_v16  ;;  %v492_v23 = vpack.c.bf16 %v484_v22, %v483_v20  ;;  %p3897_p10 = scmp.le.s32.totalorder %s7150_s11, 0 }
 0x10f   : > { %500 = vst.msk [vmem:[#allocation2 + $0x38] sm:$0xff] %vm494_vm0, %v490_v17  ;;  %501 = vst.msk [vmem:[#allocation2 + $0x40] sm:$0xff] %vm494_vm0, %v491_v21  ;;  %v507_v24 = vld [vmem:[%s5049_s1] sm:$0xff] (!%p3897_p10)  ;;  %v508_v25 = vld [vmem:[%s5049_s1 + $0x8] sm:$0xff] (!%p3897_p10) }
 0x110   : > { %502 = vst.msk [vmem:[#allocation2 + $0x48] sm:$0xff] %vm494_vm0, %v492_v23  ;;  %506 = sbr.rel (%p3897_p10) target bundleno = 279 (0x117), region = 72  ;;  %v509_v26 = vld [vmem:[%s5049_s1 + $0x10] sm:$0xff] (!%p3897_p10)  ;;  %v511_v27 = vpack.c.bf16 (!%p3897_p10), %v508_v25, %v507_v24  ;;  %v510_v28 = vld [vmem:[%s5049_s1 + $0x18] sm:$0xff] (!%p3897_p10) }
 0x111   : > { %v512_v29 = vpack.c.bf16 (!%p3897_p10), %v510_v28, %v509_v26 }
 0x112   : > { %513 = vst.msk [vmem:[#allocation2] sm:$0xff] (!%p3897_p10), %vm494_vm0, %v511_v27 }
 0x113   : > { %514 = vst.msk [vmem:[#allocation2 + $0x8] sm:$0xff] (!%p3897_p10), %vm494_vm0, %v512_v29 }
 0x117 PF: > { %s7151_s4 = sld [smem:[#allocation25_spill]] }
 0x11d   : > { %p3898_p12 = scmp.ne.s32.totalorder %s7151_s4, 0 }
 0x11e   : > { %v4584_v30 = vmov (!%p3898_p12), 0  }
 0x11f   : > { %518 = sbr.rel (%p3898_p12) target bundleno = 294 (0x126), region = 76  ;;  %519 = vst.msk [vmem:[#allocation2] sm:$0xff] (!%p3898_p12), %vm494_vm0, %v4584_v30  ;;  %520 = vst.msk [vmem:[#allocation2 + $0x8] sm:$0xff] (!%p3898_p12), %vm494_vm0, %v4584_v30 }
 0x126 PF: > { %s7152_s18 = sld [smem:[#allocation25_spill]] }
 0x12c   : > { %p3899_p2 = scmp.ge.s32.totalorder %s7152_s18, 1 }
 0x12d   : > { %v525_v31 = vld [vmem:[%s5056_s28] sm:$0xff] (!%p3899_p2)  ;;  %v526_v32 = vld [vmem:[%s5056_s28 + $0x8] sm:$0xff] (!%p3899_p2)  ;;  %v527_v33 = vld [vmem:[%s5056_s28 + $0x10] sm:$0xff] (!%p3899_p2) }
 0x12e   : > { %524 = sbr.rel (%p3899_p2) target bundleno = 309 (0x135), region = 80  ;;  %v529_v34 = vpack.c.bf16 (!%p3899_p2), %v526_v32, %v525_v31  ;;  %v528_v35 = vld [vmem:[%s5056_s28 + $0x18] sm:$0xff] (!%p3899_p2) }
 0x12f   : > { %v530_v36 = vpack.c.bf16 (!%p3899_p2), %v528_v35, %v527_v33 }
 0x130   : > { %532 = vst.msk [vmem:[#allocation2 + $0x50] sm:$0xff] (!%p3899_p2), %vm494_vm0, %v529_v34 }
 0x131   : > { %533 = vst.msk [vmem:[#allocation2 + $0x58] sm:$0xff] (!%p3899_p2), %vm494_vm0, %v530_v36 }
 0x135 PF: > { %s7153_s26 = sld [smem:[#allocation25_spill]] }
 0x13b   : > { %p3900_p0 = scmp.ne.s32.totalorder %s7153_s26, 1 }
 0x13c   : > { %v4585_v37 = vmov (!%p3900_p0), 0  }
 0x13d   : > { %537 = sbr.rel (%p3900_p0) target bundleno = 324 (0x144), region = 84  ;;  %539 = vst.msk [vmem:[#allocation2 + $0x50] sm:$0xff] (!%p3900_p0), %vm494_vm0, %v4585_v37  ;;  %540 = vst.msk [vmem:[#allocation2 + $0x58] sm:$0xff] (!%p3900_p0), %vm494_vm0, %v4585_v37 }
 0x144 PF: > { %v4199_v38 = vld [vmem:[#allocation12 + $0x4] ss:$8 sps:$4 sm:$0xff]   ;;  %v4201_v39 = vld [vmem:[#allocation12] ss:$8 sps:$4 sm:$0xff]   ;;  %v6957_v40 = vmov 0   ;;  %v541_v56 = vld [vmem:[#allocation2] sm:$0xff] }
 0x145   : > { %661 = vmatprep.mubr.bf16.mxu0 %v6957_v40  ;;  %1176 = vmatprep.mubr.bf16.mxu1 %v6957_v40  ;;  %v4202_v41 = vld [vmem:[#allocation12 + $0x44] ss:$8 sps:$4 sm:$0xff]   ;;  %v4204_v42 = vld [vmem:[#allocation12 + $0x40] ss:$8 sps:$4 sm:$0xff]   ;;  %v4205_v43 = vld [vmem:[#allocation12 + $0x14] ss:$8 sps:$4 sm:$0xff]  }
 0x146   : > { %629 = vmatprep.subr.bf16.mxu0 %v4199_v38  ;;  %v4207_v44 = vld [vmem:[#allocation12 + $0x10] ss:$8 sps:$4 sm:$0xff]   ;;  %1144 = vmatprep.subr.bf16.mxu1 %v4202_v41  ;;  %v4208_v45 = vld [vmem:[#allocation12 + $0x54] ss:$8 sps:$4 sm:$0xff]   ;;  %v4211_v47 = vld [vmem:[#allocation12 + $0x24] ss:$8 sps:$4 sm:$0xff]  }
 0x147   : > { %630 = vmatpush1.bf16.msra.mxu0 %v4201_v39  ;;  %1145 = vmatpush1.bf16.msra.mxu1 %v4204_v42  ;;  %v4210_v46 = vld [vmem:[#allocation12 + $0x50] ss:$8 sps:$4 sm:$0xff]   ;;  %v4213_v48 = vld [vmem:[#allocation12 + $0x20] ss:$8 sps:$4 sm:$0xff]   ;;  %v4214_v49 = vld [vmem:[#allocation12 + $0x64] ss:$8 sps:$4 sm:$0xff]  }
 0x148   : > { %631 = vmatprep.subr.bf16.mxu0 %v4205_v43  ;;  %1146 = vmatprep.subr.bf16.mxu1 %v4208_v45  ;;  %v4217_v50 = vld [vmem:[#allocation12 + $0x34] ss:$8 sps:$4 sm:$0xff]   ;;  %v4216_v51 = vld [vmem:[#allocation12 + $0x60] ss:$8 sps:$4 sm:$0xff]   ;;  %v4219_v53 = vld [vmem:[#allocation12 + $0x30] ss:$8 sps:$4 sm:$0xff]  }
 0x149   : > { %v4220_v52 = vld [vmem:[#allocation12 + $0x74] ss:$8 sps:$4 sm:$0xff]   ;;  %v4225_v54 = vld [vmem:[#allocation12 + $0x84] ss:$8 sps:$4 sm:$0xff]   ;;  %v4222_v55 = vld [vmem:[#allocation12 + $0x70] ss:$8 sps:$4 sm:$0xff]  }
 0x14a   : > { %v4223_v57 = vld [vmem:[#allocation12 + $0x80] ss:$8 sps:$4 sm:$0xff]   ;;  %v4228_v58 = vld [vmem:[#allocation12 + $0x94] ss:$8 sps:$4 sm:$0xff]   ;;  %v4226_v60 = vld [vmem:[#allocation12 + $0x90] ss:$8 sps:$4 sm:$0xff]  }
 0x14b   : > { %632 = vmatpush1.bf16.msra.mxu0 %v4207_v44  ;;  %1147 = vmatpush1.bf16.msra.mxu1 %v4210_v46  ;;  %v1055_v59 = vld [vmem:[#allocation2 + $0x8] sm:$0xff]  ;;  %v4231_v61 = vld [vmem:[#allocation12 + $0xa4] ss:$8 sps:$4 sm:$0xff]   ;;  %v4229_v62 = vld [vmem:[#allocation12 + $0xa0] ss:$8 sps:$4 sm:$0xff]   ;;  %s4587_s13 = smov 64  }
 0x14c   : > { %633 = vmatprep.subr.bf16.mxu0 %v4211_v47  ;;  %1148 = vmatprep.subr.bf16.mxu1 %v4214_v49  ;;  %v4234_v63 = vld [vmem:[#allocation12 + $0xb4] ss:$8 sps:$4 sm:$0xff]   ;;  %v1056_v0 = vld [vmem:[#allocation2 + $0x10] sm:$0xff]  ;;  %v4232_v1 = vld [vmem:[#allocation12 + $0xb0] ss:$8 sps:$4 sm:$0xff]   ;;  %vm963_vm1 = vcmask 1046528  }
 0x14d   : > { %v1057_v2 = vld [vmem:[#allocation2 + $0x18] sm:$0xff]  ;;  %v1058_v3 = vld [vmem:[#allocation2 + $0x20] sm:$0xff]  ;;  %v1059_v4 = vld [vmem:[#allocation2 + $0x28] sm:$0xff]  ;;  %vm903_vm2 = vcmask 522240   ;;  %s7286_s12 = sld [smem:[#allocation102_spill]] }
 0x14e   : > { %v547_v5 = vld [vmem:[#allocation2 + $0x30] sm:$0xff]  ;;  %v548_v6 = vld [vmem:[#allocation2 + $0x38] sm:$0xff]  ;;  %v549_v7 = vld [vmem:[#allocation2 + $0x40] sm:$0xff] }
 0x14f   : > { %634 = vmatpush1.bf16.msra.mxu0 %v4213_v48  ;;  %1149 = vmatpush1.bf16.msra.mxu1 %v4216_v51  ;;  %v550_v8 = vld [vmem:[#allocation2 + $0x48] sm:$0xff]  ;;  %v1064_v9 = vld [vmem:[#allocation2 + $0x50] sm:$0xff]  ;;  %v1616_v10 = vld [vmem:[#allocation2 + $0x58] sm:$0xff] }
 0x150   : > { %635 = vmatprep.subr.bf16.mxu0 %v4217_v50  ;;  %1150 = vmatprep.subr.bf16.mxu1 %v4220_v52 }
 0x153   : > { %636 = vmatpush1.bf16.msra.mxu0 %v4219_v53  ;;  %1151 = vmatpush1.bf16.msra.mxu1 %v4222_v55 }
 0x154   : > { %1696 = vmatprep.subr.bf16.mxu0 %v4225_v54 }
 0x156   : > { %3909 = vmatmul.mubr.msk.bf16.vlgmr.msra.gmra.mrb[0].mxu0 %vm494_vm0, %v541_v56  ;;  %3927 = vmatmul.mubr.msk.bf16.vlgmr.msra.gmra.mrb[0].mxu1 %vm494_vm0, %v1055_v59 }
 0x157   : > { %1697 = vmatpush1.bf16.msra.mxu0 %v4223_v57  ;;  %671 = vmatprep.mubr.bf16.mxu0 %v6957_v40 }
 0x158   : > { %1698 = vmatprep.subr.bf16.mxu0 %v4228_v58  ;;  %1186 = vmatprep.mubr.bf16.mxu1 %v6957_v40 }
 0x15b   : > { %1699 = vmatpush1.bf16.msra.mxu0 %v4226_v60 }
 0x15c   : > { %1700 = vmatprep.subr.bf16.mxu0 %v4231_v61 }
 0x15e   : > { %3910 = vmatmul.mubr.msk.bf16.gmra.mrb[4].mxu0 %vm494_vm0, %v1055_v59  ;;  %3928 = vmatmul.mubr.msk.bf16.gmra.mrb[4].mxu1 %vm494_vm0, %v1056_v0 }
 0x15f   : > { %681 = vmatprep.mubr.bf16.mxu0 %v6957_v40  ;;  %1701 = vmatpush1.bf16.msra.mxu0 %v4229_v62 }
 0x160   : > { %1702 = vmatprep.subr.bf16.mxu0 %v4234_v63  ;;  %1196 = vmatprep.mubr.bf16.mxu1 %v6957_v40 }
 0x163   : > { %1703 = vmatpush1.bf16.msra.mxu0 %v4232_v1 }
 0x166   : > { %3911 = vmatmul.mubr.msk.bf16.gmra.mrb[8].mxu0 %vm494_vm0, %v1056_v0  ;;  %3929 = vmatmul.mubr.msk.bf16.gmra.mrb[8].mxu1 %vm494_vm0, %v1057_v2 }
 0x167   : > { %691 = vmatprep.mubr.bf16.mxu0 %v6957_v40  ;;  %1206 = vmatprep.mubr.bf16.mxu1 %v6957_v40 }
 0x16e   : > { %3912 = vmatmul.mubr.msk.bf16.gmra.mrb[12].mxu0 %vm494_vm0, %v1057_v2  ;;  %3930 = vmatmul.mubr.msk.bf16.gmra.mrb[12].mxu1 %vm494_vm0, %v1058_v3 }
 0x16f   : > { %701 = vmatprep.mubr.bf16.mxu0 %v6957_v40  ;;  %1216 = vmatprep.mubr.bf16.mxu1 %v6957_v40 }
 0x176   : > { %3913 = vmatmul.mubr.msk.bf16.gmra.mrb[16].mxu0 %vm494_vm0, %v1058_v3  ;;  %3931 = vmatmul.mubr.msk.bf16.gmra.mrb[16].mxu1 %vm494_vm0, %v1059_v4 }
 0x177   : > { %711 = vmatprep.mubr.bf16.mxu0 %v6957_v40  ;;  %1226 = vmatprep.mubr.bf16.mxu1 %v6957_v40 }
 0x17e   : > { %3914 = vmatmul.mubr.msk.bf16.gmra.mrb[20].mxu0 %vm494_vm0, %v1059_v4  ;;  %3932 = vmatmul.mubr.msk.bf16.gmra.mrb[20].mxu1 %vm494_vm0, %v547_v5 }
 0x17f   : > { %721 = vmatprep.mubr.bf16.mxu0 %v6957_v40  ;;  %1236 = vmatprep.mubr.bf16.mxu1 %v6957_v40 }
 0x186   : > { %3915 = vmatmul.mubr.msk.bf16.gmra.mrb[24].mxu0 %vm494_vm0, %v547_v5  ;;  %3933 = vmatmul.mubr.msk.bf16.gmra.mrb[24].mxu1 %vm494_vm0, %v548_v6 }
 0x187   : > { %731 = vmatprep.mubr.bf16.mxu0 %v6957_v40  ;;  %1246 = vmatprep.mubr.bf16.mxu1 %v6957_v40 }
 0x18e   : > { %3916 = vmatmul.mubr.msk.bf16.gmra.mrb[28].mxu0 %vm494_vm0, %v548_v6  ;;  %3934 = vmatmul.mubr.msk.bf16.gmra.mrb[28].mxu1 %vm494_vm0, %v549_v7 }
 0x18f   : > { %741 = vmatprep.mubr.bf16.mxu0 %v6957_v40  ;;  %1256 = vmatprep.mubr.bf16.mxu1 %v6957_v40 }
 0x196   : > { %3917 = vmatmul.mubr.msk.bf16.gmra.mrb[32].mxu0 %vm494_vm0, %v549_v7  ;;  %3935 = vmatmul.mubr.msk.bf16.gmra.mrb[32].mxu1 %vm494_vm0, %v550_v8 }
 0x197   : > { %751 = vmatprep.mubr.bf16.mxu0 %v6957_v40  ;;  %1266 = vmatprep.mubr.bf16.mxu1 %v6957_v40 }
 0x19e   : > { %3918 = vmatmul.mubr.msk.bf16.gmra.mrb[36].mxu0 %vm494_vm0, %v550_v8  ;;  %3936 = vmatmul.mubr.msk.bf16.gmra.mrb[36].mxu1 %vm494_vm0, %v1064_v9 }
 0x19f   : > { %1728 = vmatprep.mubr.bf16.mxu0 %v6957_v40 }
 0x1a6   : > { %3945 = vmatmul.mubr.msk.bf16.vlgmr.msra.gmra.mrb[40].mxu0 %vm494_vm0, %v1056_v0 }
 0x1a7   : > { %1738 = vmatprep.mubr.bf16.mxu0 %v6957_v40 }
 0x1ae   : > { %3946 = vmatmul.mubr.msk.bf16.gmra.mrb[44].mxu0 %vm494_vm0, %v1057_v2 }
 0x1af   : > { %1748 = vmatprep.mubr.bf16.mxu0 %v6957_v40 }
 0x1b6   : > { %3947 = vmatmul.mubr.msk.bf16.gmra.mrb[48].mxu0 %vm494_vm0, %v1058_v3 }
 0x1b7   : > { %1758 = vmatprep.mubr.bf16.mxu0 %v6957_v40 }
 0x1be   : > { %3948 = vmatmul.mubr.msk.bf16.gmra.mrb[52].mxu0 %vm494_vm0, %v1059_v4 }
 0x1bf   : > { %1768 = vmatprep.mubr.bf16.mxu0 %v6957_v40 }
 0x1c6   : > { %3949 = vmatmul.mubr.msk.bf16.gmra.mrb[56].mxu0 %vm494_vm0, %v547_v5 }
 0x1c7   : > { %1778 = vmatprep.mubr.bf16.mxu0 %v6957_v40 }
 0x1ce   : > { %3950 = vmatmul.mubr.msk.bf16.gmra.mrb[60].mxu0 %vm494_vm0, %v548_v6 }
 0x1cf   : > { %1788 = vmatprep.mubr.bf16.mxu0 %v6957_v40 }
 0x1d6   : > { %3951 = vmatmul.mubr.msk.bf16.gmra.mrb[64].mxu0 %vm494_vm0, %v549_v7 }
 0x1d7   : > { %1798 = vmatprep.mubr.bf16.mxu0 %v6957_v40 }
 0x1de   : > { %3952 = vmatmul.mubr.msk.bf16.gmra.mrb[68].mxu0 %vm494_vm0, %v550_v8 }
 0x1df   : > { %1808 = vmatprep.mubr.bf16.mxu0 %v6957_v40 }
 0x1e6   : > { %3953 = vmatmul.mubr.msk.bf16.gmra.mrb[72].mxu0 %vm494_vm0, %v1064_v9 }
 0x1e7   : > { %1818 = vmatprep.mubr.bf16.mxu0 %v6957_v40 }
 0x1ee   : > { %3954 = vmatmul.mubr.msk.bf16.gmra.mrb[76].mxu0 %vm494_vm0, %v1616_v10 }
 0x229   : > { %v5178_v11 = vpop.f32.mrb[0].mxu0  ;;  %v5184_v14 = vpop.f32.mrb[0].mxu1 }
 0x22a   : > { %782 = vrot.lane.b32.xlu0 %v5178_v11, %s4587_s13  ;;  %v665_v12 = vpop.f32.mrb[1].mxu0  ;;  %v1180_v16 = vpop.f32.mrb[1].mxu1 }
 0x22b   : > { %v5182_v13 = vpop.f32.mrb[2].mxu0  ;;  %v964_v17 = vrot.slane %v665_v12, 1  ;;  %v1517_v19 = vrot.slane %v1180_v16, 1  ;;  %v5189_v20 = vpop.f32.mrb[2].mxu1 }
 0x22c   : > { %v5186_v15 = vpop.f32.mrb[3].mxu0  ;;  %1319 = vrot.lane.b32.xlu1 %v5189_v20, %s4587_s13  ;;  %v5195_v21 = vpop.f32.mrb[3].mxu1 }
 0x22d   : > { %v6970_v18 = vrot.slane %v5186_v15, 1  ;;  %v6964_v23 = vrot.slane %v5195_v21, 1 }
 0x22e   : > { %1317 = vrot.lane.b32.xlu0 %v5184_v14, %s4587_s13 }
 0x22f   : > { %v5200_v22 = vsel %vm963_vm1, %v964_v17, %v6970_v18  ;;  %v5208_v25 = vsel %vm963_vm1, %v1517_v19, %v6964_v23 }
 0x231   : > { %v5203_v24 = vpop.f32.mrb[4].mxu0  ;;  %v5216_v28 = vpop.f32.mrb[4].mxu1 }
 0x232   : > { %784 = vrot.lane.b32.xlu0 %v5182_v13, %s4587_s13  ;;  %786 = vrot.lane.b32.xlu1 %v5203_v24, %s4587_s13  ;;  %v675_v26 = vpop.f32.mrb[5].mxu0  ;;  %v1190_v30 = vpop.f32.mrb[5].mxu1 }
 0x233   : > { %v5214_v27 = vpop.f32.mrb[6].mxu0  ;;  %v967_v31 = vrot.slane %v675_v26, 1  ;;  %v1520_v33 = vrot.slane %v1190_v30, 1  ;;  %v5221_v34 = vpop.f32.mrb[6].mxu1 }
 0x234   : > { %v5218_v29 = vpop.f32.mrb[7].mxu0  ;;  %v5227_v35 = vpop.f32.mrb[7].mxu1 }
 0x235   : > { %v6969_v32 = vrot.slane %v5218_v29, 1  ;;  %v6963_v37 = vrot.slane %v5227_v35, 1 }
 0x236   : > { %788 = vrot.lane.b32.xlu1 %v5214_v27, %s4587_s13  ;;  %1321 = vrot.lane.b32.xlu0 %v5216_v28, %s4587_s13 }
 0x237   : > { %v5232_v36 = vsel %vm963_vm1, %v967_v31, %v6969_v32  ;;  %v5240_v39 = vsel %vm963_vm1, %v1520_v33, %v6963_v37 }
 0x239   : > { %v5235_v38 = vpop.f32.mrb[8].mxu0  ;;  %v5248_v43 = vpop.f32.mrb[8].mxu1 }
 0x23a   : > { %1323 = vrot.lane.b32.xlu1 %v5221_v34, %s4587_s13  ;;  %v685_v41 = vpop.f32.mrb[9].mxu0  ;;  %790 = vrot.lane.b32.xlu0 %v5235_v38, %s4587_s13  ;;  %v1200_v45 = vpop.f32.mrb[9].mxu1 }
 0x23b   : > { %v5246_v42 = vpop.f32.mrb[10].mxu0  ;;  %v970_v46 = vrot.slane %v685_v41, 1  ;;  %v1523_v48 = vrot.slane %v1200_v45, 1  ;;  %v5253_v49 = vpop.f32.mrb[10].mxu1 }
 0x23c   : > { %v5250_v44 = vpop.f32.mrb[11].mxu0  ;;  %v5259_v50 = vpop.f32.mrb[11].mxu1 }
 0x23d   : > { %v6968_v47 = vrot.slane %v5250_v44, 1  ;;  %v6961_v52 = vrot.slane %v5259_v50, 1 }
 0x23e   : > { %792 = vrot.lane.b32.xlu1 %v5246_v42, %s4587_s13  ;;  %1325 = vrot.lane.b32.xlu0 %v5248_v43, %s4587_s13 }
 0x23f   : > { %v5264_v51 = vsel %vm963_vm1, %v970_v46, %v6968_v47  ;;  %v5272_v54 = vsel %vm963_vm1, %v1523_v48, %v6961_v52 }
 0x241   : > { %v5267_v53 = vpop.f32.mrb[12].mxu0  ;;  %v5280_v57 = vpop.f32.mrb[12].mxu1 }
 0x242   : > { %1327 = vrot.lane.b32.xlu1 %v5253_v49, %s4587_s13  ;;  %v695_v55 = vpop.f32.mrb[13].mxu0  ;;  %794 = vrot.lane.b32.xlu0 %v5267_v53, %s4587_s13  ;;  %v1210_v59 = vpop.f32.mrb[13].mxu1 }
 0x243   : > { %v5278_v56 = vpop.f32.mrb[14].mxu0  ;;  %v973_v60 = vrot.slane %v695_v55, 1  ;;  %v1526_v62 = vrot.slane %v1210_v59, 1  ;;  %v5285_v63 = vpop.f32.mrb[14].mxu1 }
 0x244   : > { %v5282_v58 = vpop.f32.mrb[15].mxu0  ;;  %v5291_v0 = vpop.f32.mrb[15].mxu1 }
 0x245   : > { %v6967_v61 = vrot.slane %v5282_v58, 1  ;;  %7154 = vst [vmem:[#allocation34_spill] sm:$0xff] %v5291_v0  ;;  %v6960_v2 = vrot.slane %v5291_v0, 1 }
 0x246   : > { %796 = vrot.lane.b32.xlu1 %v5278_v56, %s4587_s13  ;;  %1329 = vrot.lane.b32.xlu0 %v5280_v57, %s4587_s13 }
 0x247   : > { %v5296_v1 = vsel %vm963_vm1, %v973_v60, %v6967_v61  ;;  %v5304_v4 = vsel %vm963_vm1, %v1526_v62, %v6960_v2 }
 0x248   : > { %7155 = vst [vmem:[#allocation35_spill] sm:$0xff] %v5304_v4 }
 0x249   : > { %v5299_v3 = vpop.f32.mrb[16].mxu0  ;;  %v5312_v7 = vpop.f32.mrb[16].mxu1 }
 0x24a   : > { %1331 = vrot.lane.b32.xlu1 %v5285_v63, %s4587_s13  ;;  %v705_v5 = vpop.f32.mrb[17].mxu0  ;;  %798 = vrot.lane.b32.xlu0 %v5299_v3, %s4587_s13  ;;  %7156 = vst [vmem:[#allocation36_spill] sm:$0xff] %v5312_v7  ;;  %v1220_v9 = vpop.f32.mrb[17].mxu1 }
 0x24b   : > { %v5310_v6 = vpop.f32.mrb[18].mxu0  ;;  %v976_v10 = vrot.slane %v705_v5, 1  ;;  %v1529_v16 = vrot.slane %v1220_v9, 1  ;;  %v5317_v17 = vpop.f32.mrb[18].mxu1 }
 0x24c   : > { %v5314_v8 = vpop.f32.mrb[19].mxu0  ;;  %7157 = vst [vmem:[#allocation37_spill] sm:$0xff] %v5317_v17  ;;  %v5323_v19 = vpop.f32.mrb[19].mxu1 }
 0x24d   : > { %v6966_v12 = vrot.slane %v5314_v8, 1  ;;  %7158 = vst [vmem:[#allocation38_spill] sm:$0xff] %v5323_v19  ;;  %v6959_v30 = vrot.slane %v5323_v19, 1 }
 0x24e   : > { %800 = vrot.lane.b32.xlu1 %v5310_v6, %s4587_s13  ;;  %1333 = vrot.lane.b32.xlu0 %v5312_v7, %s4587_s13 }
 0x24f   : > { %v5328_v26 = vsel %vm963_vm1, %v976_v10, %v6966_v12  ;;  %v5336_v33 = vsel %vm963_vm1, %v1529_v16, %v6959_v30 }
 0x250   : > { %7159 = vst [vmem:[#allocation39_spill] sm:$0xff] %v5336_v33 }
 0x251   : > { %v5331_v31 = vpop.f32.mrb[20].mxu0  ;;  %v5344_v46 = vpop.f32.mrb[20].mxu1 }
 0x252   : > { %1335 = vrot.lane.b32.xlu1 %v5317_v17, %s4587_s13  ;;  %v715_v41 = vpop.f32.mrb[21].mxu0  ;;  %802 = vrot.lane.b32.xlu0 %v5331_v31, %s4587_s13  ;;  %7160 = vst [vmem:[#allocation40_spill] sm:$0xff] %v5344_v46  ;;  %v1230_v55 = vpop.f32.mrb[21].mxu1 }
 0x253   : > { %v5342_v45 = vpop.f32.mrb[22].mxu0  ;;  %v979_v59 = vrot.slane %v715_v41, 1  ;;  %v1532_v62 = vrot.slane %v1230_v55, 1  ;;  %v5349_v5 = vpop.f32.mrb[22].mxu1 }
 0x254   : > { %v5346_v48 = vpop.f32.mrb[23].mxu0  ;;  %v5353_v9 = vpop.f32.mrb[23].mxu1 }
 0x255   : > { %v6962_v60 = vrot.slane %v5346_v48, 1  ;;  %7161 = vst [vmem:[#allocation41_spill] sm:$0xff] %v5353_v9  ;;  %v6965_v16 = vrot.slane %v5353_v9, 1 }
 0x256   : > { %804 = vrot.lane.b32.xlu1 %v5342_v45, %s4587_s13 }
 0x257   : > { %v5358_v10 = vsel %vm963_vm1, %v979_v59, %v6962_v60  ;;  %v5366_v41 = vsel %vm963_vm1, %v1532_v62, %v6965_v16 }
 0x258   : > { %7162 = vst [vmem:[#allocation42_spill] sm:$0xff] %v5366_v41 }
 0x259   : > { %v5361_v40 = vpop.f32.mrb[24].mxu0  ;;  %v5372_v2 = vpop.f32.mrb[24].mxu1 }
 0x25a   : > { %v725_v55 = vpop.f32.mrb[25].mxu0  ;;  %806 = vrot.lane.b32.xlu0 %v5361_v40, %s4587_s13  ;;  %v1240_v52 = vpop.f32.mrb[25].mxu1 }
 0x25b   : > { %v5370_v30 = vpop.f32.mrb[26].mxu0  ;;  %v982_v60 = vrot.slane %v725_v55, 1  ;;  %v1535_v23 = vrot.slane %v1240_v52, 1  ;;  %v5379_v62 = vpop.f32.mrb[26].mxu1 }
 0x25c   : > { %808 = vrot.lane.b32.xlu1 %v5370_v30, %s4587_s13  ;;  %v5376_v59 = vpop.f32.mrb[27].mxu0  ;;  %v5381_v16 = vpop.f32.mrb[27].mxu1 }
 0x25d   : > { %v6971_v37 = vrot.slane %v5376_v59, 1  ;;  %7163 = vst [vmem:[#allocation43_spill] sm:$0xff] %v5381_v16  ;;  %v6974_v61 = vrot.slane %v5381_v16, 1 }
 0x25f   : > { %v5386_v12 = vsel %vm963_vm1, %v982_v60, %v6971_v37  ;;  %v5394_v55 = vsel %vm963_vm1, %v1535_v23, %v6974_v61 }
 0x260   : > { %7164 = vst [vmem:[#allocation44_spill] sm:$0xff] %v5394_v55 }
 0x261   : > { %v5389_v47 = vpop.f32.mrb[28].mxu0  ;;  %v5400_v18 = vpop.f32.mrb[28].mxu1 }
 0x262   : > { %v735_v32 = vpop.f32.mrb[29].mxu0  ;;  %810 = vrot.lane.b32.xlu0 %v5389_v47, %s4587_s13  ;;  %7165 = vst [vmem:[#allocation45_spill] sm:$0xff] %v5400_v18  ;;  %v1250_v37 = vpop.f32.mrb[29].mxu1 }
 0x263   : > { %v5398_v52 = vpop.f32.mrb[30].mxu0  ;;  %v985_v9 = vrot.slane %v735_v32, 1  ;;  %v1538_v41 = vrot.slane %v1250_v37, 1  ;;  %v5407_v23 = vpop.f32.mrb[30].mxu1 }
 0x264   : > { %812 = vrot.lane.b32.xlu1 %v5398_v52, %s4587_s13  ;;  %v5404_v60 = vpop.f32.mrb[31].mxu0  ;;  %7167 = vst [vmem:[#allocation47_spill] sm:$0xff] %v5407_v23  ;;  %v5409_v61 = vpop.f32.mrb[31].mxu1 }
 0x265   : > { %7166 = vst [vmem:[#allocation46_spill] sm:$0xff] %v5404_v60  ;;  %v6977_v16 = vrot.slane %v5404_v60, 1  ;;  %7168 = vst [vmem:[#allocation48_spill] sm:$0xff] %v5409_v61  ;;  %v6980_v19 = vrot.slane %v5409_v61, 1 }
 0x267   : > { %v5414_v55 = vsel %vm963_vm1, %v985_v9, %v6977_v16  ;;  %v5422_v32 = vsel %vm963_vm1, %v1538_v41, %v6980_v19 }
 0x268   : > { %7169 = vst [vmem:[#allocation49_spill] sm:$0xff] %v5414_v55  ;;  %7171 = vst [vmem:[#allocation51_spill] sm:$0xff] %v5422_v32 }
 0x269   : > { %v5417_v33 = vpop.f32.mrb[32].mxu0  ;;  %v5428_v4 = vpop.f32.mrb[32].mxu1 }
 0x26a   : > { %7170 = vst [vmem:[#allocation50_spill] sm:$0xff] %v5417_v33  ;;  %v745_v0 = vpop.f32.mrb[33].mxu0  ;;  %814 = vrot.lane.b32.xlu0 %v5417_v33, %s4587_s13  ;;  %7173 = vst [vmem:[#allocation53_spill] sm:$0xff] %v5428_v4  ;;  %v1260_v16 = vpop.f32.mrb[33].mxu1 }
 0x26b   : > { %v5426_v37 = vpop.f32.mrb[34].mxu0  ;;  %v988_v55 = vrot.slane %v745_v0, 1  ;;  %v1541_v60 = vrot.slane %v1260_v16, 1  ;;  %v5435_v41 = vpop.f32.mrb[34].mxu1 }
 0x26c   : > { %7172 = vst [vmem:[#allocation52_spill] sm:$0xff] %v5426_v37  ;;  %816 = vrot.lane.b32.xlu1 %v5426_v37, %s4587_s13  ;;  %v5432_v9 = vpop.f32.mrb[35].mxu0  ;;  %7175 = vst [vmem:[#allocation55_spill] sm:$0xff] %v5435_v41  ;;  %v5437_v19 = vpop.f32.mrb[35].mxu1 }
 0x26d   : > { %7174 = vst [vmem:[#allocation54_spill] sm:$0xff] %v5432_v9  ;;  %v6985_v61 = vrot.slane %v5432_v9, 1  ;;  %7176 = vst [vmem:[#allocation56_spill] sm:$0xff] %v5437_v19  ;;  %v6988_v7 = vrot.slane %v5437_v19, 1 }
 0x26f   : > { %v5442_v32 = vsel %vm963_vm1, %v988_v55, %v6985_v61  ;;  %v5450_v0 = vsel %vm963_vm1, %v1541_v60, %v6988_v7 }
 0x270   : > { %7177 = vst [vmem:[#allocation57_spill] sm:$0xff] %v5442_v32  ;;  %7178 = vst [vmem:[#allocation58_spill] sm:$0xff] %v5450_v0 }
 0x271   : > { %v5445_v33 = vpop.f32.mrb[36].mxu0  ;;  %v5456_v17 = vpop.f32.mrb[36].mxu1 }
 0x272   : > { %818 = vrot.lane.b32.xlu0 %v5445_v33, %s4587_s13  ;;  %v755_v16 = vpop.f32.mrb[37].mxu0  ;;  %7180 = vst [vmem:[#allocation60_spill] sm:$0xff] %v5456_v17  ;;  %v1270_v61 = vpop.f32.mrb[37].mxu1 }
 0x273   : > { %v5454_v37 = vpop.f32.mrb[38].mxu0  ;;  %v991_v32 = vrot.slane %v755_v16, 1  ;;  %v1544_v9 = vrot.slane %v1270_v61, 1  ;;  %v5463_v60 = vpop.f32.mrb[38].mxu1 }
 0x274   : > { %7179 = vst [vmem:[#allocation59_spill] sm:$0xff] %v5454_v37  ;;  %820 = vrot.lane.b32.xlu1 %v5454_v37, %s4587_s13  ;;  %v5460_v55 = vpop.f32.mrb[39].mxu0  ;;  %7182 = vst [vmem:[#allocation62_spill] sm:$0xff] %v5463_v60  ;;  %v5467_v7 = vpop.f32.mrb[39].mxu1 }
 0x275   : > { %7181 = vst [vmem:[#allocation61_spill] sm:$0xff] %v5460_v55  ;;  %v6992_v19 = vrot.slane %v5460_v55, 1  ;;  %7183 = vst [vmem:[#allocation63_spill] sm:$0xff] %v5467_v7  ;;  %v6993_v37 = vrot.slane %v5467_v7, 1 }
 0x276   : > { %1337 = vrot.lane.b32.xlu0 %v5344_v46, %s4587_s13 }
 0x277   : > { %v5472_v0 = vsel %vm963_vm1, %v991_v32, %v6992_v19  ;;  %v5482_v61 = vsel %vm963_vm1, %v1544_v9, %v6993_v37 }
 0x278   : > { %7184 = vst [vmem:[#allocation64_spill] sm:$0xff] %v5472_v0  ;;  %1339 = vrot.lane.b32.xlu1 %v5349_v5, %s4587_s13  ;;  %7186 = vst [vmem:[#allocation66_spill] sm:$0xff] %v5482_v61 }
 0x279   : > { %v5477_v16 = vpop.f32.mrb[40].mxu0 }
 0x27a   : > { %7185 = vst [vmem:[#allocation65_spill] sm:$0xff] %v5477_v16  ;;  %1341 = vrot.lane.b32.xlu0 %v5372_v2, %s4587_s13  ;;  %v1732_v46 = vpop.f32.mrb[41].mxu0 }
 0x27b   : > { %v5486_v55 = vpop.f32.mrb[42].mxu0  ;;  %v2069_v19 = vrot.slane %v1732_v46, 1 }
 0x27c   : > { %7187 = vst [vmem:[#allocation67_spill] sm:$0xff] %v5486_v55  ;;  %1343 = vrot.lane.b32.xlu1 %v5379_v62, %s4587_s13  ;;  %v5490_v32 = vpop.f32.mrb[43].mxu0 }
 0x27d   : > { %7188 = vst [vmem:[#allocation68_spill] sm:$0xff] %v5490_v32  ;;  %v6996_v0 = vrot.slane %v5490_v32, 1 }
 0x27e   : > { %1345 = vrot.lane.b32.xlu0 %v5400_v18, %s4587_s13 }
 0x27f   : > { %v5498_v9 = vsel %vm963_vm1, %v2069_v19, %v6996_v0 }
 0x280   : > { %7189 = vst [vmem:[#allocation69_spill] sm:$0xff] %v5498_v9  ;;  %1347 = vrot.lane.b32.xlu1 %v5407_v23, %s4587_s13 }
 0x281   : > { %v5502_v37 = vpop.f32.mrb[44].mxu0 }
 0x282   : > { %7190 = vst [vmem:[#allocation70_spill] sm:$0xff] %v5502_v37  ;;  %1349 = vrot.lane.b32.xlu0 %v5428_v4, %s4587_s13  ;;  %v1742_v7 = vpop.f32.mrb[45].mxu0 }
 0x283   : > { %v5506_v46 = vpop.f32.mrb[46].mxu0  ;;  %v2072_v32 = vrot.slane %v1742_v7, 1 }
 0x284   : > { %7191 = vst [vmem:[#allocation71_spill] sm:$0xff] %v5506_v46  ;;  %1351 = vrot.lane.b32.xlu1 %v5435_v41, %s4587_s13  ;;  %v5510_v61 = vpop.f32.mrb[47].mxu0 }
 0x285   : > { %7192 = vst [vmem:[#allocation72_spill] sm:$0xff] %v5510_v61  ;;  %v7000_v19 = vrot.slane %v5510_v61, 1 }
 0x286   : > { %1353 = vrot.lane.b32.xlu0 %v5456_v17, %s4587_s13 }
 0x287   : > { %v5518_v0 = vsel %vm963_vm1, %v2072_v32, %v7000_v19 }
 0x288   : > { %7193 = vst [vmem:[#allocation73_spill] sm:$0xff] %v5518_v0  ;;  %1355 = vrot.lane.b32.xlu1 %v5463_v60, %s4587_s13 }
 0x289   : > { %v5522_v9 = vpop.f32.mrb[48].mxu0 }
 0x28a   : > { %7194 = vst [vmem:[#allocation74_spill] sm:$0xff] %v5522_v9  ;;  %1869 = vrot.lane.b32.xlu0 %v5477_v16, %s4587_s13  ;;  %v1752_v4 = vpop.f32.mrb[49].mxu0 }
 0x28b   : > { %v5526_v7 = vpop.f32.mrb[50].mxu0  ;;  %v2075_v61 = vrot.slane %v1752_v4, 1 }
 0x28c   : > { %7195 = vst [vmem:[#allocation75_spill] sm:$0xff] %v5526_v7  ;;  %1871 = vrot.lane.b32.xlu1 %v5486_v55, %s4587_s13  ;;  %v5530_v17 = vpop.f32.mrb[51].mxu0 }
 0x28d   : > { %7196 = vst [vmem:[#allocation76_spill] sm:$0xff] %v5530_v17  ;;  %v7004_v32 = vrot.slane %v5530_v17, 1 }
 0x28e   : > { %1873 = vrot.lane.b32.xlu0 %v5502_v37, %s4587_s13 }
 0x28f   : > { %v5538_v19 = vsel %vm963_vm1, %v2075_v61, %v7004_v32 }
 0x290   : > { %7197 = vst [vmem:[#allocation77_spill] sm:$0xff] %v5538_v19  ;;  %1875 = vrot.lane.b32.xlu1 %v5506_v46, %s4587_s13 }
 0x291   : > { %v5542_v0 = vpop.f32.mrb[52].mxu0 }
 0x292   : > { %7198 = vst [vmem:[#allocation78_spill] sm:$0xff] %v5542_v0  ;;  %1877 = vrot.lane.b32.xlu0 %v5522_v9, %s4587_s13  ;;  %v1762_v60 = vpop.f32.mrb[53].mxu0 }
 0x293   : > { %v5546_v4 = vpop.f32.mrb[54].mxu0  ;;  %v2078_v17 = vrot.slane %v1762_v60, 1 }
 0x294   : > { %7199 = vst [vmem:[#allocation79_spill] sm:$0xff] %v5546_v4  ;;  %1879 = vrot.lane.b32.xlu1 %v5526_v7, %s4587_s13  ;;  %v5550_v37 = vpop.f32.mrb[55].mxu0 }
 0x295   : > { %7200 = vst [vmem:[#allocation80_spill] sm:$0xff] %v5550_v37  ;;  %v7009_v61 = vrot.slane %v5550_v37, 1 }
 0x296   : > { %1881 = vrot.lane.b32.xlu0 %v5542_v0, %s4587_s13 }
 0x297   : > { %v5558_v32 = vsel %vm963_vm1, %v2078_v17, %v7009_v61 }
 0x298   : > { %7201 = vst [vmem:[#allocation81_spill] sm:$0xff] %v5558_v32  ;;  %1883 = vrot.lane.b32.xlu1 %v5546_v4, %s4587_s13 }
 0x299   : > { %v5562_v19 = vpop.f32.mrb[56].mxu0 }
 0x29a   : > { %7202 = vst [vmem:[#allocation82_spill] sm:$0xff] %v5562_v19  ;;  %1885 = vrot.lane.b32.xlu0 %v5562_v19, %s4587_s13  ;;  %v1772_v7 = vpop.f32.mrb[57].mxu0 }
 0x29b   : > { %v5566_v60 = vpop.f32.mrb[58].mxu0  ;;  %v2081_v37 = vrot.slane %v1772_v7, 1 }
 0x29c   : > { %7203 = vst [vmem:[#allocation83_spill] sm:$0xff] %v5566_v60  ;;  %v783_v9 = vpop.permute.xlu0 %782  ;;  %1887 = vrot.lane.b32.xlu1 %v5566_v60, %s4587_s13  ;;  %v5570_v0 = vpop.f32.mrb[59].mxu0 }
 0x29d   : > { %7204 = vst [vmem:[#allocation84_spill] sm:$0xff] %v5570_v0  ;;  %842 = vst.msk [vmem:[#allocation4] sm:$0xff] %vm494_vm0, %v783_v9  ;;  %v7014_v17 = vrot.slane %v5570_v0, 1 }
 0x29e   : > { %v5579_v32 = vpop.permute.xlu1 %1319 }
 0x29f   : > { %v5577_v61 = vsel %vm963_vm1, %v2081_v37, %v7014_v17 }
 0x2a0   : > { %7205 = vst [vmem:[#allocation85_spill] sm:$0xff] %v5577_v61  ;;  %v5581_v19 = vpop.permute.xlu0 %1317 }
 0x2a1   : > { %v5583_v4 = vpop.f32.mrb[60].mxu0 }
 0x2a2   : > { %7206 = vst [vmem:[#allocation86_spill] sm:$0xff] %v5583_v4  ;;  %1889 = vrot.lane.b32.xlu0 %v5583_v4, %s4587_s13  ;;  %v1782_v60 = vpop.f32.mrb[61].mxu0 }
 0x2a3   : > { %v5587_v7 = vpop.f32.mrb[62].mxu0  ;;  %v2084_v17 = vrot.slane %v1782_v60, 1 }
 0x2a4   : > { %7207 = vst [vmem:[#allocation87_spill] sm:$0xff] %v5587_v7  ;;  %v785_v9 = vpop.permute.xlu0 %784  ;;  %v787_v46 = vpop.permute.xlu1 %786  ;;  %1891 = vrot.lane.b32.xlu1 %v5587_v7, %s4587_s13 }
 0x2a5   : > { %843 = vst.msk [vmem:[#allocation4 + $0x8] sm:$0xff] %vm494_vm0, %v785_v9  ;;  %844 = vst.msk [vmem:[#allocation4 + $0x10] sm:$0xff] %vm494_vm0, %v787_v46  ;;  %v5593_v37 = vpop.f32.mrb[63].mxu0 }
 0x2a6   : > { %7208 = vst [vmem:[#allocation88_spill] sm:$0xff] %v5593_v37  ;;  %v7021_v0 = vrot.slane %v5593_v37, 1 }
 0x2a8   : > { %v5599_v61 = vsel %vm963_vm1, %v2084_v17, %v7021_v0  ;;  %v789_v4 = vpop.permute.xlu1 %788  ;;  %v5601_v55 = vpop.permute.xlu0 %1321 }
 0x2a9   : > { %7209 = vst [vmem:[#allocation89_spill] sm:$0xff] %v5599_v61  ;;  %845 = vst.msk [vmem:[#allocation4 + $0x18] sm:$0xff] %vm494_vm0, %v789_v4  ;;  %v5604_v7 = vpop.f32.mrb[64].mxu0 }
 0x2aa   : > { %7210 = vst [vmem:[#allocation90_spill] sm:$0xff] %v5604_v7  ;;  %1893 = vrot.lane.b32.xlu0 %v5604_v7, %s4587_s13  ;;  %v1792_v46 = vpop.f32.mrb[65].mxu0 }
 0x2ab   : > { %v5608_v9 = vpop.f32.mrb[66].mxu0  ;;  %v2087_v61 = vrot.slane %v1792_v46, 1 }
 0x2ac   : > { %7211 = vst [vmem:[#allocation91_spill] sm:$0xff] %v5608_v9  ;;  %v862_v60 = vld [vmem:[#allocation4 + $0x1] sm:$0xff]  ;;  %v863_v16 = vld [vmem:[#allocation4 + $0x9] sm:$0x7f]  ;;  %v5610_v37 = vpop.permute.xlu1 %1323  ;;  %1895 = vrot.lane.b32.xlu1 %v5608_v9, %s4587_s13  ;;  %v5614_v17 = vpop.f32.mrb[67].mxu0 }
 0x2ad   : > { %7212 = vst [vmem:[#allocation92_spill] sm:$0xff] %v5614_v17  ;;  %v882_v4 = vadd.f32 %v862_v60, %v5178_v11  ;;  %v883_v0 = vadd.f32 %v863_v16, %v5182_v13  ;;  %v7027_v7 = vrot.slane %v5614_v17, 1  ;;  %v791_v41 = vpop.permute.xlu0 %790 }
 0x2ae   : > { %846 = vst.msk [vmem:[#allocation4 + $0x20] sm:$0xff] %vm494_vm0, %v791_v41 }
 0x2af   : > { %902 = vst.msk [vmem:[#allocation4 + $0x1] sm:$0xff] %vm494_vm0, %v882_v4  ;;  %v5625_v9 = vsel %vm963_vm1, %v2087_v61, %v7027_v7 }
 0x2b0   : > { %904 = vst.msk [vmem:[#allocation4 + $0x9] sm:$0x7f] %vm903_vm2, %v883_v0  ;;  %7213 = vst [vmem:[#allocation93_spill] sm:$0xff] %v5625_v9  ;;  %v864_v18 = vld [vmem:[#allocation4 + $0x11] sm:$0xff]  ;;  %v865_v23 = vld [vmem:[#allocation4 + $0x19] sm:$0x7f]  ;;  %v793_v11 = vpop.permute.xlu1 %792 }
 0x2b1   : > { %v884_v13 = vadd.f32 %v864_v18, %v5203_v24  ;;  %v885_v16 = vadd.f32 %v865_v23, %v5214_v27  ;;  %847 = vst.msk [vmem:[#allocation4 + $0x28] sm:$0xff] %vm494_vm0, %v793_v11  ;;  %v5630_v46 = vpop.permute.xlu0 %1325  ;;  %v5632_v41 = vpop.f32.mrb[68].mxu0 }
 0x2b2   : > { %7214 = vst [vmem:[#allocation94_spill] sm:$0xff] %v5632_v41  ;;  %1897 = vrot.lane.b32.xlu0 %v5632_v41, %s4587_s13  ;;  %v1802_v0 = vpop.f32.mrb[69].mxu0 }
 0x2b3   : > { %905 = vst.msk [vmem:[#allocation4 + $0x11] sm:$0xff] %vm494_vm0, %v884_v13  ;;  %v5638_v61 = vpop.f32.mrb[70].mxu0  ;;  %v2090_v24 = vrot.slane %v1802_v0, 1 }
 0x2b4   : > { %906 = vst.msk [vmem:[#allocation4 + $0x19] sm:$0x7f] %vm903_vm2, %v885_v16  ;;  %7215 = vst [vmem:[#allocation95_spill] sm:$0xff] %v5638_v61  ;;  %v5640_v60 = vpop.permute.xlu1 %1327  ;;  %1899 = vrot.lane.b32.xlu1 %v5638_v61, %s4587_s13  ;;  %v5644_v18 = vpop.f32.mrb[71].mxu0  ;;  %v7216_v16 = vrot.slane %v5186_v15, 1 }
 0x2b5   : > { %v7031_v27 = vrot.slane %v5644_v18, 1  ;;  %v795_v23 = vpop.permute.xlu0 %794 }
 0x2b6   : > { %v923_v4 = vld [vmem:[#allocation4] sm:$0xff]  ;;  %848 = vst.msk [vmem:[#allocation4 + $0x30] sm:$0xff] %vm494_vm0, %v795_v23 }
 0x2b7   : > { %v924_v11 = vld [vmem:[#allocation4 + $0x8] sm:$0x7f]  ;;  %v1014_v13 = vadd.f32 %v5200_v22, %v923_v4  ;;  %v5654_v17 = vsel %vm963_vm1, %v2090_v24, %v7031_v27 }
 0x2b8   : > { %v1015_v7 = vadd.f32 %v7216_v16, %v924_v11  ;;  %v866_v9 = vld [vmem:[#allocation4 + $0x21] sm:$0xff]  ;;  %v867_v61 = vld [vmem:[#allocation4 + $0x29] sm:$0x7f]  ;;  %v797_v0 = vpop.permute.xlu1 %796 }
 0x2b9   : > { %1034 = vst.msk [vmem:[#allocation4] sm:$0xff] %vm494_vm0, %v1014_v13  ;;  %v886_v41 = vadd.f32 %v866_v9, %v5235_v38  ;;  %v887_v23 = vadd.f32 %v867_v61, %v5246_v42  ;;  %849 = vst.msk [vmem:[#allocation4 + $0x38] sm:$0xff] %vm494_vm0, %v797_v0  ;;  %v5661_v15 = vpop.permute.xlu0 %1329  ;;  %v5663_v22 = vpop.f32.mrb[72].mxu0  ;;  %v7217_v13 = vrot.slane %v5218_v29, 1 }
 0x2ba   : > { %1035 = vst.msk [vmem:[#allocation4 + $0x8] sm:$0x7f] %vm903_vm2, %v1015_v7  ;;  %v925_v24 = vld [vmem:[#allocation4 + $0x10] sm:$0xff]  ;;  %1901 = vrot.lane.b32.xlu0 %v5663_v22, %s4587_s13  ;;  %v1812_v11 = vpop.f32.mrb[73].mxu0 }
 0x2bb   : > { %v926_v4 = vld [vmem:[#allocation4 + $0x18] sm:$0x7f]  ;;  %v1016_v7 = vadd.f32 %v5232_v36, %v925_v24  ;;  %907 = vst.msk [vmem:[#allocation4 + $0x21] sm:$0xff] %vm494_vm0, %v886_v41  ;;  %v5672_v38 = vpop.f32.mrb[74].mxu0  ;;  %v2093_v29 = vrot.slane %v1812_v11, 1 }
 0x2bc   : > { %v1017_v16 = vadd.f32 %v7217_v13, %v926_v4  ;;  %908 = vst.msk [vmem:[#allocation4 + $0x29] sm:$0x7f] %vm903_vm2, %v887_v23  ;;  %v5674_v42 = vpop.permute.xlu1 %1331  ;;  %1903 = vrot.lane.b32.xlu1 %v5672_v38, %s4587_s13  ;;  %v5678_v9 = vpop.f32.mrb[75].mxu0 }
 0x2bd   : > { %7218 = vst [vmem:[#allocation96_spill] sm:$0xff] %v5678_v9  ;;  %1036 = vst.msk [vmem:[#allocation4 + $0x10] sm:$0xff] %vm494_vm0, %v1016_v7  ;;  %v7033_v36 = vrot.slane %v5678_v9, 1  ;;  %v799_v61 = vpop.permute.xlu0 %798 }
 0x2be   : > { %1037 = vst.msk [vmem:[#allocation4 + $0x18] sm:$0x7f] %vm903_vm2, %v1017_v16 }
 0x2bf   : > { %850 = vst.msk [vmem:[#allocation4 + $0x40] sm:$0xff] %vm494_vm0, %v799_v61  ;;  %v5687_v41 = vsel %vm963_vm1, %v2093_v29, %v7033_v36 }
 0x2c0   : > { %7219 = vst [vmem:[#allocation97_spill] sm:$0xff] %v5687_v41  ;;  %v868_v23 = vld [vmem:[#allocation4 + $0x31] sm:$0xff]  ;;  %v869_v4 = vld [vmem:[#allocation4 + $0x39] sm:$0x7f]  ;;  %v801_v24 = vpop.permute.xlu1 %800  ;;  %v1277_v27 = vld [vmem:[#allocation4] sm:$0xff] }
 0x2c1   : > { %v1278_v0 = vld [vmem:[#allocation4 + $0x8] sm:$0xff]  ;;  %v888_v16 = vadd.f32 %v868_v23, %v5267_v53  ;;  %v889_v11 = vadd.f32 %v869_v4, %v5278_v56  ;;  %851 = vst.msk [vmem:[#allocation4 + $0x48] sm:$0xff] %vm494_vm0, %v801_v24  ;;  %v5693_v7 = vpop.permute.xlu0 %1333  ;;  %v5695_v61 = vpop.f32.mrb[76].mxu0  ;;  %v1377_v41 = vadd.f32 %v5581_v19, %v1277_v27  ;;  %v7220_v53 = vrot.slane %v5250_v44, 1 }
 0x2c2   : > { %v1378_v13 = vadd.f32 %v5579_v32, %v1278_v0  ;;  %v927_v29 = vld [vmem:[#allocation4 + $0x20] sm:$0xff]  ;;  %1905 = vrot.lane.b32.xlu0 %v5695_v61, %s4587_s13  ;;  %v1822_v36 = vpop.f32.mrb[77].mxu0 }
 0x2c3   : > { %v928_v9 = vld [vmem:[#allocation4 + $0x28] sm:$0x7f]  ;;  %v1018_v32 = vadd.f32 %v5264_v51, %v927_v29  ;;  %909 = vst.msk [vmem:[#allocation4 + $0x31] sm:$0xff] %vm494_vm0, %v888_v16  ;;  %v5706_v0 = vpop.f32.mrb[78].mxu0  ;;  %1397 = vst.msk [vmem:[#allocation4] sm:$0xff] %vm494_vm0, %v1377_v41  ;;  %v2096_v27 = vrot.slane %v1822_v36, 1 }
 0x2c4   : > { %1398 = vst.msk [vmem:[#allocation4 + $0x8] sm:$0xff] %vm494_vm0, %v1378_v13  ;;  %v1019_v56 = vadd.f32 %v7220_v53, %v928_v9  ;;  %v1279_v23 = vld [vmem:[#allocation4 + $0x10] sm:$0xff]  ;;  %v5708_v24 = vpop.permute.xlu1 %1335  ;;  %1907 = vrot.lane.b32.xlu1 %v5706_v0, %s4587_s13  ;;  %v5712_v19 = vpop.f32.mrb[79].mxu0 }
 0x2c5   : > { %910 = vst.msk [vmem:[#allocation4 + $0x39] sm:$0x7f] %vm903_vm2, %v889_v11  ;;  %v1280_v4 = vld [vmem:[#allocation4 + $0x18] sm:$0xff]  ;;  %v1379_v44 = vadd.f32 %v5601_v55, %v1279_v23  ;;  %v2097_v9 = vrot.slane %v5712_v19, 1  ;;  %v803_v13 = vpop.permute.xlu0 %802  ;;  %v7221_v23 = vrot.slane %v5282_v58, 1 }
 0x2c6   : > { %v1380_v51 = vadd.f32 %v5610_v37, %v1280_v4  ;;  %1039 = vst.msk [vmem:[#allocation4 + $0x28] sm:$0x7f] %vm903_vm2, %v1019_v56 }
 0x2c7   : > { %1038 = vst.msk [vmem:[#allocation4 + $0x20] sm:$0xff] %vm494_vm0, %v1018_v32  ;;  %852 = vst.msk [vmem:[#allocation4 + $0x50] sm:$0xff] %vm494_vm0, %v803_v13  ;;  %v5726_v55 = vsel %vm963_vm1, %v2096_v27, %v2097_v9 }
 0x2c8   : > { %1399 = vst.msk [vmem:[#allocation4 + $0x10] sm:$0xff] %vm494_vm0, %v1379_v44  ;;  %1400 = vst.msk [vmem:[#allocation4 + $0x18] sm:$0xff] %vm494_vm0, %v1380_v51  ;;  %v870_v37 = vld [vmem:[#allocation4 + $0x41] sm:$0xff]  ;;  %v871_v41 = vld [vmem:[#allocation4 + $0x49] sm:$0x7f]  ;;  %v805_v16 = vpop.permute.xlu1 %804 }
 0x2c9   : > { %v890_v11 = vadd.f32 %v870_v37, %v5299_v3  ;;  %v891_v36 = vadd.f32 %v871_v41, %v5310_v6  ;;  %853 = vst.msk [vmem:[#allocation4 + $0x58] sm:$0xff] %vm494_vm0, %v805_v16 }
 0x2ca   : > { %v929_v56 = vld [vmem:[#allocation4 + $0x30] sm:$0xff] }
 0x2cb   : > { %v1418_v29 = vld [vmem:[#allocation4 + $0x9] sm:$0x7f]  ;;  %v1020_v44 = vadd.f32 %v5296_v1, %v929_v56  ;;  %911 = vst.msk [vmem:[#allocation4 + $0x41] sm:$0xff] %vm494_vm0, %v890_v11  ;;  %v1417_v51 = vld [vmem:[#allocation4 + $0x1] sm:$0xff] }
 0x2cc   : > { %v930_v53 = vld [vmem:[#allocation4 + $0x38] sm:$0x7f]  ;;  %v1438_v32 = vadd.f32 %v1418_v29, %v5189_v20  ;;  %912 = vst.msk [vmem:[#allocation4 + $0x49] sm:$0x7f] %vm903_vm2, %v891_v36  ;;  %v807_v6 = vpop.permute.xlu0 %806  ;;  %v1437_v13 = vadd.f32 %v1417_v51, %v5184_v14 }
 0x2cd   : > { %v1021_v4 = vadd.f32 %v7221_v23, %v930_v53  ;;  %v1282_v27 = vld [vmem:[#allocation4 + $0x28] sm:$0xff]  ;;  %1040 = vst.msk [vmem:[#allocation4 + $0x30] sm:$0xff] %vm494_vm0, %v1020_v44  ;;  %854 = vst.msk [vmem:[#allocation4 + $0x60] sm:$0xff] %vm494_vm0, %v807_v6  ;;  %v7222_v53 = vrot.slane %v5314_v8, 1 }
 0x2ce   : > { %v1281_v3 = vld [vmem:[#allocation4 + $0x20] sm:$0xff]  ;;  %1458 = vst.msk [vmem:[#allocation4 + $0x9] sm:$0x7f] %vm903_vm2, %v1438_v32  ;;  %v1382_v20 = vadd.f32 %v5640_v60, %v1282_v27  ;;  %v809_v1 = vpop.permute.xlu1 %808 }
 0x2cf   : > { %v1381_v37 = vadd.f32 %v5630_v46, %v1281_v3  ;;  %1041 = vst.msk [vmem:[#allocation4 + $0x38] sm:$0x7f] %vm903_vm2, %v1021_v4  ;;  %v1420_v58 = vld [vmem:[#allocation4 + $0x19] sm:$0x7f]  ;;  %v1419_v41 = vld [vmem:[#allocation4 + $0x11] sm:$0xff] }
 0x2d0   : > { %1457 = vst.msk [vmem:[#allocation4 + $0x1] sm:$0xff] %vm494_vm0, %v1437_v13  ;;  %v1440_v16 = vadd.f32 %v1420_v58, %v5221_v34  ;;  %1402 = vst.msk [vmem:[#allocation4 + $0x28] sm:$0xff] %vm494_vm0, %v1382_v20  ;;  %v1439_v14 = vadd.f32 %v1419_v41, %v5216_v28  ;;  %v872_v46 = vld [vmem:[#allocation4 + $0x51] sm:$0xff]  ;;  %v873_v60 = vld [vmem:[#allocation4 + $0x59] sm:$0x7f]  ;;  %v7223_v13 = vrot.slane %v5195_v21, 1 }
 0x2d1   : > { %1401 = vst.msk [vmem:[#allocation4 + $0x20] sm:$0xff] %vm494_vm0, %v1381_v37  ;;  %855 = vst.msk [vmem:[#allocation4 + $0x68] sm:$0xff] %vm494_vm0, %v809_v1  ;;  %v892_v11 = vadd.f32 %v872_v46, %v5331_v31  ;;  %v893_v36 = vadd.f32 %v873_v60, %v5342_v45 }
 0x2d2   : > { %1460 = vst.msk [vmem:[#allocation4 + $0x19] sm:$0x7f] %vm903_vm2, %v1440_v16  ;;  %v931_v34 = vld [vmem:[#allocation4 + $0x40] sm:$0xff] }
 0x2d3   : > { %1459 = vst.msk [vmem:[#allocation4 + $0x11] sm:$0xff] %vm494_vm0, %v1439_v14  ;;  %v932_v29 = vld [vmem:[#allocation4 + $0x48] sm:$0x7f]  ;;  %v1022_v32 = vadd.f32 %v5328_v26, %v931_v34  ;;  %913 = vst.msk [vmem:[#allocation4 + $0x51] sm:$0xff] %vm494_vm0, %v892_v11  ;;  %v7225_v14 = vrot.slane %v5346_v48, 1 }
 0x2d4   : > { %v1023_v56 = vadd.f32 %v7222_v53, %v932_v29  ;;  %914 = vst.msk [vmem:[#allocation4 + $0x59] sm:$0x7f] %vm903_vm2, %v893_v36  ;;  %v1283_v28 = vld [vmem:[#allocation4 + $0x30] sm:$0xff]  ;;  %v811_v4 = vpop.permute.xlu0 %810 }
 0x2d5   : > { %v1383_v31 = vadd.f32 %v5661_v15, %v1283_v28  ;;  %1042 = vst.msk [vmem:[#allocation4 + $0x40] sm:$0xff] %vm494_vm0, %v1022_v32  ;;  %856 = vst.msk [vmem:[#allocation4 + $0x70] sm:$0xff] %vm494_vm0, %v811_v4  ;;  %v7226_v4 = vrot.slane %v5376_v59, 1 }
 0x2d6   : > { %v1284_v23 = vld [vmem:[#allocation4 + $0x38] sm:$0xff]  ;;  %1043 = vst.msk [vmem:[#allocation4 + $0x48] sm:$0x7f] %vm903_vm2, %v1023_v56  ;;  %v813_v27 = vpop.permute.xlu1 %812 }
 0x2d7   : > { %v1384_v45 = vadd.f32 %v5674_v42, %v1284_v23  ;;  %v1477_v8 = vld [vmem:[#allocation4] sm:$0xff]  ;;  %v1478_v44 = vld [vmem:[#allocation4 + $0x8] sm:$0x7f]  ;;  %1403 = vst.msk [vmem:[#allocation4 + $0x30] sm:$0xff] %vm494_vm0, %v1383_v31  ;;  %857 = vst.msk [vmem:[#allocation4 + $0x78] sm:$0xff] %vm494_vm0, %v813_v27 }
 0x2d8   : > { %v1422_v26 = vld [vmem:[#allocation4 + $0x29] sm:$0x7f]  ;;  %v874_v51 = vld [vmem:[#allocation4 + $0x61] sm:$0xff]  ;;  %v1567_v6 = vadd.f32 %v5208_v25, %v1477_v8  ;;  %v1568_v37 = vadd.f32 %v7223_v13, %v1478_v44  ;;  %v7227_v8 = vrot.slane %v5259_v50, 1 }
 0x2d9   : > { %v875_v3 = vld [vmem:[#allocation4 + $0x69] sm:$0x7f]  ;;  %v1442_v15 = vadd.f32 %v1422_v26, %v5253_v49  ;;  %1404 = vst.msk [vmem:[#allocation4 + $0x38] sm:$0xff] %vm494_vm0, %v1384_v45  ;;  %v894_v42 = vadd.f32 %v874_v51, %v5361_v40  ;;  %v1421_v58 = vld [vmem:[#allocation4 + $0x21] sm:$0xff]  ;;  %v7224_v49 = vrot.slane %v5227_v35, 1  ;;  %v7228_v51 = vld [vmem:[#allocation37_spill] sm:$0xff] }
 0x2da   : > { %v895_v20 = vadd.f32 %v875_v3, %v5370_v30  ;;  %1587 = vst.msk [vmem:[#allocation4] sm:$0xff] %vm494_vm0, %v1567_v6  ;;  %v1479_v25 = vld [vmem:[#allocation4 + $0x10] sm:$0xff]  ;;  %v1480_v21 = vld [vmem:[#allocation4 + $0x18] sm:$0x7f]  ;;  %v1441_v1 = vadd.f32 %v1421_v58, %v5248_v43  ;;  %v7229_v3 = vld [vmem:[#allocation50_spill] sm:$0xff] }
 0x2db   : > { %1588 = vst.msk [vmem:[#allocation4 + $0x8] sm:$0x7f] %vm903_vm2, %v1568_v37  ;;  %1462 = vst.msk [vmem:[#allocation4 + $0x29] sm:$0x7f] %vm903_vm2, %v1442_v15  ;;  %v1569_v40 = vadd.f32 %v5240_v39, %v1479_v25  ;;  %v1570_v30 = vadd.f32 %v7224_v49, %v1480_v21  ;;  %v934_v41 = vld [vmem:[#allocation4 + $0x58] sm:$0x7f] }
 0x2dc   : > { %915 = vst.msk [vmem:[#allocation4 + $0x61] sm:$0xff] %vm494_vm0, %v894_v42  ;;  %v933_v16 = vld [vmem:[#allocation4 + $0x50] sm:$0xff]  ;;  %1461 = vst.msk [vmem:[#allocation4 + $0x21] sm:$0xff] %vm494_vm0, %v1441_v1  ;;  %v1025_v46 = vadd.f32 %v7225_v14, %v934_v41  ;;  %v1285_v60 = vld [vmem:[#allocation4 + $0x40] sm:$0xff]  ;;  %v815_v36 = vpop.permute.xlu0 %814 }
 0x2dd   : > { %916 = vst.msk [vmem:[#allocation4 + $0x69] sm:$0x7f] %vm903_vm2, %v895_v20  ;;  %v1024_v43 = vadd.f32 %v5358_v10, %v933_v16  ;;  %1590 = vst.msk [vmem:[#allocation4 + $0x18] sm:$0x7f] %vm903_vm2, %v1570_v30  ;;  %v1286_v11 = vld [vmem:[#allocation4 + $0x48] sm:$0xff]  ;;  %v1385_v39 = vadd.f32 %v5693_v7, %v1285_v60  ;;  %v7230_v6 = vld [vmem:[#allocation52_spill] sm:$0xff] }
 0x2de   : > { %1589 = vst.msk [vmem:[#allocation4 + $0x10] sm:$0xff] %vm494_vm0, %v1569_v40  ;;  %v1386_v35 = vadd.f32 %v5708_v24, %v1286_v11  ;;  %858 = vst.msk [vmem:[#allocation4 + $0x80] sm:$0xff] %vm494_vm0, %v815_v36  ;;  %v876_v29 = vld [vmem:[#allocation4 + $0x71] sm:$0xff]  ;;  %v877_v10 = vld [vmem:[#allocation4 + $0x79] sm:$0x7f]  ;;  %v817_v34 = vpop.permute.xlu1 %816 }
 0x2df   : > { %1045 = vst.msk [vmem:[#allocation4 + $0x58] sm:$0x7f] %vm903_vm2, %v1025_v46  ;;  %v896_v7 = vadd.f32 %v876_v29, %v5389_v47  ;;  %v897_v24 = vadd.f32 %v877_v10, %v5398_v52  ;;  %v7231_v25 = vld [vmem:[#allocation36_spill] sm:$0xff]  ;;  %v7232_v1 = vld [vmem:[#allocation46_spill] sm:$0xff]  ;;  %v7234_v41 = vld [vmem:[#allocation49_spill] sm:$0xff] }
 0x2e0   : > { %1044 = vst.msk [vmem:[#allocation4 + $0x50] sm:$0xff] %vm494_vm0, %v1024_v43  ;;  %v1424_v48 = vld [vmem:[#allocation4 + $0x39] sm:$0x7f]  ;;  %1405 = vst.msk [vmem:[#allocation4 + $0x40] sm:$0xff] %vm494_vm0, %v1385_v39  ;;  %v1423_v56 = vld [vmem:[#allocation4 + $0x31] sm:$0xff]  ;;  %v7233_v40 = vrot.slane %v7232_v1, 1 }
 0x2e1   : > { %v1444_v53 = vadd.f32 %v1424_v48, %v5285_v63  ;;  %1406 = vst.msk [vmem:[#allocation4 + $0x48] sm:$0xff] %vm494_vm0, %v1386_v35  ;;  %859 = vst.msk [vmem:[#allocation4 + $0x88] sm:$0xff] %vm494_vm0, %v817_v34  ;;  %v1443_v23 = vadd.f32 %v1423_v56, %v5280_v57  ;;  %v7235_v11 = vld [vmem:[#allocation35_spill] sm:$0xff]  ;;  %v7236_v39 = vld [vmem:[#allocation34_spill] sm:$0xff] }
 0x2e2   : > { %917 = vst.msk [vmem:[#allocation4 + $0x71] sm:$0xff] %vm494_vm0, %v896_v7  ;;  %v7237_v35 = vrot.slane %v7236_v39, 1 }
 0x2e3   : > { %v935_v28 = vld [vmem:[#allocation4 + $0x60] sm:$0xff]  ;;  %1464 = vst.msk [vmem:[#allocation4 + $0x39] sm:$0x7f] %vm903_vm2, %v1444_v53  ;;  %918 = vst.msk [vmem:[#allocation4 + $0x79] sm:$0x7f] %vm903_vm2, %v897_v24 }
 0x2e4   : > { %v936_v32 = vld [vmem:[#allocation4 + $0x68] sm:$0x7f]  ;;  %v1026_v47 = vadd.f32 %v5386_v12, %v935_v28  ;;  %v1481_v31 = vld [vmem:[#allocation4 + $0x20] sm:$0xff]  ;;  %1463 = vst.msk [vmem:[#allocation4 + $0x31] sm:$0xff] %vm494_vm0, %v1443_v23  ;;  %v819_v57 = vpop.permute.xlu0 %818 }
 0x2e5   : > { %v1027_v63 = vadd.f32 %v7226_v4, %v936_v32  ;;  %v1482_v52 = vld [vmem:[#allocation4 + $0x28] sm:$0x7f]  ;;  %v1571_v45 = vadd.f32 %v5272_v54, %v1481_v31  ;;  %860 = vst.msk [vmem:[#allocation4 + $0x90] sm:$0xff] %vm494_vm0, %v819_v57  ;;  %v7241_v57 = vld [vmem:[#allocation57_spill] sm:$0xff] }
 0x2e6   : > { %v1572_v44 = vadd.f32 %v7227_v8, %v1482_v52  ;;  %1046 = vst.msk [vmem:[#allocation4 + $0x60] sm:$0xff] %vm494_vm0, %v1026_v47  ;;  %v821_v54 = vpop.permute.xlu1 %820  ;;  %v1288_v43 = vld [vmem:[#allocation4 + $0x58] sm:$0xff]  ;;  %v7238_v23 = vld [vmem:[#allocation59_spill] sm:$0xff] }
 0x2e7   : > { %1047 = vst.msk [vmem:[#allocation4 + $0x68] sm:$0x7f] %vm903_vm2, %v1027_v63  ;;  %v1287_v42 = vld [vmem:[#allocation4 + $0x50] sm:$0xff] }
 0x2e8   : > { %1591 = vst.msk [vmem:[#allocation4 + $0x20] sm:$0xff] %vm494_vm0, %v1571_v45  ;;  %v1426_v12 = vld [vmem:[#allocation4 + $0x49] sm:$0x7f]  ;;  %v878_v59 = vld [vmem:[#allocation4 + $0x81] sm:$0xff]  ;;  %861 = vst.msk [vmem:[#allocation4 + $0x98] sm:$0xff] %vm494_vm0, %v821_v54  ;;  %v1338_v20 = vpop.permute.xlu0 %1337 }
 0x2e9   : > { %1592 = vst.msk [vmem:[#allocation4 + $0x28] sm:$0x7f] %vm903_vm2, %v1572_v44  ;;  %v879_v26 = vld [vmem:[#allocation4 + $0x89] sm:$0x7f]  ;;  %v1446_v50 = vadd.f32 %v1426_v12, %v7228_v51  ;;  %v898_v27 = vadd.f32 %v878_v59, %v7229_v3  ;;  %v1425_v37 = vld [vmem:[#allocation4 + $0x41] sm:$0xff]  ;;  %v937_v58 = vld [vmem:[#allocation4 + $0x70] sm:$0xff]  ;;  %v1387_v30 = vadd.f32 %v1338_v20, %v1287_v42 }
 0x2ea   : > { %v899_v13 = vadd.f32 %v879_v26, %v7230_v6  ;;  %v938_v15 = vld [vmem:[#allocation4 + $0x78] sm:$0x7f]  ;;  %v1445_v21 = vadd.f32 %v1425_v37, %v7231_v25  ;;  %v1028_v16 = vadd.f32 %v7234_v41, %v937_v58  ;;  %v1340_v60 = vpop.permute.xlu1 %1339  ;;  %v7239_v45 = vld [vmem:[#allocation54_spill] sm:$0xff] }
 0x2eb   : > { %1466 = vst.msk [vmem:[#allocation4 + $0x49] sm:$0x7f] %vm903_vm2, %v1446_v50  ;;  %v1029_v49 = vadd.f32 %v7233_v40, %v938_v15  ;;  %v1483_v14 = vld [vmem:[#allocation4 + $0x30] sm:$0xff]  ;;  %v1484_v46 = vld [vmem:[#allocation4 + $0x38] sm:$0x7f]  ;;  %v1388_v29 = vadd.f32 %v1340_v60, %v1288_v43  ;;  %v7240_v8 = vrot.slane %v7239_v45, 1 }
 0x2ec   : > { %919 = vst.msk [vmem:[#allocation4 + $0x81] sm:$0xff] %vm494_vm0, %v898_v27  ;;  %v1573_v36 = vadd.f32 %v7235_v11, %v1483_v14  ;;  %v1574_v48 = vadd.f32 %v7237_v35, %v1484_v46  ;;  %1465 = vst.msk [vmem:[#allocation4 + $0x41] sm:$0xff] %vm494_vm0, %v1445_v21  ;;  %v1342_v34 = vpop.permute.xlu0 %1341  ;;  %v7242_v50 = vld [vmem:[#allocation39_spill] sm:$0xff]  ;;  %v7243_v27 = vld [vmem:[#allocation38_spill] sm:$0xff] }
 0x2ed   : > { %920 = vst.msk [vmem:[#allocation4 + $0x89] sm:$0x7f] %vm903_vm2, %v899_v13  ;;  %1049 = vst.msk [vmem:[#allocation4 + $0x78] sm:$0x7f] %vm903_vm2, %v1029_v49  ;;  %v1289_v10 = vld [vmem:[#allocation4 + $0x60] sm:$0xff]  ;;  %v7244_v6 = vrot.slane %v7243_v27, 1 }
 0x2ee   : > { %1407 = vst.msk [vmem:[#allocation4 + $0x50] sm:$0xff] %vm494_vm0, %v1387_v30  ;;  %1048 = vst.msk [vmem:[#allocation4 + $0x70] sm:$0xff] %vm494_vm0, %v1028_v16  ;;  %v1389_v53 = vadd.f32 %v1342_v34, %v1289_v10  ;;  %v1290_v56 = vld [vmem:[#allocation4 + $0x68] sm:$0xff]  ;;  %v1344_v32 = vpop.permute.xlu1 %1343  ;;  %v7245_v21 = vld [vmem:[#allocation40_spill] sm:$0xff] }
 0x2ef   : > { %1593 = vst.msk [vmem:[#allocation4 + $0x30] sm:$0xff] %vm494_vm0, %v1573_v36  ;;  %1408 = vst.msk [vmem:[#allocation4 + $0x58] sm:$0xff] %vm494_vm0, %v1388_v29  ;;  %v880_v7 = vld [vmem:[#allocation4 + $0x91] sm:$0xff]  ;;  %v881_v24 = vld [vmem:[#allocation4 + $0x99] sm:$0x7f]  ;;  %v1390_v63 = vadd.f32 %v1344_v32, %v1290_v56 }
 0x2f0   : > { %1594 = vst.msk [vmem:[#allocation4 + $0x38] sm:$0x7f] %vm903_vm2, %v1574_v48  ;;  %v900_v28 = vadd.f32 %v880_v7, %v5445_v33  ;;  %v901_v4 = vadd.f32 %v881_v24, %v7238_v23  ;;  %v1346_v31 = vpop.permute.xlu0 %1345  ;;  %v7246_v14 = vld [vmem:[#allocation61_spill] sm:$0xff]  ;;  %v7248_v60 = vld [vmem:[#allocation64_spill] sm:$0xff]  ;;  %v1829_v7 = vld [vmem:[#allocation4] sm:$0xff] }
 0x2f1   : > { %1409 = vst.msk [vmem:[#allocation4 + $0x60] sm:$0xff] %vm494_vm0, %v1389_v53  ;;  %1410 = vst.msk [vmem:[#allocation4 + $0x68] sm:$0xff] %vm494_vm0, %v1390_v63  ;;  %v7247_v46 = vrot.slane %v7246_v14, 1  ;;  %v7249_v56 = vld [vmem:[#allocation47_spill] sm:$0xff]  ;;  %v7251_v45 = vld [vmem:[#allocation42_spill] sm:$0xff] }
 0x2f2   : > { %921 = vst.msk [vmem:[#allocation4 + $0x91] sm:$0xff] %vm494_vm0, %v900_v28  ;;  %v1348_v51 = vpop.permute.xlu1 %1347  ;;  %v7250_v28 = vld [vmem:[#allocation45_spill] sm:$0xff] }
 0x2f3   : > { %v939_v52 = vld [vmem:[#allocation4 + $0x80] sm:$0xff]  ;;  %922 = vst.msk [vmem:[#allocation4 + $0x99] sm:$0x7f] %vm903_vm2, %v901_v4  ;;  %v1486_v59 = vld [vmem:[#allocation4 + $0x48] sm:$0x7f] }
 0x2f4   : > { %v940_v47 = vld [vmem:[#allocation4 + $0x88] sm:$0x7f]  ;;  %v1030_v12 = vadd.f32 %v7241_v57, %v939_v52  ;;  %v1485_v33 = vld [vmem:[#allocation4 + $0x40] sm:$0xff]  ;;  %v1292_v54 = vld [vmem:[#allocation4 + $0x78] sm:$0xff]  ;;  %v1576_v13 = vadd.f32 %v7244_v6, %v1486_v59  ;;  %v1350_v20 = vpop.permute.xlu0 %1349 }
 0x2f5   : > { %v1031_v44 = vadd.f32 %v7240_v8, %v940_v47  ;;  %v1291_v26 = vld [vmem:[#allocation4 + $0x70] sm:$0xff]  ;;  %v1575_v3 = vadd.f32 %v7242_v50, %v1485_v33  ;;  %v1392_v15 = vadd.f32 %v1348_v51, %v1292_v54  ;;  %v1830_v4 = vld [vmem:[#allocation4 + $0x8] sm:$0xff]  ;;  %v1832_v50 = vld [vmem:[#allocation4 + $0x18] sm:$0xff] }
 0x2f6   : > { %v1391_v37 = vadd.f32 %v1346_v31, %v1291_v26  ;;  %1050 = vst.msk [vmem:[#allocation4 + $0x80] sm:$0xff] %vm494_vm0, %v1030_v12  ;;  %v1428_v42 = vld [vmem:[#allocation4 + $0x59] sm:$0x7f]  ;;  %v1427_v58 = vld [vmem:[#allocation4 + $0x51] sm:$0xff]  ;;  %v1352_v40 = vpop.permute.xlu1 %1351 }
 0x2f7   : > { %1051 = vst.msk [vmem:[#allocation4 + $0x88] sm:$0x7f] %vm903_vm2, %v1031_v44  ;;  %1596 = vst.msk [vmem:[#allocation4 + $0x48] sm:$0x7f] %vm903_vm2, %v1576_v13  ;;  %v1448_v25 = vadd.f32 %v1428_v42, %v5349_v5  ;;  %v1447_v1 = vadd.f32 %v1427_v58, %v7245_v21  ;;  %v7252_v44 = vld [vmem:[#allocation41_spill] sm:$0xff]  ;;  %v1831_v33 = vld [vmem:[#allocation4 + $0x10] sm:$0xff] }
 0x2f8   : > { %1595 = vst.msk [vmem:[#allocation4 + $0x40] sm:$0xff] %vm494_vm0, %v1575_v3  ;;  %1411 = vst.msk [vmem:[#allocation4 + $0x70] sm:$0xff] %vm494_vm0, %v1391_v37  ;;  %v1430_v30 = vld [vmem:[#allocation4 + $0x69] sm:$0x7f]  ;;  %v1354_v41 = vpop.permute.xlu0 %1353  ;;  %v1429_v36 = vld [vmem:[#allocation4 + $0x61] sm:$0xff]  ;;  %v7253_v57 = vrot.slane %v7252_v44, 1 }
 0x2f9   : > { %1412 = vst.msk [vmem:[#allocation4 + $0x78] sm:$0xff] %vm494_vm0, %v1392_v15  ;;  %1467 = vst.msk [vmem:[#allocation4 + $0x51] sm:$0xff] %vm494_vm0, %v1447_v1  ;;  %v941_v16 = vld [vmem:[#allocation4 + $0x90] sm:$0xff]  ;;  %v1450_v5 = vadd.f32 %v1430_v30, %v5379_v62  ;;  %v1449_v29 = vadd.f32 %v1429_v36, %v5372_v2  ;;  %v7255_v1 = vld [vmem:[#allocation43_spill] sm:$0xff] }
 0x2fa   : > { %1468 = vst.msk [vmem:[#allocation4 + $0x59] sm:$0x7f] %vm903_vm2, %v1448_v25  ;;  %v942_v49 = vld [vmem:[#allocation4 + $0x98] sm:$0x7f]  ;;  %v1032_v11 = vadd.f32 %v7248_v60, %v941_v16  ;;  %v1356_v48 = vpop.permute.xlu1 %1355  ;;  %v7254_v25 = vld [vmem:[#allocation44_spill] sm:$0xff]  ;;  %v7257_v16 = vld [vmem:[#allocation55_spill] sm:$0xff] }
 0x2fb   : > { %v1033_v43 = vadd.f32 %v7247_v46, %v942_v49  ;;  %1470 = vst.msk [vmem:[#allocation4 + $0x69] sm:$0x7f] %vm903_vm2, %v1450_v5  ;;  %v7258_v46 = vld [vmem:[#allocation53_spill] sm:$0xff]  ;;  %v1834_v5 = vld [vmem:[#allocation4 + $0x28] sm:$0xff] }
 0x2fc   : > { %1052 = vst.msk [vmem:[#allocation4 + $0x90] sm:$0xff] %vm494_vm0, %v1032_v11  ;;  %v1870_v24 = vpop.permute.xlu0 %1869  ;;  %1469 = vst.msk [vmem:[#allocation4 + $0x61] sm:$0xff] %vm494_vm0, %v1449_v29  ;;  %v7260_v29 = vld [vmem:[#allocation48_spill] sm:$0xff] }
 0x2fd   : > { %v1293_v39 = vld [vmem:[#allocation4 + $0x80] sm:$0xff]  ;;  %1053 = vst.msk [vmem:[#allocation4 + $0x98] sm:$0x7f] %vm903_vm2, %v1033_v43  ;;  %v1929_v2 = vadd.f32 %v1870_v24, %v1829_v7  ;;  %v1835_v24 = vld [vmem:[#allocation4 + $0x30] sm:$0xff] }
 0x2fe   : > { %v1294_v35 = vld [vmem:[#allocation4 + $0x88] sm:$0xff]  ;;  %v1393_v10 = vadd.f32 %v1350_v20, %v1293_v39  ;;  %v1872_v63 = vpop.permute.xlu1 %1871  ;;  %v1833_v20 = vld [vmem:[#allocation4 + $0x20] sm:$0xff] }
 0x2ff   : > { %v1394_v34 = vadd.f32 %v1352_v40, %v1294_v35  ;;  %1949 = vst.msk [vmem:[#allocation4] sm:$0xff] %vm494_vm0, %v1929_v2  ;;  %v1930_v52 = vadd.f32 %v1872_v63, %v1830_v4  ;;  %v7256_v40 = vrot.slane %v7255_v1, 1  ;;  %v7259_v35 = vld [vmem:[#allocation51_spill] sm:$0xff]  ;;  %v1836_v4 = vld [vmem:[#allocation4 + $0x38] sm:$0xff] }
 0x300   : > { %v1432_v53 = vld [vmem:[#allocation4 + $0x79] sm:$0x7f]  ;;  %v1431_v62 = vld [vmem:[#allocation4 + $0x71] sm:$0xff]  ;;  %1413 = vst.msk [vmem:[#allocation4 + $0x80] sm:$0xff] %vm494_vm0, %v1393_v10  ;;  %v1874_v59 = vpop.permute.xlu0 %1873  ;;  %v7261_v10 = vrot.slane %v7260_v29, 1  ;;  %v7263_v2 = vld [vmem:[#allocation67_spill] sm:$0xff] }
 0x301   : > { %v1452_v32 = vadd.f32 %v1432_v53, %v7249_v56  ;;  %1414 = vst.msk [vmem:[#allocation4 + $0x88] sm:$0xff] %vm494_vm0, %v1394_v34  ;;  %v1451_v23 = vadd.f32 %v1431_v62, %v7250_v28  ;;  %v1487_v47 = vld [vmem:[#allocation4 + $0x50] sm:$0xff]  ;;  %v1488_v31 = vld [vmem:[#allocation4 + $0x58] sm:$0x7f]  ;;  %1950 = vst.msk [vmem:[#allocation4 + $0x8] sm:$0xff] %vm494_vm0, %v1930_v52  ;;  %v1931_v26 = vadd.f32 %v1874_v59, %v1831_v33 }
 0x302   : > { %v1577_v8 = vadd.f32 %v7251_v45, %v1487_v47  ;;  %v1578_v12 = vadd.f32 %v7253_v57, %v1488_v31  ;;  %v1876_v3 = vpop.permute.xlu1 %1875  ;;  %v7262_v56 = vld [vmem:[#allocation65_spill] sm:$0xff]  ;;  %v1837_v31 = vld [vmem:[#allocation4 + $0x40] sm:$0xff] }
 0x303   : > { %1472 = vst.msk [vmem:[#allocation4 + $0x79] sm:$0x7f] %vm903_vm2, %v1452_v32  ;;  %v1295_v54 = vld [vmem:[#allocation4 + $0x90] sm:$0xff]  ;;  %v1932_v13 = vadd.f32 %v1876_v3, %v1832_v50  ;;  %v1489_v37 = vld [vmem:[#allocation4 + $0x60] sm:$0xff]  ;;  %v1490_v15 = vld [vmem:[#allocation4 + $0x68] sm:$0x7f] }
 0x304   : > { %1471 = vst.msk [vmem:[#allocation4 + $0x71] sm:$0xff] %vm494_vm0, %v1451_v23  ;;  %1597 = vst.msk [vmem:[#allocation4 + $0x50] sm:$0xff] %vm494_vm0, %v1577_v8  ;;  %v1296_v51 = vld [vmem:[#allocation4 + $0x98] sm:$0xff]  ;;  %v1395_v27 = vadd.f32 %v1354_v41, %v1295_v54  ;;  %v1878_v58 = vpop.permute.xlu0 %1877  ;;  %v1579_v21 = vadd.f32 %v7254_v25, %v1489_v37  ;;  %v1580_v49 = vadd.f32 %v7256_v40, %v1490_v15  ;;  %v7264_v57 = vld [vmem:[#allocation62_spill] sm:$0xff] }
 0x305   : > { %1598 = vst.msk [vmem:[#allocation4 + $0x58] sm:$0x7f] %vm903_vm2, %v1578_v12  ;;  %v1396_v6 = vadd.f32 %v1356_v48, %v1296_v51  ;;  %v1933_v41 = vadd.f32 %v1878_v58, %v1833_v20  ;;  %v7265_v33 = vld [vmem:[#allocation70_spill] sm:$0xff]  ;;  %v1838_v3 = vld [vmem:[#allocation4 + $0x48] sm:$0xff]  ;;  %v7267_v37 = vld [vmem:[#allocation60_spill] sm:$0xff] }
 0x306   : > { %1951 = vst.msk [vmem:[#allocation4 + $0x10] sm:$0xff] %vm494_vm0, %v1931_v26  ;;  %1415 = vst.msk [vmem:[#allocation4 + $0x90] sm:$0xff] %vm494_vm0, %v1395_v27  ;;  %v1880_v60 = vpop.permute.xlu1 %1879  ;;  %v7266_v26 = vld [vmem:[#allocation71_spill] sm:$0xff]  ;;  %v7268_v20 = vld [vmem:[#allocation58_spill] sm:$0xff] }
 0x307   : > { %1416 = vst.msk [vmem:[#allocation4 + $0x98] sm:$0xff] %vm494_vm0, %v1396_v6  ;;  %1952 = vst.msk [vmem:[#allocation4 + $0x18] sm:$0xff] %vm494_vm0, %v1932_v13  ;;  %v1934_v39 = vadd.f32 %v1880_v60, %v1834_v5  ;;  %v7269_v25 = vld [vmem:[#allocation56_spill] sm:$0xff]  ;;  %v7273_v5 = vld [vmem:[#allocation69_spill] sm:$0xff] }
 0x308   : > { %v1434_v42 = vld [vmem:[#allocation4 + $0x89] sm:$0x7f]  ;;  %v1433_v30 = vld [vmem:[#allocation4 + $0x81] sm:$0xff]  ;;  %1599 = vst.msk [vmem:[#allocation4 + $0x60] sm:$0xff] %vm494_vm0, %v1579_v21  ;;  %1953 = vst.msk [vmem:[#allocation4 + $0x20] sm:$0xff] %vm494_vm0, %v1933_v41  ;;  %v1882_v62 = vpop.permute.xlu0 %1881  ;;  %v7270_v21 = vrot.slane %v7269_v25, 1 }
 0x309   : > { %v1454_v14 = vadd.f32 %v1434_v42, %v7257_v16  ;;  %v1453_v43 = vadd.f32 %v1433_v30, %v7258_v46  ;;  %1600 = vst.msk [vmem:[#allocation4 + $0x68] sm:$0x7f] %vm903_vm2, %v1580_v49  ;;  %v1969_v53 = vld [vmem:[#allocation4 + $0x1] sm:$0xff]  ;;  %v1970_v7 = vld [vmem:[#allocation4 + $0x9] sm:$0x7f]  ;;  %v1935_v23 = vadd.f32 %v1882_v62, %v1835_v24 }
 0x30a   : > { %v1989_v32 = vadd.f32 %v1969_v53, %v7262_v56  ;;  %v1990_v28 = vadd.f32 %v1970_v7, %v7263_v2  ;;  %1954 = vst.msk [vmem:[#allocation4 + $0x28] sm:$0xff] %vm494_vm0, %v1934_v39  ;;  %v1884_v63 = vpop.permute.xlu1 %1883  ;;  %v7271_v30 = vld [vmem:[#allocation74_spill] sm:$0xff]  ;;  %v7277_v7 = vld [vmem:[#allocation79_spill] sm:$0xff] }
 0x30b   : > { %v1491_v11 = vld [vmem:[#allocation4 + $0x70] sm:$0xff]  ;;  %v1492_v36 = vld [vmem:[#allocation4 + $0x78] sm:$0x7f]  ;;  %1474 = vst.msk [vmem:[#allocation4 + $0x89] sm:$0x7f] %vm903_vm2, %v1454_v14  ;;  %v1936_v47 = vadd.f32 %v1884_v63, %v1836_v4  ;;  %v7272_v14 = vld [vmem:[#allocation75_spill] sm:$0xff] }
 0x30c   : > { %v1581_v48 = vadd.f32 %v7259_v35, %v1491_v11  ;;  %v1582_v34 = vadd.f32 %v7261_v10, %v1492_v36  ;;  %1473 = vst.msk [vmem:[#allocation4 + $0x81] sm:$0xff] %vm494_vm0, %v1453_v43  ;;  %2009 = vst.msk [vmem:[#allocation4 + $0x1] sm:$0xff] %vm494_vm0, %v1989_v32  ;;  %v1886_v44 = vpop.permute.xlu0 %1885  ;;  %v7274_v11 = vld [vmem:[#allocation68_spill] sm:$0xff]  ;;  %v1840_v2 = vld [vmem:[#allocation4 + $0x58] sm:$0xff] }
 0x30d   : > { %2010 = vst.msk [vmem:[#allocation4 + $0x9] sm:$0x7f] %vm903_vm2, %v1990_v28  ;;  %v1937_v51 = vadd.f32 %v1886_v44, %v1837_v31  ;;  %v7275_v36 = vrot.slane %v7274_v11, 1  ;;  %v1839_v29 = vld [vmem:[#allocation4 + $0x50] sm:$0xff]  ;;  %v7290_v11 = vld [vmem:[#allocation81_spill] sm:$0xff] }
 0x30e   : > { %1601 = vst.msk [vmem:[#allocation4 + $0x70] sm:$0xff] %vm494_vm0, %v1581_v48  ;;  %1955 = vst.msk [vmem:[#allocation4 + $0x30] sm:$0xff] %vm494_vm0, %v1935_v23  ;;  %v1436_v52 = vld [vmem:[#allocation4 + $0x99] sm:$0x7f]  ;;  %v1971_v45 = vld [vmem:[#allocation4 + $0x11] sm:$0xff]  ;;  %v1888_v27 = vpop.permute.xlu1 %1887 }
 0x30f   : > { %1602 = vst.msk [vmem:[#allocation4 + $0x78] sm:$0x7f] %vm903_vm2, %v1582_v34  ;;  %v1972_v8 = vld [vmem:[#allocation4 + $0x19] sm:$0x7f]  ;;  %v1456_v12 = vadd.f32 %v1436_v52, %v7264_v57  ;;  %v1991_v59 = vadd.f32 %v1971_v45, %v7265_v33  ;;  %v1435_v50 = vld [vmem:[#allocation4 + $0x91] sm:$0xff]  ;;  %v1938_v42 = vadd.f32 %v1888_v27, %v1838_v3  ;;  %v7276_v34 = vld [vmem:[#allocation78_spill] sm:$0xff] }
 0x310   : > { %v1992_v54 = vadd.f32 %v1972_v8, %v7266_v26  ;;  %1956 = vst.msk [vmem:[#allocation4 + $0x38] sm:$0xff] %vm494_vm0, %v1936_v47  ;;  %v1455_v15 = vadd.f32 %v1435_v50, %v7267_v37  ;;  %1957 = vst.msk [vmem:[#allocation4 + $0x40] sm:$0xff] %vm494_vm0, %v1937_v51  ;;  %v7278_v23 = vld [vmem:[#allocation73_spill] sm:$0xff]  ;;  %v7279_v63 = vld [vmem:[#allocation72_spill] sm:$0xff] }
 0x311   : > { %1476 = vst.msk [vmem:[#allocation4 + $0x99] sm:$0x7f] %vm903_vm2, %v1456_v12  ;;  %v1973_v40 = vld [vmem:[#allocation4 + $0x21] sm:$0xff]  ;;  %v1974_v49 = vld [vmem:[#allocation4 + $0x29] sm:$0x7f]  ;;  %v7280_v47 = vrot.slane %v7279_v63, 1 }
 0x312   : > { %2011 = vst.msk [vmem:[#allocation4 + $0x11] sm:$0xff] %vm494_vm0, %v1991_v59  ;;  %1475 = vst.msk [vmem:[#allocation4 + $0x91] sm:$0xff] %vm494_vm0, %v1455_v15  ;;  %v1993_v16 = vadd.f32 %v1973_v40, %v7271_v30  ;;  %v1994_v41 = vadd.f32 %v1974_v49, %v7272_v14  ;;  %v7281_v12 = vld [vmem:[#allocation66_spill] sm:$0xff]  ;;  %v7282_v59 = vld [vmem:[#allocation63_spill] sm:$0xff] }
 0x313   : > { %v1493_v6 = vld [vmem:[#allocation4 + $0x80] sm:$0xff]  ;;  %v1494_v13 = vld [vmem:[#allocation4 + $0x88] sm:$0x7f]  ;;  %2012 = vst.msk [vmem:[#allocation4 + $0x19] sm:$0x7f] %vm903_vm2, %v1992_v54  ;;  %v7283_v26 = vrot.slane %v7282_v59, 1 }
 0x314   : > { %v1583_v58 = vadd.f32 %v7268_v20, %v1493_v6  ;;  %v1584_v1 = vadd.f32 %v7270_v21, %v1494_v13  ;;  %1958 = vst.msk [vmem:[#allocation4 + $0x48] sm:$0xff] %vm494_vm0, %v1938_v42  ;;  %v2029_v46 = vld [vmem:[#allocation4] sm:$0xff]  ;;  %v2030_v43 = vld [vmem:[#allocation4 + $0x8] sm:$0x7f]  ;;  %2013 = vst.msk [vmem:[#allocation4 + $0x21] sm:$0xff] %vm494_vm0, %v1993_v16  ;;  %v1890_v10 = vpop.permute.xlu0 %1889 }
 0x315   : > { %v2119_v60 = vadd.f32 %v7273_v5, %v2029_v46  ;;  %v2120_v39 = vadd.f32 %v7275_v36, %v2030_v43  ;;  %2014 = vst.msk [vmem:[#allocation4 + $0x29] sm:$0x7f] %vm903_vm2, %v1994_v41  ;;  %v1939_v62 = vadd.f32 %v1890_v10, %v1839_v29  ;;  %v7284_v51 = vld [vmem:[#allocation82_spill] sm:$0xff]  ;;  %v7285_v3 = vld [vmem:[#allocation83_spill] sm:$0xff]  ;;  %v5949_v6 = vld [vmem:[%s7286_s12] ss:$0 sm:$0xff] }
 0x316   : > { %1603 = vst.msk [vmem:[#allocation4 + $0x80] sm:$0xff] %vm494_vm0, %v1583_v58  ;;  %v1892_v28 = vpop.permute.xlu1 %1891  ;;  %v7287_v15 = vld [vmem:[#allocation77_spill] sm:$0xff]  ;;  %v7288_v20 = vld [vmem:[#allocation76_spill] sm:$0xff]  ;;  %v1841_v40 = vld [vmem:[#allocation4 + $0x60] sm:$0xff] }
 0x317   : > { %1604 = vst.msk [vmem:[#allocation4 + $0x88] sm:$0x7f] %vm903_vm2, %v1584_v1  ;;  %v1975_v35 = vld [vmem:[#allocation4 + $0x31] sm:$0xff]  ;;  %v1976_v48 = vld [vmem:[#allocation4 + $0x39] sm:$0x7f]  ;;  %v1940_v52 = vadd.f32 %v1892_v28, %v1840_v2  ;;  %v7289_v58 = vrot.slane %v7288_v20, 1 }
 0x318   : > { %2139 = vst.msk [vmem:[#allocation4] sm:$0xff] %vm494_vm0, %v2119_v60  ;;  %v1995_v53 = vadd.f32 %v1975_v35, %v7276_v34  ;;  %v1996_v24 = vadd.f32 %v1976_v48, %v7277_v7  ;;  %1959 = vst.msk [vmem:[#allocation4 + $0x50] sm:$0xff] %vm494_vm0, %v1939_v62  ;;  %v1842_v29 = vld [vmem:[#allocation4 + $0x68] sm:$0xff]  ;;  %v7293_v2 = vld [vmem:[#allocation86_spill] sm:$0xff] }
 0x319   : > { %2140 = vst.msk [vmem:[#allocation4 + $0x8] sm:$0x7f] %vm903_vm2, %v2120_v39  ;;  %v2031_v56 = vld [vmem:[#allocation4 + $0x10] sm:$0xff]  ;;  %v1496_v8 = vld [vmem:[#allocation4 + $0x98] sm:$0x7f]  ;;  %v7294_v63 = vld [vmem:[#allocation87_spill] sm:$0xff] }
 0x31a   : > { %v2032_v32 = vld [vmem:[#allocation4 + $0x18] sm:$0x7f]  ;;  %v2121_v4 = vadd.f32 %v7278_v23, %v2031_v56  ;;  %2015 = vst.msk [vmem:[#allocation4 + $0x31] sm:$0xff] %vm494_vm0, %v1995_v53  ;;  %v1495_v45 = vld [vmem:[#allocation4 + $0x90] sm:$0xff]  ;;  %v1586_v54 = vadd.f32 %v7283_v26, %v1496_v8  ;;  %1960 = vst.msk [vmem:[#allocation4 + $0x58] sm:$0xff] %vm494_vm0, %v1940_v52 }
 0x31b   : > { %v2122_v31 = vadd.f32 %v7280_v47, %v2032_v32  ;;  %2016 = vst.msk [vmem:[#allocation4 + $0x39] sm:$0x7f] %vm903_vm2, %v1996_v24  ;;  %v1977_v44 = vld [vmem:[#allocation4 + $0x41] sm:$0xff]  ;;  %v1978_v57 = vld [vmem:[#allocation4 + $0x49] sm:$0x7f]  ;;  %v1585_v33 = vadd.f32 %v7281_v12, %v1495_v45  ;;  %v7291_v39 = vld [vmem:[#allocation80_spill] sm:$0xff] }
 0x31c   : > { %2141 = vst.msk [vmem:[#allocation4 + $0x10] sm:$0xff] %vm494_vm0, %v2121_v4  ;;  %v1997_v50 = vadd.f32 %v1977_v44, %v7284_v51  ;;  %v1998_v27 = vadd.f32 %v1978_v57, %v7285_v3  ;;  %v2033_v13 = vld [vmem:[#allocation4 + $0x20] sm:$0xff]  ;;  %v2034_v37 = vld [vmem:[#allocation4 + $0x28] sm:$0x7f]  ;;  %v1894_v49 = vpop.permute.xlu0 %1893  ;;  %v7292_v35 = vrot.slane %v7291_v39, 1  ;;  %v7295_v45 = vld [vmem:[#allocation85_spill] sm:$0xff] }
 0x31d   : > { %2142 = vst.msk [vmem:[#allocation4 + $0x18] sm:$0x7f] %vm903_vm2, %v2122_v31  ;;  %1606 = vst.msk [vmem:[#allocation4 + $0x98] sm:$0x7f] %vm903_vm2, %v1586_v54  ;;  %v2123_v42 = vadd.f32 %v7287_v15, %v2033_v13  ;;  %v2124_v25 = vadd.f32 %v7289_v58, %v2034_v37  ;;  %v1941_v14 = vadd.f32 %v1894_v49, %v1841_v40  ;;  %v7296_v44 = vld [vmem:[#allocation84_spill] sm:$0xff]  ;;  %v1844_v13 = vld [vmem:[#allocation4 + $0x78] sm:$0xff] }
 0x31e   : > { %1605 = vst.msk [vmem:[#allocation4 + $0x90] sm:$0xff] %vm494_vm0, %v1585_v33  ;;  %2017 = vst.msk [vmem:[#allocation4 + $0x41] sm:$0xff] %vm494_vm0, %v1997_v50  ;;  %v1896_v43 = vpop.permute.xlu1 %1895  ;;  %v7297_v57 = vrot.slane %v7296_v44, 1  ;;  %v1843_v26 = vld [vmem:[#allocation4 + $0x70] sm:$0xff]  ;;  %v7304_v44 = vld [vmem:[#allocation95_spill] sm:$0xff] }
 0x31f   : > { %2018 = vst.msk [vmem:[#allocation4 + $0x49] sm:$0x7f] %vm903_vm2, %v1998_v27  ;;  %v2159_v21 = vld [vmem:[#allocation4] sm:$0xff]  ;;  %2144 = vst.msk [vmem:[#allocation4 + $0x28] sm:$0x7f] %vm903_vm2, %v2124_v25  ;;  %v1942_v7 = vadd.f32 %v1896_v43, %v1842_v29  ;;  %v7301_v29 = vld [vmem:[#allocation88_spill] sm:$0xff] }
 0x320   : > { %v2160_v1 = vld [vmem:[#allocation4 + $0x8] sm:$0xff]  ;;  %v2186_v30 = vadd.f32 %v5949_v6, %v2159_v21  ;;  %2143 = vst.msk [vmem:[#allocation4 + $0x20] sm:$0xff] %vm494_vm0, %v2123_v42  ;;  %1961 = vst.msk [vmem:[#allocation4 + $0x60] sm:$0xff] %vm494_vm0, %v1941_v14  ;;  %v7298_v14 = vld [vmem:[#allocation90_spill] sm:$0xff] }
 0x321   : > { %v2187_v16 = vadd.f32 %v5949_v6, %v2160_v1  ;;  %v2035_v41 = vld [vmem:[#allocation4 + $0x30] sm:$0xff]  ;;  %v1980_v32 = vld [vmem:[#allocation4 + $0x59] sm:$0x7f]  ;;  %1962 = vst.msk [vmem:[#allocation4 + $0x68] sm:$0xff] %vm494_vm0, %v1942_v7 }
 0x322   : > { %v2036_v46 = vld [vmem:[#allocation4 + $0x38] sm:$0x7f]  ;;  %v2206_v5 = vmax.f32 %v2186_v30, 0.0  ;;  %v2125_v36 = vadd.f32 %v7290_v11, %v2035_v41  ;;  %v2000_v47 = vadd.f32 %v1980_v32, %v7294_v63 }
 0x323   : > { %v2207_v60 = vmax.f32 %v2187_v16, 0.0  ;;  %v2126_v48 = vadd.f32 %v7292_v35, %v2036_v46  ;;  %v2161_v10 = vld [vmem:[#allocation4 + $0x10] sm:$0xff]  ;;  %v7299_v46 = vld [vmem:[#allocation91_spill] sm:$0xff] }
 0x324   : > { %v2162_v34 = vld [vmem:[#allocation4 + $0x18] sm:$0xff]  ;;  %v2188_v62 = vadd.f32 %v5949_v6, %v2161_v10  ;;  %2145 = vst.msk [vmem:[#allocation4 + $0x30] sm:$0xff] %vm494_vm0, %v2125_v36  ;;  %v1898_v54 = vpop.permute.xlu0 %1897  ;;  %v7302_v10 = vrot.slane %v7301_v29, 1 }
 0x325   : > { %v1979_v53 = vld [vmem:[#allocation4 + $0x51] sm:$0xff]  ;;  %v2226_v24 = vpack.c.bf16 %v2207_v60, %v2206_v5  ;;  %v2189_v56 = vadd.f32 %v5949_v6, %v2162_v34  ;;  %2146 = vst.msk [vmem:[#allocation4 + $0x38] sm:$0x7f] %vm903_vm2, %v2126_v48  ;;  %v2037_v23 = vld [vmem:[#allocation4 + $0x40] sm:$0xff]  ;;  %2020 = vst.msk [vmem:[#allocation4 + $0x59] sm:$0x7f] %vm903_vm2, %v2000_v47  ;;  %v1943_v27 = vadd.f32 %v1898_v54, %v1843_v26 }
 0x326   : > { %v1999_v28 = vadd.f32 %v1979_v53, %v7293_v2  ;;  %v2038_v4 = vld [vmem:[#allocation4 + $0x48] sm:$0x7f]  ;;  %v2208_v31 = vmax.f32 %v2188_v62, 0.0  ;;  %v2127_v8 = vadd.f32 %v7295_v45, %v2037_v23  ;;  %v1900_v37 = vpop.permute.xlu1 %1899  ;;  %v7300_v36 = vld [vmem:[#allocation89_spill] sm:$0xff]  ;;  %v1845_v53 = vld [vmem:[#allocation4 + $0x80] sm:$0xff] }
 0x327   : > { %2236 = vst.msk [vmem:[#allocation3] sm:$0xff] %vm494_vm0, %v2226_v24  ;;  %v2209_v52 = vmax.f32 %v2189_v56, 0.0  ;;  %v2128_v12 = vadd.f32 %v7297_v57, %v2038_v4  ;;  %v2163_v33 = vld [vmem:[#allocation4 + $0x20] sm:$0xff]  ;;  %v2164_v59 = vld [vmem:[#allocation4 + $0x28] sm:$0xff]  ;;  %1963 = vst.msk [vmem:[#allocation4 + $0x70] sm:$0xff] %vm494_vm0, %v1943_v27  ;;  %v1944_v20 = vadd.f32 %v1900_v37, %v1844_v13 }
 0x328   : > { %2019 = vst.msk [vmem:[#allocation4 + $0x51] sm:$0xff] %vm494_vm0, %v1999_v28  ;;  %v2190_v50 = vadd.f32 %v5949_v6, %v2163_v33  ;;  %v2191_v3 = vadd.f32 %v5949_v6, %v2164_v59  ;;  %2147 = vst.msk [vmem:[#allocation4 + $0x40] sm:$0xff] %vm494_vm0, %v2127_v8  ;;  %v1981_v49 = vld [vmem:[#allocation4 + $0x61] sm:$0xff]  ;;  %v1982_v30 = vld [vmem:[#allocation4 + $0x69] sm:$0x7f] }
 0x329   : > { %v2227_v51 = vpack.c.bf16 %v2209_v52, %v2208_v31  ;;  %2148 = vst.msk [vmem:[#allocation4 + $0x48] sm:$0x7f] %vm903_vm2, %v2128_v12  ;;  %v2001_v41 = vadd.f32 %v1981_v49, %v7298_v14  ;;  %v2002_v43 = vadd.f32 %v1982_v30, %v7299_v46  ;;  %v1846_v2 = vld [vmem:[#allocation4 + $0x88] sm:$0xff]  ;;  %v7303_v45 = vld [vmem:[#allocation94_spill] sm:$0xff]  ;;  %v7305_v26 = vld [vmem:[#allocation93_spill] sm:$0xff] }
 0x32a   : > { %v2210_v15 = vmax.f32 %v2190_v50, 0.0  ;;  %v2211_v42 = vmax.f32 %v2191_v3, 0.0  ;;  %1964 = vst.msk [vmem:[#allocation4 + $0x78] sm:$0xff] %vm494_vm0, %v1944_v20  ;;  %v1847_v13 = vld [vmem:[#allocation4 + $0x90] sm:$0xff] }
 0x32b   : > { %2237 = vst.msk [vmem:[#allocation3 + $0x8] sm:$0xff] %vm494_vm0, %v2227_v51  ;;  %v2165_v58 = vld [vmem:[#allocation4 + $0x30] sm:$0xff]  ;;  %2021 = vst.msk [vmem:[#allocation4 + $0x61] sm:$0xff] %vm494_vm0, %v2001_v41 }
 0x32c   : > { %v2166_v25 = vld [vmem:[#allocation4 + $0x38] sm:$0xff]  ;;  %v2228_v21 = vpack.c.bf16 %v2211_v42, %v2210_v15  ;;  %v2192_v1 = vadd.f32 %v5949_v6, %v2165_v58  ;;  %2022 = vst.msk [vmem:[#allocation4 + $0x69] sm:$0x7f] %vm903_vm2, %v2002_v43  ;;  %v1902_v7 = vpop.permute.xlu0 %1901  ;;  %v7306_v51 = vld [vmem:[#allocation92_spill] sm:$0xff] }
 0x32d   : > { %v2193_v40 = vadd.f32 %v5949_v6, %v2166_v25  ;;  %v1945_v32 = vadd.f32 %v1902_v7, %v1845_v53  ;;  %v7307_v50 = vrot.slane %v7306_v51, 1  ;;  %v1848_v25 = vld [vmem:[#allocation4 + $0x98] sm:$0xff] }
 0x32e   : > { %2238 = vst.msk [vmem:[#allocation3 + $0x10] sm:$0xff] %vm494_vm0, %v2228_v21  ;;  %v2212_v5 = vmax.f32 %v2192_v1, 0.0  ;;  %v1904_v28 = vpop.permute.xlu1 %1903 }
 0x32f   : > { %v2039_v16 = vld [vmem:[#allocation4 + $0x50] sm:$0xff]  ;;  %v2213_v60 = vmax.f32 %v2193_v40, 0.0  ;;  %v2040_v11 = vld [vmem:[#allocation4 + $0x58] sm:$0x7f]  ;;  %v2167_v35 = vld [vmem:[#allocation4 + $0x40] sm:$0xff]  ;;  %1965 = vst.msk [vmem:[#allocation4 + $0x80] sm:$0xff] %vm494_vm0, %v1945_v32  ;;  %v1946_v63 = vadd.f32 %v1904_v28, %v1846_v2 }
 0x330   : > { %v2129_v39 = vadd.f32 %v7300_v36, %v2039_v16  ;;  %v2168_v48 = vld [vmem:[#allocation4 + $0x48] sm:$0xff]  ;;  %v2130_v34 = vadd.f32 %v7302_v10, %v2040_v11  ;;  %v2194_v62 = vadd.f32 %v5949_v6, %v2167_v35 }
 0x331   : > { %v2229_v24 = vpack.c.bf16 %v2213_v60, %v2212_v5  ;;  %v2195_v56 = vadd.f32 %v5949_v6, %v2168_v48  ;;  %v1983_v47 = vld [vmem:[#allocation4 + $0x71] sm:$0xff]  ;;  %v1984_v31 = vld [vmem:[#allocation4 + $0x79] sm:$0x7f]  ;;  %1966 = vst.msk [vmem:[#allocation4 + $0x88] sm:$0xff] %vm494_vm0, %v1946_v63  ;;  %v7308_v60 = vrot.slane %v5644_v18, 1 }
 0x332   : > { %2149 = vst.msk [vmem:[#allocation4 + $0x50] sm:$0xff] %vm494_vm0, %v2129_v39  ;;  %v2214_v23 = vmax.f32 %v2194_v62, 0.0  ;;  %v2003_v8 = vadd.f32 %v1983_v47, %v7303_v45  ;;  %v2004_v57 = vadd.f32 %v1984_v31, %v7304_v44  ;;  %v2041_v12 = vld [vmem:[#allocation4 + $0x60] sm:$0xff] }
 0x333   : > { %2150 = vst.msk [vmem:[#allocation4 + $0x58] sm:$0x7f] %vm903_vm2, %v2130_v34  ;;  %v2215_v4 = vmax.f32 %v2195_v56, 0.0  ;;  %v2042_v33 = vld [vmem:[#allocation4 + $0x68] sm:$0x7f]  ;;  %v2131_v54 = vadd.f32 %v7305_v26, %v2041_v12  ;;  %v7310_v56 = vld [vmem:[#allocation96_spill] sm:$0xff] }
 0x334   : > { %2239 = vst.msk [vmem:[#allocation3 + $0x18] sm:$0xff] %vm494_vm0, %v2229_v24  ;;  %2023 = vst.msk [vmem:[#allocation4 + $0x71] sm:$0xff] %vm494_vm0, %v2003_v8  ;;  %v2132_v3 = vadd.f32 %v7307_v50, %v2042_v33  ;;  %v1906_v27 = vpop.permute.xlu0 %1905  ;;  %v7309_v24 = vld [vmem:[#allocation97_spill] sm:$0xff]  ;;  %v7311_v32 = vrot.slane %v7310_v56, 1 }
 0x335   : > { %v2230_v52 = vpack.c.bf16 %v2215_v4, %v2214_v23  ;;  %2024 = vst.msk [vmem:[#allocation4 + $0x79] sm:$0x7f] %vm903_vm2, %v2004_v57  ;;  %v1947_v42 = vadd.f32 %v1906_v27, %v1847_v13  ;;  %v4588_v13 = vmov (!%p3898_p12), 0  }
 0x336   : > { %2151 = vst.msk [vmem:[#allocation4 + $0x60] sm:$0xff] %vm494_vm0, %v2131_v54  ;;  %v1908_v58 = vpop.permute.xlu1 %1907  ;;  %2249 = vst.msk [vmem:[#allocation3] sm:$0xff] (!%p3898_p12), %vm494_vm0, %v4588_v13 }
 0x337   : > { %2240 = vst.msk [vmem:[#allocation3 + $0x20] sm:$0xff] %vm494_vm0, %v2230_v52  ;;  %1967 = vst.msk [vmem:[#allocation4 + $0x90] sm:$0xff] %vm494_vm0, %v1947_v42  ;;  %v1948_v1 = vadd.f32 %v1908_v58, %v1848_v25 }
 0x338   : > { %2152 = vst.msk [vmem:[#allocation4 + $0x68] sm:$0x7f] %vm903_vm2, %v2132_v3  ;;  %v1985_v49 = vld [vmem:[#allocation4 + $0x81] sm:$0xff]  ;;  %v1986_v30 = vld [vmem:[#allocation4 + $0x89] sm:$0x7f] }
 0x339   : > { %v2169_v59 = vld [vmem:[#allocation4 + $0x50] sm:$0xff]  ;;  %v2005_v16 = vadd.f32 %v1985_v49, %v5663_v22  ;;  %v2006_v14 = vadd.f32 %v1986_v30, %v5672_v38  ;;  %1968 = vst.msk [vmem:[#allocation4 + $0x98] sm:$0xff] %vm494_vm0, %v1948_v1 }
 0x33a   : > { %v2170_v37 = vld [vmem:[#allocation4 + $0x58] sm:$0xff]  ;;  %v2196_v15 = vadd.f32 %v5949_v6, %v2169_v59 }
 0x33b   : > { %v2197_v20 = vadd.f32 %v5949_v6, %v2170_v37  ;;  %v2043_v46 = vld [vmem:[#allocation4 + $0x70] sm:$0xff]  ;;  %2025 = vst.msk [vmem:[#allocation4 + $0x81] sm:$0xff] %vm494_vm0, %v2005_v16 }
 0x33c   : > { %v2216_v21 = vmax.f32 %v2196_v15, 0.0  ;;  %v2044_v43 = vld [vmem:[#allocation4 + $0x78] sm:$0x7f]  ;;  %v2133_v5 = vadd.f32 %v5654_v17, %v2043_v46  ;;  %2026 = vst.msk [vmem:[#allocation4 + $0x89] sm:$0x7f] %vm903_vm2, %v2006_v14 }
 0x33d   : > { %v2217_v40 = vmax.f32 %v2197_v20, 0.0  ;;  %v2134_v11 = vadd.f32 %v7308_v60, %v2044_v43  ;;  %v2171_v36 = vld [vmem:[#allocation4 + $0x60] sm:$0xff] }
 0x33e   : > { %2153 = vst.msk [vmem:[#allocation4 + $0x70] sm:$0xff] %vm494_vm0, %v2133_v5  ;;  %v2198_v38 = vadd.f32 %v5949_v6, %v2171_v36 }
 0x33f   : > { %v2231_v41 = vpack.c.bf16 %v2217_v40, %v2216_v21  ;;  %v2172_v22 = vld [vmem:[#allocation4 + $0x68] sm:$0xff]  ;;  %2154 = vst.msk [vmem:[#allocation4 + $0x78] sm:$0x7f] %vm903_vm2, %v2134_v11 }
 0x340   : > { %v2199_v39 = vadd.f32 %v5949_v6, %v2172_v22  ;;  %v2218_v17 = vmax.f32 %v2198_v38, 0.0  ;;  %v1987_v18 = vld [vmem:[#allocation4 + $0x91] sm:$0xff]  ;;  %v1988_v48 = vld [vmem:[#allocation4 + $0x99] sm:$0x7f] }
 0x341   : > { %2241 = vst.msk [vmem:[#allocation3 + $0x28] sm:$0xff] %vm494_vm0, %v2231_v41  ;;  %v2007_v29 = vadd.f32 %v1987_v18, %v5695_v61  ;;  %v2008_v10 = vadd.f32 %v1988_v48, %v5706_v0 }
 0x342   : > { %v2219_v35 = vmax.f32 %v2199_v39, 0.0  ;;  %v2045_v53 = vld [vmem:[#allocation4 + $0x80] sm:$0xff] }
 0x343   : > { %v2046_v7 = vld [vmem:[#allocation4 + $0x88] sm:$0x7f]  ;;  %v2135_v62 = vadd.f32 %v7309_v24, %v2045_v53  ;;  %2027 = vst.msk [vmem:[#allocation4 + $0x91] sm:$0xff] %vm494_vm0, %v2007_v29 }
 0x344   : > { %v2232_v34 = vpack.c.bf16 %v2219_v35, %v2218_v17  ;;  %v2136_v2 = vadd.f32 %v7311_v32, %v2046_v7  ;;  %2028 = vst.msk [vmem:[#allocation4 + $0x99] sm:$0x7f] %vm903_vm2, %v2008_v10 }
 0x345   : > { %v2173_v28 = vld [vmem:[#allocation4 + $0x70] sm:$0xff]  ;;  %2155 = vst.msk [vmem:[#allocation4 + $0x80] sm:$0xff] %vm494_vm0, %v2135_v62 }
 0x346   : > { %2242 = vst.msk [vmem:[#allocation3 + $0x30] sm:$0xff] %vm494_vm0, %v2232_v34  ;;  %v2174_v23 = vld [vmem:[#allocation4 + $0x78] sm:$0xff]  ;;  %v2200_v61 = vadd.f32 %v5949_v6, %v2173_v28 }
 0x347   : > { %v2201_v0 = vadd.f32 %v5949_v6, %v2174_v23  ;;  %2156 = vst.msk [vmem:[#allocation4 + $0x88] sm:$0x7f] %vm903_vm2, %v2136_v2 }
 0x348   : > { %v2220_v4 = vmax.f32 %v2200_v61, 0.0 }
 0x349   : > { %v2221_v63 = vmax.f32 %v2201_v0, 0.0 }
 0x34a   : > { %v2047_v31 = vld [vmem:[#allocation4 + $0x90] sm:$0xff] }
 0x34b   : > { %v2233_v47 = vpack.c.bf16 %v2221_v63, %v2220_v4  ;;  %v2048_v52 = vld [vmem:[#allocation4 + $0x98] sm:$0x7f]  ;;  %v2137_v45 = vadd.f32 %v5726_v55, %v2047_v31 }
 0x34c   : > { %v2138_v8 = vadd.f32 %v2097_v9, %v2048_v52  ;;  %v2175_v44 = vld [vmem:[#allocation4 + $0x80] sm:$0xff] }
 0x34d   : > { %2243 = vst.msk [vmem:[#allocation3 + $0x38] sm:$0xff] %vm494_vm0, %v2233_v47  ;;  %v2202_v12 = vadd.f32 %v5949_v6, %v2175_v44  ;;  %2157 = vst.msk [vmem:[#allocation4 + $0x90] sm:$0xff] %vm494_vm0, %v2137_v45 }
 0x34e   : > { %v2176_v57 = vld [vmem:[#allocation4 + $0x88] sm:$0xff]  ;;  %2158 = vst.msk [vmem:[#allocation4 + $0x98] sm:$0x7f] %vm903_vm2, %v2138_v8 }
 0x34f   : > { %v2203_v33 = vadd.f32 %v5949_v6, %v2176_v57  ;;  %v2222_v59 = vmax.f32 %v2202_v12, 0.0 }
 0x351   : > { %v2223_v26 = vmax.f32 %v2203_v33, 0.0 }
 0x353   : > { %v2234_v54 = vpack.c.bf16 %v2223_v26, %v2222_v59 }
 0x354   : > { %v2177_v51 = vld [vmem:[#allocation4 + $0x90] sm:$0xff] }
 0x355   : > { %2244 = vst.msk [vmem:[#allocation3 + $0x40] sm:$0xff] %vm494_vm0, %v2234_v54  ;;  %v2178_v55 = vld [vmem:[#allocation4 + $0x98] sm:$0xff]  ;;  %v2204_v19 = vadd.f32 %v5949_v6, %v2177_v51 }
 0x356   : > { %v2205_v9 = vadd.f32 %v5949_v6, %v2178_v55  ;;  %2248 = sbr.rel (%p3898_p12) target bundleno = 861 (0x35d), region = 88 }
 0x357   : > { %v2224_v50 = vmax.f32 %v2204_v19, 0.0 }
 0x358   : > { %v2225_v3 = vmax.f32 %v2205_v9, 0.0 }
 0x35a   : > { %v2235_v27 = vpack.c.bf16 %v2225_v3, %v2224_v50 }
 0x35c   : > { %2245 = vst.msk [vmem:[#allocation3 + $0x48] sm:$0xff] %vm494_vm0, %v2235_v27 }
 0x35d PF: > { %2252 = sbr.rel (%p3900_p0) target bundleno = 868 (0x364), region = 92  ;;  %v4589_v37 = vmov (!%p3900_p0), 0  }
 0x35e   : > { %2254 = vst.msk [vmem:[#allocation3 + $0x48] sm:$0xff] (!%p3900_p0), %vm494_vm0, %v4589_v37 }
 0x364 PF: > { %v4235_v6 = vld [vmem:[#allocation14 + $0x4] ss:$8 sps:$4 sm:$0xff]   ;;  %v7314_v15 = vmov 0   ;;  %v4237_v42 = vld [vmem:[#allocation14] ss:$8 sps:$4 sm:$0xff]   ;;  %v2255_v30 = vld [vmem:[#allocation3] sm:$0xff] }
 0x365   : > { %2367 = vmatprep.mubr.bf16.mxu1 %v7314_v15  ;;  %3253 = vmatprep.mubr.bf16.mxu0 %v7314_v15  ;;  %v4238_v20 = vld [vmem:[#allocation14 + $0x14] ss:$8 sps:$4 sm:$0xff]   ;;  %v4240_v58 = vld [vmem:[#allocation14 + $0x10] ss:$8 sps:$4 sm:$0xff]   ;;  %v4241_v25 = vld [vmem:[#allocation14 + $0x24] ss:$8 sps:$4 sm:$0xff]  }
 0x366   : > { %2335 = vmatprep.subr.bf16.mxu1 %v4235_v6  ;;  %v4243_v21 = vld [vmem:[#allocation14 + $0x20] ss:$8 sps:$4 sm:$0xff]   ;;  %v4244_v1 = vld [vmem:[#allocation14 + $0x34] ss:$8 sps:$4 sm:$0xff]   ;;  %v4246_v40 = vld [vmem:[#allocation14 + $0x30] ss:$8 sps:$4 sm:$0xff]  }
 0x367   : > { %2336 = vmatpush1.bf16.msra.mxu1 %v4237_v42  ;;  %v4249_v49 = vld [vmem:[#allocation14 + $0x44] ss:$8 sps:$4 sm:$0xff]   ;;  %v6061_v14 = vld [vmem:[#allocation14 + $0x80] ss:$8 sps:$4 sm:$0xff]   ;;  %v6063_v46 = vld [vmem:[#allocation14 + $0x94] ss:$8 sps:$4 sm:$0xff]  }
 0x368   : > { %2337 = vmatprep.subr.bf16.mxu1 %v4238_v20  ;;  %v4259_v16 = vld [vmem:[#allocation14 + $0x84] ss:$8 sps:$4 sm:$0xff]   ;;  %v4247_v41 = vld [vmem:[#allocation14 + $0x40] ss:$8 sps:$4 sm:$0xff]   ;;  %v4252_v43 = vld [vmem:[#allocation14 + $0x54] ss:$8 sps:$4 sm:$0xff]  }
 0x369   : > { %3221 = vmatprep.subr.bf16.mxu0 %v4259_v16  ;;  %v6066_v5 = vld [vmem:[#allocation14 + $0x90] ss:$8 sps:$4 sm:$0xff]   ;;  %v4265_v60 = vld [vmem:[#allocation14 + $0xa4] ss:$8 sps:$4 sm:$0xff]   ;;  %v4267_v22 = vld [vmem:[#allocation14 + $0xa0] ss:$8 sps:$4 sm:$0xff]  }
 0x36a   : > { %3222 = vmatpush1.bf16.msra.mxu0 %v6061_v14  ;;  %v4250_v11 = vld [vmem:[#allocation14 + $0x50] ss:$8 sps:$4 sm:$0xff]   ;;  %v4255_v36 = vld [vmem:[#allocation14 + $0x64] ss:$8 sps:$4 sm:$0xff]   ;;  %v4268_v38 = vld [vmem:[#allocation14 + $0xb4] ss:$8 sps:$4 sm:$0xff]  }
 0x36b   : > { %2338 = vmatpush1.bf16.msra.mxu1 %v4240_v58  ;;  %3223 = vmatprep.subr.bf16.mxu0 %v6063_v46  ;;  %v2256_v39 = vld [vmem:[#allocation3 + $0x8] sm:$0xff]  ;;  %v4253_v17 = vld [vmem:[#allocation14 + $0x60] ss:$8 sps:$4 sm:$0xff]   ;;  %v2259_v34 = vld [vmem:[#allocation3 + $0x20] sm:$0xff]  ;;  %s7402_s1 = sld [smem:[#allocation104_spill]]  ;;  %s7418_s16 = sld [smem:[#allocation25_spill]] }
 0x36c   : > { %2339 = vmatprep.subr.bf16.mxu1 %v4241_v25  ;;  %v4258_v35 = vld [vmem:[#allocation14 + $0x74] ss:$8 sps:$4 sm:$0xff]   ;;  %v4270_v18 = vld [vmem:[#allocation14 + $0xb0] ss:$8 sps:$4 sm:$0xff]   ;;  %v2257_v29 = vld [vmem:[#allocation3 + $0x10] sm:$0xff]  ;;  %s7419_s5 = sld [smem:[#allocation26_spill]] }
 0x36d   : > { %v4256_v48 = vld [vmem:[#allocation14 + $0x70] ss:$8 sps:$4 sm:$0xff]   ;;  %v2258_v10 = vld [vmem:[#allocation3 + $0x18] sm:$0xff]  ;;  %v2261_v7 = vld [vmem:[#allocation3 + $0x30] sm:$0xff]  ;;  %s3702_s18 = sshll.u32 %s5092_s15, 4  ;;  %s7421_s19 = sld [smem:[#allocation105_spill]]  ;;  %s6840_s18 = int_to_ptr.vmem [resolvable:$true] %s3702_s18 }
 0x36e   : > { %3224 = vmatpush1.bf16.msra.mxu0 %v6066_v5  ;;  %v2260_v53 = vld [vmem:[#allocation3 + $0x28] sm:$0xff]  ;;  %v2262_v24 = vld [vmem:[#allocation3 + $0x38] sm:$0xff]  ;;  %v2688_v62 = vld [vmem:[#allocation3 + $0x40] sm:$0xff]  ;;  %s4417_s12 = scalar_lea.vmem %s6840_s18, 2048  ;;  %p7422_p1 = scmp.ne.s32.totalorder %s7121_s17, 0 }
 0x36f   : > { %2340 = vmatpush1.bf16.msra.mxu1 %v4243_v21  ;;  %3225 = vmatprep.subr.bf16.mxu0 %v4265_v60  ;;  %v3147_v56 = vld [vmem:[#allocation3 + $0x48] sm:$0xff]  ;;  %p4418_p13 = scmp.ne.s32.totalorder %s6840_s18, %s4417_s12  ;;  %s4590_s24 = smov [#allocation15]  }
 0x370   : > { %2341 = vmatprep.subr.bf16.mxu1 %v4244_v1  ;;  %s4421_s25 = sshll.u32 %s4590_s24, 4  ;;  %s4422_s25 = int_to_ptr.vmem [resolvable:$false] %s4421_s25 }
 0x371   : > { %s4023_s21 = sshll.u32 %s7418_s16, 4  ;;  %p4419_p8 = pnand %p4418_p13, %p7422_p1 }
 0x372   : > { %3226 = vmatpush1.bf16.msra.mxu0 %v4267_v22  ;;  %s4010_s28 = sshll.u32 %s7419_s5, 5  ;;  %s4423_s10 = scalar_lea.vmem %s4422_s25, 4096 }
 0x373   : > { %2342 = vmatpush1.bf16.msra.mxu1 %v4246_v40  ;;  %3227 = vmatprep.subr.bf16.mxu0 %v4268_v38  ;;  %s3699_s11 = sadd.s32 %s4023_s21, %s4010_s28  ;;  %p4420_p5 = pneg %p4419_p8 }
 0x374   : > { %2762 = vmatprep.subr.bf16.mxu1 %v4249_v49  ;;  %s4011_s4 = sshll.u32 %s3699_s11, 7  ;;  %p4424_p6 = scmp.lt.s32.totalorder %s6840_s18, %s4422_s25 }
 0x375   : > { %s6838_s0 = scalar_lea.hbm %s7421_s19, %s4011_s4  ;;  %p4425_p9 = scmp.lt.s32.totalorder %s4423_s10, %s4417_s12 }
 0x376   : > { %3966 = vmatmul.mubr.msk.bf16.vlgmr.msra.gmra.mrb[40].mxu1 %vm494_vm0, %v2255_v30  ;;  %3228 = vmatpush1.bf16.msra.mxu0 %v4270_v18 }
 0x377   : > { %2763 = vmatpush1.bf16.msra.mxu1 %v4247_v41  ;;  %2377 = vmatprep.mubr.bf16.mxu1 %v7314_v15  ;;  %p4426_p11 = por %p4425_p9, %p4424_p6 }
 0x378   : > { %2764 = vmatprep.subr.bf16.mxu1 %v4252_v43 }
 0x379   : > { %3998 = vmatmul.mubr.msk.bf16.vlgmr.msra.gmra.mrb[80].mxu0 %vm494_vm0, %v2257_v29  ;;  %p4427_p3 = pnand %p4426_p11, %p4420_p5 }
 0x37a   : > { %3263 = vmatprep.mubr.bf16.mxu0 %v7314_v15 }
 0x37b   : > { %2765 = vmatpush1.bf16.msra.mxu1 %v4250_v11 }
 0x37c   : > { %2766 = vmatprep.subr.bf16.mxu1 %v4255_v36 }
 0x37e   : > { %3967 = vmatmul.mubr.msk.bf16.gmra.mrb[44].mxu1 %vm494_vm0, %v2256_v39 }
 0x37f   : > { %2387 = vmatprep.mubr.bf16.mxu1 %v7314_v15  ;;  %2767 = vmatpush1.bf16.msra.mxu1 %v4253_v17 }
 0x380   : > { %2768 = vmatprep.subr.bf16.mxu1 %v4258_v35 }
 0x381   : > { %3999 = vmatmul.mubr.msk.bf16.gmra.mrb[84].mxu0 %vm494_vm0, %v2258_v10 }
 0x382   : > { %3273 = vmatprep.mubr.bf16.mxu0 %v7314_v15 }
 0x383   : > { %2769 = vmatpush1.bf16.msra.mxu1 %v4256_v48 }
 0x384   : > { %4024 = vmatprep.subr.bf16.mxu1 %v4259_v16 }
 0x386   : > { %3968 = vmatmul.mubr.msk.bf16.gmra.mrb[48].mxu1 %vm494_vm0, %v2257_v29 }
 0x387   : > { %2397 = vmatprep.mubr.bf16.mxu1 %v7314_v15 }
 0x389   : > { %4000 = vmatmul.mubr.msk.bf16.gmra.mrb[88].mxu0 %vm494_vm0, %v2259_v34 }
 0x38a   : > { %3283 = vmatprep.mubr.bf16.mxu0 %v7314_v15 }
 0x38e   : > { %3969 = vmatmul.mubr.msk.bf16.gmra.mrb[52].mxu1 %vm494_vm0, %v2258_v10 }
 0x38f   : > { %2407 = vmatprep.mubr.bf16.mxu1 %v7314_v15 }
 0x391   : > { %4001 = vmatmul.mubr.msk.bf16.gmra.mrb[92].mxu0 %vm494_vm0, %v2260_v53 }
 0x392   : > { %3293 = vmatprep.mubr.bf16.mxu0 %v7314_v15 }
 0x396   : > { %3970 = vmatmul.mubr.msk.bf16.gmra.mrb[56].mxu1 %vm494_vm0, %v2259_v34 }
 0x397   : > { %2417 = vmatprep.mubr.bf16.mxu1 %v7314_v15 }
 0x399   : > { %4002 = vmatmul.mubr.msk.bf16.gmra.mrb[96].mxu0 %vm494_vm0, %v2261_v7 }
 0x39a   : > { %3303 = vmatprep.mubr.bf16.mxu0 %v7314_v15 }
 0x39e   : > { %3971 = vmatmul.mubr.msk.bf16.gmra.mrb[60].mxu1 %vm494_vm0, %v2260_v53 }
 0x39f   : > { %2427 = vmatprep.mubr.bf16.mxu1 %v7314_v15 }
 0x3a1   : > { %4003 = vmatmul.mubr.msk.bf16.gmra.mrb[100].mxu0 %vm494_vm0, %v2262_v24 }
 0x3a2   : > { %3313 = vmatprep.mubr.bf16.mxu0 %v7314_v15 }
 0x3a6   : > { %3972 = vmatmul.mubr.msk.bf16.gmra.mrb[64].mxu1 %vm494_vm0, %v2261_v7 }
 0x3a7   : > { %2437 = vmatprep.mubr.bf16.mxu1 %v7314_v15 }
 0x3a9   : > { %4004 = vmatmul.mubr.msk.bf16.gmra.mrb[104].mxu0 %vm494_vm0, %v2688_v62 }
 0x3ae   : > { %3973 = vmatmul.mubr.msk.bf16.gmra.mrb[68].mxu1 %vm494_vm0, %v2262_v24 }
 0x3af   : > { %2794 = vmatprep.mubr.bf16.mxu1 %v7314_v15 }
 0x3b6   : > { %3982 = vmatmul.mubr.msk.bf16.vlgmr.msra.gmra.mrb[72].mxu1 %vm494_vm0, %v2256_v39 }
 0x3b7   : > { %2804 = vmatprep.mubr.bf16.mxu1 %v7314_v15  ;;  %4028 = vmatpush1.bf16.msra.mxu1 %v6061_v14 }
 0x3b8   : > { %4025 = vmatprep.subr.bf16.mxu1 %v6063_v46 }
 0x3bb   : > { %4029 = vmatpush1.bf16.msra.mxu1 %v6066_v5 }
 0x3bc   : > { %4026 = vmatprep.subr.bf16.mxu1 %v4265_v60 }
 0x3be   : > { %3983 = vmatmul.mubr.msk.bf16.gmra.mrb[76].mxu1 %vm494_vm0, %v2257_v29 }
 0x3bf   : > { %2814 = vmatprep.mubr.bf16.mxu1 %v7314_v15  ;;  %4030 = vmatpush1.bf16.msra.mxu1 %v4267_v22 }
 0x3c0   : > { %4027 = vmatprep.subr.bf16.mxu1 %v4268_v38 }
 0x3c3   : > { %4031 = vmatpush1.bf16.msra.mxu1 %v4270_v18 }
 0x3c6   : > { %3984 = vmatmul.mubr.msk.bf16.gmra.mrb[80].mxu1 %vm494_vm0, %v2258_v10 }
 0x3c7   : > { %2824 = vmatprep.mubr.bf16.mxu1 %v7314_v15 }
 0x3ce   : > { %3985 = vmatmul.mubr.msk.bf16.gmra.mrb[84].mxu1 %vm494_vm0, %v2259_v34 }
 0x3cf   : > { %2834 = vmatprep.mubr.bf16.mxu1 %v7314_v15 }
 0x3d6   : > { %3986 = vmatmul.mubr.msk.bf16.gmra.mrb[88].mxu1 %vm494_vm0, %v2260_v53 }
 0x3d7   : > { %2844 = vmatprep.mubr.bf16.mxu1 %v7314_v15 }
 0x3de   : > { %3987 = vmatmul.mubr.msk.bf16.gmra.mrb[92].mxu1 %vm494_vm0, %v2261_v7 }
 0x3df   : > { %2854 = vmatprep.mubr.bf16.mxu1 %v7314_v15 }
 0x3e6   : > { %3988 = vmatmul.mubr.msk.bf16.gmra.mrb[96].mxu1 %vm494_vm0, %v2262_v24 }
 0x3e7   : > { %2864 = vmatprep.mubr.bf16.mxu1 %v7314_v15 }
 0x3ee   : > { %3989 = vmatmul.mubr.msk.bf16.gmra.mrb[100].mxu1 %vm494_vm0, %v2688_v62 }
 0x3ef   : > { %3323 = vmatprep.mubr.bf16.mxu1 %v7314_v15 }
 0x3f6   : > { %4005 = vmatmul.mubr.msk.bf16.vlgmr.msra.gmra.mrb[104].mxu1 %vm494_vm0, %v3147_v56 }
 0x449   : > { %v6119_v32 = vpop.f32.mrb[40].mxu1 }
 0x44a   : > { %2464 = vrot.lane.b32.xlu0 %v6119_v32, %s4587_s13  ;;  %v2371_v2 = vpop.f32.mrb[41].mxu1 }
 0x44b   : > { %v6123_v28 = vpop.f32.mrb[42].mxu1  ;;  %v2608_v61 = vrot.slane %v2371_v2, 1 }
 0x44c   : > { %v6125_v23 = vpop.f32.mrb[43].mxu1  ;;  %v6151_v57 = vpop.f32.mrb[80].mxu0 }
 0x44d   : > { %v7045_v0 = vrot.slane %v6125_v23, 1  ;;  %v3257_v12 = vpop.f32.mrb[81].mxu0 }
 0x44e   : > { %2466 = vrot.lane.b32.xlu0 %v6123_v28, %s4587_s13  ;;  %v3526_v59 = vrot.slane %v3257_v12, 1  ;;  %v6155_v26 = vpop.f32.mrb[82].mxu0 }
 0x44f   : > { %v6133_v4 = vsel %vm963_vm1, %v2608_v61, %v7045_v0  ;;  %v6159_v51 = vpop.f32.mrb[83].mxu0 }
 0x450   : > { %7315 = vst [vmem:[#allocation37_spill] sm:$0xff] %v6159_v51  ;;  %v7037_v19 = vrot.slane %v6159_v51, 1 }
 0x451   : > { %v6135_v63 = vpop.f32.mrb[44].mxu1 }
 0x452   : > { %2468 = vrot.lane.b32.xlu1 %v6135_v63, %s4587_s13  ;;  %v2381_v47 = vpop.f32.mrb[45].mxu1  ;;  %v6172_v27 = vsel %vm963_vm1, %v3526_v59, %v7037_v19 }
 0x453   : > { %v6139_v31 = vpop.f32.mrb[46].mxu1  ;;  %v2611_v45 = vrot.slane %v2381_v47, 1  ;;  %7316 = vst [vmem:[#allocation50_spill] sm:$0xff] %v6172_v27 }
 0x454   : > { %v6141_v52 = vpop.f32.mrb[47].mxu1  ;;  %v6179_v37 = vpop.f32.mrb[84].mxu0 }
 0x455   : > { %v7044_v8 = vrot.slane %v6141_v52, 1  ;;  %v3267_v6 = vpop.f32.mrb[85].mxu0 }
 0x456   : > { %2470 = vrot.lane.b32.xlu1 %v6139_v31, %s4587_s13  ;;  %v3529_v42 = vrot.slane %v3267_v6, 1  ;;  %v6183_v20 = vpop.f32.mrb[86].mxu0 }
 0x457   : > { %v6149_v44 = vsel %vm963_vm1, %v2611_v45, %v7044_v8  ;;  %v6187_v25 = vpop.f32.mrb[87].mxu0 }
 0x458   : > { %7317 = vst [vmem:[#allocation52_spill] sm:$0xff] %v6187_v25  ;;  %v7036_v1 = vrot.slane %v6187_v25, 1 }
 0x459   : > { %v6153_v33 = vpop.f32.mrb[48].mxu1 }
 0x45a   : > { %v2391_v54 = vpop.f32.mrb[49].mxu1  ;;  %2472 = vrot.lane.b32.xlu0 %v6153_v33, %s4587_s13  ;;  %v6200_v16 = vsel %vm963_vm1, %v3529_v42, %v7036_v1 }
 0x45b   : > { %v6161_v55 = vpop.f32.mrb[50].mxu1  ;;  %v2614_v50 = vrot.slane %v2391_v54, 1  ;;  %7318 = vst [vmem:[#allocation36_spill] sm:$0xff] %v6200_v16 }
 0x45c   : > { %2474 = vrot.lane.b32.xlu1 %v6161_v55, %s4587_s13  ;;  %v6166_v9 = vpop.f32.mrb[51].mxu1  ;;  %v6207_v41 = vpop.f32.mrb[88].mxu0 }
 0x45d   : > { %v7043_v3 = vrot.slane %v6166_v9, 1  ;;  %7319 = vst [vmem:[#allocation46_spill] sm:$0xff] %v6207_v41  ;;  %v3277_v46 = vpop.f32.mrb[89].mxu0 }
 0x45e   : > { %v3532_v5 = vrot.slane %v3277_v46, 1  ;;  %v6211_v60 = vpop.f32.mrb[90].mxu0 }
 0x45f   : > { %v6177_v13 = vsel %vm963_vm1, %v2614_v50, %v7043_v3  ;;  %v6215_v36 = vpop.f32.mrb[91].mxu0 }
 0x460   : > { %7320 = vst [vmem:[#allocation49_spill] sm:$0xff] %v6215_v36  ;;  %v7035_v38 = vrot.slane %v6215_v36, 1 }
 0x461   : > { %v6181_v15 = vpop.f32.mrb[52].mxu1 }
 0x462   : > { %v2401_v58 = vpop.f32.mrb[53].mxu1  ;;  %2476 = vrot.lane.b32.xlu0 %v6181_v15, %s4587_s13  ;;  %v6228_v18 = vsel %vm963_vm1, %v3532_v5, %v7035_v38 }
 0x463   : > { %v6189_v21 = vpop.f32.mrb[54].mxu1  ;;  %v2617_v49 = vrot.slane %v2401_v58, 1  ;;  %7321 = vst [vmem:[#allocation35_spill] sm:$0xff] %v6228_v18 }
 0x464   : > { %2478 = vrot.lane.b32.xlu1 %v6189_v21, %s4587_s13  ;;  %v6194_v40 = vpop.f32.mrb[55].mxu1  ;;  %v6235_v29 = vpop.f32.mrb[92].mxu0 }
 0x465   : > { %v7042_v30 = vrot.slane %v6194_v40, 1  ;;  %v3287_v10 = vpop.f32.mrb[93].mxu0 }
 0x466   : > { %v3535_v53 = vrot.slane %v3287_v10, 1  ;;  %v6239_v7 = vpop.f32.mrb[94].mxu0 }
 0x467   : > { %v6205_v14 = vsel %vm963_vm1, %v2617_v49, %v7042_v30  ;;  %v6243_v62 = vpop.f32.mrb[95].mxu0 }
 0x468   : > { %7322 = vst [vmem:[#allocation34_spill] sm:$0xff] %v6243_v62  ;;  %v7034_v2 = vrot.slane %v6243_v62, 1 }
 0x469   : > { %v6209_v43 = vpop.f32.mrb[56].mxu1 }
 0x46a   : > { %v2411_v11 = vpop.f32.mrb[57].mxu1  ;;  %2480 = vrot.lane.b32.xlu0 %v6209_v43, %s4587_s13  ;;  %v6256_v12 = vsel %vm963_vm1, %v3535_v53, %v7034_v2 }
 0x46b   : > { %v6217_v22 = vpop.f32.mrb[58].mxu1  ;;  %v2620_v17 = vrot.slane %v2411_v11, 1  ;;  %7323 = vst [vmem:[#allocation59_spill] sm:$0xff] %v6256_v12 }
 0x46c   : > { %2482 = vrot.lane.b32.xlu1 %v6217_v22, %s4587_s13  ;;  %v6222_v39 = vpop.f32.mrb[59].mxu1  ;;  %v6263_v54 = vpop.f32.mrb[96].mxu0 }
 0x46d   : > { %v7041_v35 = vrot.slane %v6222_v39, 1  ;;  %v3297_v50 = vpop.f32.mrb[97].mxu0 }
 0x46e   : > { %v3538_v42 = vrot.slane %v3297_v50, 1  ;;  %v6267_v58 = vpop.f32.mrb[98].mxu0 }
 0x46f   : > { %v6233_v48 = vsel %vm963_vm1, %v2620_v17, %v7041_v35  ;;  %v6271_v46 = vpop.f32.mrb[99].mxu0 }
 0x470   : > { %7324 = vst [vmem:[#allocation54_spill] sm:$0xff] %v6271_v46  ;;  %v7039_v11 = vrot.slane %v6271_v46, 1 }
 0x471   : > { %v6237_v34 = vpop.f32.mrb[60].mxu1 }
 0x472   : > { %v2421_v24 = vpop.f32.mrb[61].mxu1  ;;  %2484 = vrot.lane.b32.xlu0 %v6237_v34, %s4587_s13 }
 0x473   : > { %v6245_v56 = vpop.f32.mrb[62].mxu1  ;;  %v2623_v47 = vrot.slane %v2421_v24, 1  ;;  %v6284_v24 = vsel %vm963_vm1, %v3538_v42, %v7039_v11 }
 0x474   : > { %2486 = vrot.lane.b32.xlu1 %v6245_v56, %s4587_s13  ;;  %v6250_v61 = vpop.f32.mrb[63].mxu1  ;;  %7325 = vst [vmem:[#allocation57_spill] sm:$0xff] %v6284_v24  ;;  %v6291_v50 = vpop.f32.mrb[100].mxu0 }
 0x475   : > { %v7038_v45 = vrot.slane %v6250_v61, 1  ;;  %v3307_v2 = vpop.f32.mrb[101].mxu0 }
 0x476   : > { %v3541_v1 = vrot.slane %v3307_v2, 1  ;;  %v6295_v19 = vpop.f32.mrb[102].mxu0 }
 0x477   : > { %v6261_v59 = vsel %vm963_vm1, %v2623_v47, %v7038_v45  ;;  %v6299_v45 = vpop.f32.mrb[103].mxu0 }
 0x478   : > { %7326 = vst [vmem:[#allocation39_spill] sm:$0xff] %v6299_v45  ;;  %v7048_v11 = vrot.slane %v6299_v45, 1 }
 0x479   : > { %v6265_v6 = vpop.f32.mrb[64].mxu1 }
 0x47a   : > { %v2431_v49 = vpop.f32.mrb[65].mxu1  ;;  %2488 = vrot.lane.b32.xlu0 %v6265_v6, %s4587_s13  ;;  %v6312_v35 = vsel %vm963_vm1, %v3541_v1, %v7048_v11 }
 0x47b   : > { %v6273_v5 = vpop.f32.mrb[66].mxu1  ;;  %v2626_v10 = vrot.slane %v2431_v49, 1  ;;  %7327 = vst [vmem:[#allocation38_spill] sm:$0xff] %v6312_v35 }
 0x47c   : > { %2490 = vrot.lane.b32.xlu1 %v6273_v5, %s4587_s13  ;;  %v6278_v17 = vpop.f32.mrb[67].mxu1  ;;  %v6319_v3 = vpop.f32.mrb[104].mxu0 }
 0x47d   : > { %v7040_v53 = vrot.slane %v6278_v17, 1  ;;  %v3317_v8 = vpop.f32.mrb[105].mxu0 }
 0x47e   : > { %v3544_v46 = vrot.slane %v3317_v8, 1  ;;  %v6323_v24 = vpop.f32.mrb[106].mxu0 }
 0x47f   : > { %v6289_v47 = vsel %vm963_vm1, %v2626_v10, %v7040_v53  ;;  %v6327_v45 = vpop.f32.mrb[107].mxu0 }
 0x480   : > { %7328 = vst [vmem:[#allocation40_spill] sm:$0xff] %v6327_v45  ;;  %v7052_v11 = vrot.slane %v6327_v45, 1 }
 0x481   : > { %v6293_v38 = vpop.f32.mrb[68].mxu1 }
 0x482   : > { %v2441_v49 = vpop.f32.mrb[69].mxu1  ;;  %2492 = vrot.lane.b32.xlu0 %v6293_v38, %s4587_s13  ;;  %v6340_v35 = vsel %vm963_vm1, %v3544_v46, %v7052_v11 }
 0x483   : > { %v6301_v42 = vpop.f32.mrb[70].mxu1  ;;  %v2629_v53 = vrot.slane %v2441_v49, 1  ;;  %7329 = vst [vmem:[#allocation61_spill] sm:$0xff] %v6340_v35 }
 0x484   : > { %2494 = vrot.lane.b32.xlu1 %v6301_v42, %s4587_s13  ;;  %v6306_v10 = vpop.f32.mrb[71].mxu1 }
 0x485   : > { %v7049_v2 = vrot.slane %v6306_v10, 1 }
 0x487   : > { %v6317_v30 = vsel %vm963_vm1, %v2629_v53, %v7049_v2 }
 0x489   : > { %v6321_v0 = vpop.f32.mrb[72].mxu1 }
 0x48a   : > { %2907 = vrot.lane.b32.xlu0 %v6321_v0, %s4587_s13  ;;  %v2798_v49 = vpop.f32.mrb[73].mxu1 }
 0x48b   : > { %v6329_v1 = vpop.f32.mrb[74].mxu1  ;;  %v3067_v2 = vrot.slane %v2798_v49, 1 }
 0x48c   : > { %2909 = vrot.lane.b32.xlu1 %v6329_v1, %s4587_s13  ;;  %v6334_v53 = vpop.f32.mrb[75].mxu1 }
 0x48d   : > { %v7053_v8 = vrot.slane %v6334_v53, 1 }
 0x48f   : > { %v6345_v62 = vsel %vm963_vm1, %v3067_v2, %v7053_v8 }
 0x491   : > { %v6347_v12 = vpop.f32.mrb[76].mxu1 }
 0x492   : > { %2911 = vrot.lane.b32.xlu0 %v6347_v12, %s4587_s13  ;;  %v2808_v36 = vpop.f32.mrb[77].mxu1 }
 0x493   : > { %v6351_v18 = vpop.f32.mrb[78].mxu1  ;;  %v3070_v46 = vrot.slane %v2808_v36, 1 }
 0x494   : > { %2913 = vrot.lane.b32.xlu1 %v6351_v18, %s4587_s13  ;;  %v6355_v49 = vpop.f32.mrb[79].mxu1 }
 0x495   : > { %7330 = vst [vmem:[#allocation64_spill] sm:$0xff] %v6355_v49  ;;  %v7056_v11 = vrot.slane %v6355_v49, 1 }
 0x497   : > { %v6361_v2 = vsel %vm963_vm1, %v3070_v46, %v7056_v11 }
 0x498   : > { %7331 = vst [vmem:[#allocation47_spill] sm:$0xff] %v6361_v2 }
 0x499   : > { %v6363_v8 = vpop.f32.mrb[80].mxu1 }
 0x49a   : > { %2915 = vrot.lane.b32.xlu0 %v6363_v8, %s4587_s13  ;;  %v2818_v45 = vpop.f32.mrb[81].mxu1 }
 0x49b   : > { %v6367_v35 = vpop.f32.mrb[82].mxu1  ;;  %v3073_v36 = vrot.slane %v2818_v45, 1 }
 0x49c   : > { %2917 = vrot.lane.b32.xlu1 %v6367_v35, %s4587_s13  ;;  %v6371_v25 = vpop.f32.mrb[83].mxu1 }
 0x49d   : > { %7332 = vst [vmem:[#allocation45_spill] sm:$0xff] %v6371_v25  ;;  %v7059_v16 = vrot.slane %v6371_v25, 1 }
 0x49f   : > { %v6377_v46 = vsel %vm963_vm1, %v3073_v36, %v7059_v16 }
 0x4a0   : > { %7333 = vst [vmem:[#allocation42_spill] sm:$0xff] %v6377_v46 }
 0x4a1   : > { %v6379_v11 = vpop.f32.mrb[84].mxu1 }
 0x4a2   : > { %7334 = vst [vmem:[#allocation41_spill] sm:$0xff] %v6379_v11  ;;  %2919 = vrot.lane.b32.xlu0 %v6379_v11, %s4587_s13  ;;  %v2828_v51 = vpop.f32.mrb[85].mxu1 }
 0x4a3   : > { %v6383_v27 = vpop.f32.mrb[86].mxu1  ;;  %v3076_v45 = vrot.slane %v2828_v51, 1 }
 0x4a4   : > { %7335 = vst [vmem:[#allocation44_spill] sm:$0xff] %v6383_v27  ;;  %2921 = vrot.lane.b32.xlu1 %v6383_v27, %s4587_s13  ;;  %v6387_v49 = vpop.f32.mrb[87].mxu1 }
 0x4a5   : > { %7336 = vst [vmem:[#allocation43_spill] sm:$0xff] %v6387_v49  ;;  %v7063_v2 = vrot.slane %v6387_v49, 1 }
 0x4a7   : > { %v6393_v36 = vsel %vm963_vm1, %v3076_v45, %v7063_v2 }
 0x4a8   : > { %7337 = vst [vmem:[#allocation55_spill] sm:$0xff] %v6393_v36 }
 0x4a9   : > { %v6395_v16 = vpop.f32.mrb[88].mxu1 }
 0x4aa   : > { %7338 = vst [vmem:[#allocation53_spill] sm:$0xff] %v6395_v16  ;;  %2923 = vrot.lane.b32.xlu0 %v6395_v16, %s4587_s13  ;;  %v2838_v25 = vpop.f32.mrb[89].mxu1 }
 0x4ab   : > { %v6399_v46 = vpop.f32.mrb[90].mxu1  ;;  %v3079_v51 = vrot.slane %v2838_v25, 1 }
 0x4ac   : > { %7339 = vst [vmem:[#allocation51_spill] sm:$0xff] %v6399_v46  ;;  %2925 = vrot.lane.b32.xlu1 %v6399_v46, %s4587_s13  ;;  %v6403_v11 = vpop.f32.mrb[91].mxu1 }
 0x4ad   : > { %7340 = vst [vmem:[#allocation48_spill] sm:$0xff] %v6403_v11  ;;  %v7067_v27 = vrot.slane %v6403_v11, 1 }
 0x4af   : > { %v6409_v45 = vsel %vm963_vm1, %v3079_v51, %v7067_v27 }
 0x4b0   : > { %7341 = vst [vmem:[#allocation65_spill] sm:$0xff] %v6409_v45 }
 0x4b1   : > { %v6411_v2 = vpop.f32.mrb[92].mxu1 }
 0x4b2   : > { %7342 = vst [vmem:[#allocation67_spill] sm:$0xff] %v6411_v2  ;;  %2927 = vrot.lane.b32.xlu0 %v6411_v2, %s4587_s13  ;;  %v2848_v49 = vpop.f32.mrb[93].mxu1 }
 0x4b3   : > { %v6415_v36 = vpop.f32.mrb[94].mxu1  ;;  %v3082_v25 = vrot.slane %v2848_v49, 1 }
 0x4b4   : > { %7343 = vst [vmem:[#allocation62_spill] sm:$0xff] %v6415_v36  ;;  %2929 = vrot.lane.b32.xlu1 %v6415_v36, %s4587_s13  ;;  %v6419_v16 = vpop.f32.mrb[95].mxu1 }
 0x4b5   : > { %7344 = vst [vmem:[#allocation70_spill] sm:$0xff] %v6419_v16  ;;  %v7071_v46 = vrot.slane %v6419_v16, 1 }
 0x4b7   : > { %v6425_v51 = vsel %vm963_vm1, %v3082_v25, %v7071_v46 }
 0x4b8   : > { %7345 = vst [vmem:[#allocation71_spill] sm:$0xff] %v6425_v51 }
 0x4b9   : > { %v6427_v27 = vpop.f32.mrb[96].mxu1 }
 0x4ba   : > { %7346 = vst [vmem:[#allocation60_spill] sm:$0xff] %v6427_v27  ;;  %2931 = vrot.lane.b32.xlu0 %v6427_v27, %s4587_s13  ;;  %v2858_v11 = vpop.f32.mrb[97].mxu1 }
 0x4bb   : > { %v6431_v45 = vpop.f32.mrb[98].mxu1  ;;  %v3085_v36 = vrot.slane %v2858_v11, 1 }
 0x4bc   : > { %7347 = vst [vmem:[#allocation58_spill] sm:$0xff] %v6431_v45  ;;  %v2465_v2 = vpop.permute.xlu0 %2464  ;;  %2933 = vrot.lane.b32.xlu1 %v6431_v45, %s4587_s13  ;;  %v6435_v49 = vpop.f32.mrb[99].mxu1 }
 0x4bd   : > { %7348 = vst [vmem:[#allocation56_spill] sm:$0xff] %v6435_v49  ;;  %2512 = vst.msk [vmem:[#allocation5] sm:$0xff] %vm494_vm0, %v2465_v2  ;;  %v7076_v25 = vrot.slane %v6435_v49, 1 }
 0x4bf   : > { %v6442_v46 = vsel %vm963_vm1, %v3085_v36, %v7076_v25 }
 0x4c0   : > { %7349 = vst [vmem:[#allocation74_spill] sm:$0xff] %v6442_v46  ;;  %v2467_v16 = vpop.permute.xlu0 %2466 }
 0x4c1   : > { %2513 = vst.msk [vmem:[#allocation5 + $0x8] sm:$0xff] %vm494_vm0, %v2467_v16  ;;  %v6445_v51 = vpop.f32.mrb[100].mxu1 }
 0x4c2   : > { %7350 = vst [vmem:[#allocation75_spill] sm:$0xff] %v6445_v51  ;;  %2935 = vrot.lane.b32.xlu0 %v6445_v51, %s4587_s13  ;;  %v2868_v27 = vpop.f32.mrb[101].mxu1 }
 0x4c3   : > { %v6449_v45 = vpop.f32.mrb[102].mxu1  ;;  %v3088_v49 = vrot.slane %v2868_v27, 1 }
 0x4c4   : > { %7351 = vst [vmem:[#allocation69_spill] sm:$0xff] %v6449_v45  ;;  %v2469_v11 = vpop.permute.xlu1 %2468  ;;  %2937 = vrot.lane.b32.xlu1 %v6449_v45, %s4587_s13  ;;  %v6453_v2 = vpop.f32.mrb[103].mxu1 }
 0x4c5   : > { %7352 = vst [vmem:[#allocation68_spill] sm:$0xff] %v6453_v2  ;;  %2514 = vst.msk [vmem:[#allocation5 + $0x10] sm:$0xff] %vm494_vm0, %v2469_v11  ;;  %v7080_v36 = vrot.slane %v6453_v2, 1 }
 0x4c6   : > { %3366 = vrot.lane.b32.xlu0 %v6151_v57, %s4587_s13 }
 0x4c7   : > { %v6462_v16 = vsel %vm963_vm1, %v3088_v49, %v7080_v36 }
 0x4c8   : > { %7353 = vst [vmem:[#allocation78_spill] sm:$0xff] %v6462_v16  ;;  %v2528_v25 = vld [vmem:[#allocation5 + $0x1] sm:$0xff]  ;;  %v2529_v46 = vld [vmem:[#allocation5 + $0x9] sm:$0x7f]  ;;  %v2471_v51 = vpop.permute.xlu1 %2470  ;;  %3368 = vrot.lane.b32.xlu1 %v6155_v26, %s4587_s13 }
 0x4c9   : > { %v2544_v27 = vadd.f32 %v2528_v25, %v6119_v32  ;;  %v2545_v11 = vadd.f32 %v2529_v46, %v6123_v28  ;;  %2515 = vst.msk [vmem:[#allocation5 + $0x18] sm:$0xff] %vm494_vm0, %v2471_v51  ;;  %v6469_v45 = vpop.f32.mrb[104].mxu1 }
 0x4ca   : > { %3370 = vrot.lane.b32.xlu0 %v6179_v37, %s4587_s13  ;;  %v3327_v2 = vpop.f32.mrb[105].mxu1 }
 0x4cb   : > { %2560 = vst.msk [vmem:[#allocation5 + $0x1] sm:$0xff] %vm494_vm0, %v2544_v27  ;;  %v3547_v49 = vrot.slane %v3327_v2, 1  ;;  %v6475_v36 = vpop.f32.mrb[106].mxu1 }
 0x4cc   : > { %2561 = vst.msk [vmem:[#allocation5 + $0x9] sm:$0x7f] %vm903_vm2, %v2545_v11  ;;  %3372 = vrot.lane.b32.xlu1 %v6183_v20, %s4587_s13  ;;  %v2473_v32 = vpop.permute.xlu0 %2472  ;;  %v6479_v28 = vpop.f32.mrb[107].mxu1 }
 0x4cd   : > { %7354 = vst [vmem:[#allocation79_spill] sm:$0xff] %v6479_v28  ;;  %2516 = vst.msk [vmem:[#allocation5 + $0x20] sm:$0xff] %vm494_vm0, %v2473_v32  ;;  %v3548_v46 = vrot.slane %v6479_v28, 1 }
 0x4ce   : > { %v2475_v51 = vpop.permute.xlu1 %2474  ;;  %3374 = vrot.lane.b32.xlu0 %v6207_v41, %s4587_s13 }
 0x4cf   : > { %2517 = vst.msk [vmem:[#allocation5 + $0x28] sm:$0xff] %vm494_vm0, %v2475_v51  ;;  %v6489_v25 = vsel %vm963_vm1, %v3547_v49, %v3548_v46  ;;  %v7355_v51 = vrot.slane %v6125_v23, 1 }
 0x4d0   : > { %v2530_v2 = vld [vmem:[#allocation5 + $0x11] sm:$0xff]  ;;  %v2531_v27 = vld [vmem:[#allocation5 + $0x19] sm:$0x7f]  ;;  %3376 = vrot.lane.b32.xlu1 %v6211_v60, %s4587_s13 }
 0x4d1   : > { %v2546_v11 = vadd.f32 %v2530_v2, %v6135_v63  ;;  %v2547_v32 = vadd.f32 %v2531_v27, %v6139_v31  ;;  %v7356_v27 = vrot.slane %v6141_v52, 1 }
 0x4d2   : > { %3378 = vrot.lane.b32.xlu0 %v6235_v29, %s4587_s13  ;;  %v2576_v41 = vld [vmem:[#allocation5] sm:$0xff] }
 0x4d3   : > { %v2577_v16 = vld [vmem:[#allocation5 + $0x8] sm:$0x7f]  ;;  %2562 = vst.msk [vmem:[#allocation5 + $0x11] sm:$0xff] %vm494_vm0, %v2546_v11  ;;  %v2648_v49 = vadd.f32 %v6133_v4, %v2576_v41 }
 0x4d4   : > { %v2649_v28 = vadd.f32 %v7355_v51, %v2577_v16  ;;  %2563 = vst.msk [vmem:[#allocation5 + $0x19] sm:$0x7f] %vm903_vm2, %v2547_v32  ;;  %3380 = vrot.lane.b32.xlu1 %v6239_v7, %s4587_s13  ;;  %v2477_v63 = vpop.permute.xlu0 %2476 }
 0x4d5   : > { %2518 = vst.msk [vmem:[#allocation5 + $0x30] sm:$0xff] %vm494_vm0, %v2477_v63  ;;  %2664 = vst.msk [vmem:[#allocation5] sm:$0xff] %vm494_vm0, %v2648_v49 }
 0x4d6   : > { %2665 = vst.msk [vmem:[#allocation5 + $0x8] sm:$0x7f] %vm903_vm2, %v2649_v28  ;;  %v2532_v31 = vld [vmem:[#allocation5 + $0x21] sm:$0xff]  ;;  %v2533_v2 = vld [vmem:[#allocation5 + $0x29] sm:$0x7f]  ;;  %v2479_v23 = vpop.permute.xlu1 %2478  ;;  %3382 = vrot.lane.b32.xlu0 %v6263_v54, %s4587_s13 }
 0x4d7   : > { %v2548_v16 = vadd.f32 %v2532_v31, %v6153_v33  ;;  %v2549_v4 = vadd.f32 %v2533_v2, %v6161_v55  ;;  %2519 = vst.msk [vmem:[#allocation5 + $0x38] sm:$0xff] %vm494_vm0, %v2479_v23  ;;  %v7357_v2 = vrot.slane %v6166_v9, 1 }
 0x4d8   : > { %3384 = vrot.lane.b32.xlu1 %v6267_v58, %s4587_s13 }
 0x4d9   : > { %2564 = vst.msk [vmem:[#allocation5 + $0x21] sm:$0xff] %vm494_vm0, %v2548_v16 }
 0x4da   : > { %2565 = vst.msk [vmem:[#allocation5 + $0x29] sm:$0x7f] %vm903_vm2, %v2549_v4  ;;  %3386 = vrot.lane.b32.xlu0 %v6291_v50, %s4587_s13  ;;  %v2578_v28 = vld [vmem:[#allocation5 + $0x10] sm:$0xff] }
 0x4db   : > { %v2579_v41 = vld [vmem:[#allocation5 + $0x18] sm:$0x7f]  ;;  %v2650_v33 = vadd.f32 %v6149_v44, %v2578_v28 }
 0x4dc   : > { %v2651_v11 = vadd.f32 %v7356_v27, %v2579_v41  ;;  %3388 = vrot.lane.b32.xlu1 %v6295_v19, %s4587_s13  ;;  %v2481_v55 = vpop.permute.xlu0 %2480 }
 0x4dd   : > { %2520 = vst.msk [vmem:[#allocation5 + $0x40] sm:$0xff] %vm494_vm0, %v2481_v55  ;;  %2666 = vst.msk [vmem:[#allocation5 + $0x10] sm:$0xff] %vm494_vm0, %v2650_v33 }
 0x4de   : > { %2667 = vst.msk [vmem:[#allocation5 + $0x18] sm:$0x7f] %vm903_vm2, %v2651_v11  ;;  %v2534_v32 = vld [vmem:[#allocation5 + $0x31] sm:$0xff]  ;;  %v2535_v51 = vld [vmem:[#allocation5 + $0x39] sm:$0x7f]  ;;  %v2483_v49 = vpop.permute.xlu1 %2482  ;;  %3390 = vrot.lane.b32.xlu0 %v6319_v3, %s4587_s13  ;;  %v7358_v11 = vrot.slane %v6194_v40, 1 }
 0x4df   : > { %v2550_v52 = vadd.f32 %v2534_v32, %v6181_v15  ;;  %v2551_v44 = vadd.f32 %v2535_v51, %v6189_v21  ;;  %2521 = vst.msk [vmem:[#allocation5 + $0x48] sm:$0xff] %vm494_vm0, %v2483_v49 }
 0x4e0   : > { %3392 = vrot.lane.b32.xlu1 %v6323_v24, %s4587_s13  ;;  %v2580_v31 = vld [vmem:[#allocation5 + $0x20] sm:$0xff] }
 0x4e1   : > { %v2581_v63 = vld [vmem:[#allocation5 + $0x28] sm:$0x7f]  ;;  %2566 = vst.msk [vmem:[#allocation5 + $0x31] sm:$0xff] %vm494_vm0, %v2550_v52  ;;  %v2652_v16 = vadd.f32 %v6177_v13, %v2580_v31 }
 0x4e2   : > { %v2653_v23 = vadd.f32 %v7357_v2, %v2581_v63  ;;  %2567 = vst.msk [vmem:[#allocation5 + $0x39] sm:$0x7f] %vm903_vm2, %v2551_v44  ;;  %3394 = vrot.lane.b32.xlu0 %v6469_v45, %s4587_s13 }
 0x4e3   : > { %2668 = vst.msk [vmem:[#allocation5 + $0x20] sm:$0xff] %vm494_vm0, %v2652_v16 }
 0x4e4   : > { %2669 = vst.msk [vmem:[#allocation5 + $0x28] sm:$0x7f] %vm903_vm2, %v2653_v23  ;;  %3396 = vrot.lane.b32.xlu1 %v6475_v36, %s4587_s13  ;;  %v2485_v15 = vpop.permute.xlu0 %2484 }
 0x4e5   : > { %2522 = vst.msk [vmem:[#allocation5 + $0x50] sm:$0xff] %vm494_vm0, %v2485_v15 }
 0x4e6   : > { %v2536_v9 = vld [vmem:[#allocation5 + $0x41] sm:$0xff]  ;;  %v2537_v21 = vld [vmem:[#allocation5 + $0x49] sm:$0x7f]  ;;  %v2487_v4 = vpop.permute.xlu1 %2486 }
 0x4e7   : > { %v2552_v41 = vadd.f32 %v2536_v9, %v6209_v43  ;;  %v2553_v13 = vadd.f32 %v2537_v21, %v6217_v22  ;;  %2523 = vst.msk [vmem:[#allocation5 + $0x58] sm:$0xff] %vm494_vm0, %v2487_v4 }
 0x4e8   : > { %v2582_v27 = vld [vmem:[#allocation5 + $0x30] sm:$0xff] }
 0x4e9   : > { %v2583_v28 = vld [vmem:[#allocation5 + $0x38] sm:$0x7f]  ;;  %2568 = vst.msk [vmem:[#allocation5 + $0x41] sm:$0xff] %vm494_vm0, %v2552_v41  ;;  %v2654_v55 = vadd.f32 %v6205_v14, %v2582_v27  ;;  %v7359_v14 = vrot.slane %v6222_v39, 1  ;;  %v2876_v27 = vld [vmem:[#allocation5 + $0x8] sm:$0xff] }
 0x4ea   : > { %v2655_v33 = vadd.f32 %v7358_v11, %v2583_v28  ;;  %2569 = vst.msk [vmem:[#allocation5 + $0x49] sm:$0x7f] %vm903_vm2, %v2553_v13 }
 0x4eb   : > { %2670 = vst.msk [vmem:[#allocation5 + $0x30] sm:$0xff] %vm494_vm0, %v2654_v55 }
 0x4ec   : > { %2671 = vst.msk [vmem:[#allocation5 + $0x38] sm:$0x7f] %vm903_vm2, %v2655_v33  ;;  %v2489_v43 = vpop.permute.xlu0 %2488 }
 0x4ed   : > { %2524 = vst.msk [vmem:[#allocation5 + $0x60] sm:$0xff] %vm494_vm0, %v2489_v43 }
 0x4ee   : > { %v2538_v22 = vld [vmem:[#allocation5 + $0x51] sm:$0xff]  ;;  %v2539_v32 = vld [vmem:[#allocation5 + $0x59] sm:$0x7f]  ;;  %v2491_v51 = vpop.permute.xlu1 %2490 }
 0x4ef   : > { %v2554_v49 = vadd.f32 %v2538_v22, %v6237_v34  ;;  %v2555_v40 = vadd.f32 %v2539_v32, %v6245_v56  ;;  %2525 = vst.msk [vmem:[#allocation5 + $0x68] sm:$0xff] %vm494_vm0, %v2491_v51  ;;  %v7361_v22 = vrot.slane %v6278_v17, 1 }
 0x4f0   : > { %v2584_v44 = vld [vmem:[#allocation5 + $0x40] sm:$0xff] }
 0x4f1   : > { %v2585_v52 = vld [vmem:[#allocation5 + $0x48] sm:$0x7f]  ;;  %2570 = vst.msk [vmem:[#allocation5 + $0x51] sm:$0xff] %vm494_vm0, %v2554_v49  ;;  %v2656_v31 = vadd.f32 %v6233_v48, %v2584_v44  ;;  %v7360_v48 = vrot.slane %v6250_v61, 1 }
 0x4f2   : > { %v2657_v63 = vadd.f32 %v7359_v14, %v2585_v52  ;;  %2571 = vst.msk [vmem:[#allocation5 + $0x59] sm:$0x7f] %vm903_vm2, %v2555_v40  ;;  %v2878_v40 = vld [vmem:[#allocation5 + $0x18] sm:$0xff] }
 0x4f3   : > { %2672 = vst.msk [vmem:[#allocation5 + $0x40] sm:$0xff] %vm494_vm0, %v2656_v31  ;;  %v7362_v31 = vrot.slane %v6306_v10, 1 }
 0x4f4   : > { %2673 = vst.msk [vmem:[#allocation5 + $0x48] sm:$0x7f] %vm903_vm2, %v2657_v63  ;;  %v2493_v34 = vpop.permute.xlu0 %2492 }
 0x4f5   : > { %2526 = vst.msk [vmem:[#allocation5 + $0x70] sm:$0xff] %vm494_vm0, %v2493_v34 }
 0x4f6   : > { %v2540_v56 = vld [vmem:[#allocation5 + $0x61] sm:$0xff]  ;;  %v2541_v2 = vld [vmem:[#allocation5 + $0x69] sm:$0x7f]  ;;  %v2495_v23 = vpop.permute.xlu1 %2494 }
 0x4f7   : > { %v2556_v16 = vadd.f32 %v2540_v56, %v6265_v6  ;;  %v2557_v39 = vadd.f32 %v2541_v2, %v6273_v5  ;;  %2527 = vst.msk [vmem:[#allocation5 + $0x78] sm:$0xff] %vm494_vm0, %v2495_v23  ;;  %v2875_v6 = vld [vmem:[#allocation5] sm:$0xff] }
 0x4f8   : > { %v2586_v9 = vld [vmem:[#allocation5 + $0x50] sm:$0xff] }
 0x4f9   : > { %v2587_v15 = vld [vmem:[#allocation5 + $0x58] sm:$0x7f]  ;;  %2572 = vst.msk [vmem:[#allocation5 + $0x61] sm:$0xff] %vm494_vm0, %v2556_v16  ;;  %v2658_v4 = vadd.f32 %v6261_v59, %v2586_v9  ;;  %v2879_v16 = vld [vmem:[#allocation5 + $0x20] sm:$0xff] }
 0x4fa   : > { %v2659_v21 = vadd.f32 %v7360_v48, %v2587_v15  ;;  %2573 = vst.msk [vmem:[#allocation5 + $0x69] sm:$0x7f] %vm903_vm2, %v2557_v39  ;;  %v2880_v15 = vld [vmem:[#allocation5 + $0x28] sm:$0xff] }
 0x4fb   : > { %2674 = vst.msk [vmem:[#allocation5 + $0x50] sm:$0xff] %vm494_vm0, %v2658_v4 }
 0x4fc   : > { %2675 = vst.msk [vmem:[#allocation5 + $0x58] sm:$0x7f] %vm903_vm2, %v2659_v21  ;;  %v2908_v41 = vpop.permute.xlu0 %2907 }
 0x4fd   : > { %v2955_v5 = vadd.f32 %v2908_v41, %v2875_v6  ;;  %v2881_v41 = vld [vmem:[#allocation5 + $0x30] sm:$0xff] }
 0x4fe   : > { %v2542_v13 = vld [vmem:[#allocation5 + $0x71] sm:$0xff]  ;;  %v2543_v28 = vld [vmem:[#allocation5 + $0x79] sm:$0x7f]  ;;  %v2910_v11 = vpop.permute.xlu1 %2909 }
 0x4ff   : > { %v2558_v61 = vadd.f32 %v2542_v13, %v6293_v38  ;;  %v2559_v33 = vadd.f32 %v2543_v28, %v6301_v42  ;;  %2971 = vst.msk [vmem:[#allocation5] sm:$0xff] %vm494_vm0, %v2955_v5  ;;  %v2956_v55 = vadd.f32 %v2910_v11, %v2876_v27  ;;  %v2877_v38 = vld [vmem:[#allocation5 + $0x10] sm:$0xff]  ;;  %v7363_v28 = vrot.slane %v6334_v53, 1 }
 0x500   : > { %v2588_v59 = vld [vmem:[#allocation5 + $0x60] sm:$0xff] }
 0x501   : > { %v2589_v43 = vld [vmem:[#allocation5 + $0x68] sm:$0x7f]  ;;  %2574 = vst.msk [vmem:[#allocation5 + $0x71] sm:$0xff] %vm494_vm0, %v2558_v61  ;;  %2972 = vst.msk [vmem:[#allocation5 + $0x8] sm:$0xff] %vm494_vm0, %v2956_v55  ;;  %v2660_v51 = vadd.f32 %v6289_v47, %v2588_v59  ;;  %v2882_v61 = vld [vmem:[#allocation5 + $0x38] sm:$0xff] }
 0x502   : > { %v2661_v32 = vadd.f32 %v7361_v22, %v2589_v43  ;;  %2575 = vst.msk [vmem:[#allocation5 + $0x79] sm:$0x7f] %vm903_vm2, %v2559_v33  ;;  %v7364_v22 = vld [vmem:[#allocation47_spill] sm:$0xff] }
 0x503   : > { %2676 = vst.msk [vmem:[#allocation5 + $0x60] sm:$0xff] %vm494_vm0, %v2660_v51  ;;  %v7365_v51 = vld [vmem:[#allocation64_spill] sm:$0xff] }
 0x504   : > { %2677 = vst.msk [vmem:[#allocation5 + $0x68] sm:$0x7f] %vm903_vm2, %v2661_v32  ;;  %v2912_v42 = vpop.permute.xlu0 %2911 }
 0x505   : > { %v2957_v49 = vadd.f32 %v2912_v42, %v2877_v38  ;;  %v7366_v38 = vrot.slane %v7365_v51, 1 }
 0x506   : > { %v2914_v52 = vpop.permute.xlu1 %2913 }
 0x507   : > { %2973 = vst.msk [vmem:[#allocation5 + $0x10] sm:$0xff] %vm494_vm0, %v2957_v49  ;;  %v2958_v17 = vadd.f32 %v2914_v52, %v2878_v40  ;;  %v2883_v49 = vld [vmem:[#allocation5 + $0x40] sm:$0xff] }
 0x508   : > { %v2988_v14 = vld [vmem:[#allocation5 + $0x9] sm:$0x7f]  ;;  %v2590_v63 = vld [vmem:[#allocation5 + $0x70] sm:$0xff]  ;;  %v2987_v2 = vld [vmem:[#allocation5 + $0x1] sm:$0xff] }
 0x509   : > { %v2591_v44 = vld [vmem:[#allocation5 + $0x78] sm:$0x7f]  ;;  %v3004_v47 = vadd.f32 %v2988_v14, %v6329_v1  ;;  %2974 = vst.msk [vmem:[#allocation5 + $0x18] sm:$0xff] %vm494_vm0, %v2958_v17  ;;  %v2662_v56 = vadd.f32 %v6317_v30, %v2590_v63  ;;  %v3003_v23 = vadd.f32 %v2987_v2, %v6321_v0  ;;  %v7367_v63 = vld [vmem:[#allocation44_spill] sm:$0xff] }
 0x50a   : > { %v2663_v34 = vadd.f32 %v7362_v31, %v2591_v44 }
 0x50b   : > { %3020 = vst.msk [vmem:[#allocation5 + $0x9] sm:$0x7f] %vm903_vm2, %v3004_v47 }
 0x50c   : > { %2679 = vst.msk [vmem:[#allocation5 + $0x78] sm:$0x7f] %vm903_vm2, %v2663_v34  ;;  %v2916_v39 = vpop.permute.xlu0 %2915  ;;  %v7368_v34 = vld [vmem:[#allocation41_spill] sm:$0xff] }
 0x50d   : > { %2678 = vst.msk [vmem:[#allocation5 + $0x70] sm:$0xff] %vm494_vm0, %v2662_v56  ;;  %3019 = vst.msk [vmem:[#allocation5 + $0x1] sm:$0xff] %vm494_vm0, %v3003_v23  ;;  %v2959_v10 = vadd.f32 %v2916_v39, %v2879_v16  ;;  %v7369_v23 = vld [vmem:[#allocation42_spill] sm:$0xff]  ;;  %v7370_v39 = vld [vmem:[#allocation45_spill] sm:$0xff] }
 0x50e   : > { %v2918_v1 = vpop.permute.xlu1 %2917 }
 0x50f   : > { %2975 = vst.msk [vmem:[#allocation5 + $0x20] sm:$0xff] %vm494_vm0, %v2959_v10  ;;  %v2960_v9 = vadd.f32 %v2918_v1, %v2880_v15  ;;  %v7371_v10 = vrot.slane %v7370_v39, 1  ;;  %v2885_v1 = vld [vmem:[#allocation5 + $0x50] sm:$0xff] }
 0x510   : > { %v2990_v30 = vld [vmem:[#allocation5 + $0x19] sm:$0x7f]  ;;  %v2989_v48 = vld [vmem:[#allocation5 + $0x11] sm:$0xff] }
 0x511   : > { %v3006_v0 = vadd.f32 %v2990_v30, %v6351_v18  ;;  %2976 = vst.msk [vmem:[#allocation5 + $0x28] sm:$0xff] %vm494_vm0, %v2960_v9  ;;  %v3005_v21 = vadd.f32 %v2989_v48, %v6347_v12  ;;  %v2886_v48 = vld [vmem:[#allocation5 + $0x58] sm:$0xff] }
 0x513   : > { %3022 = vst.msk [vmem:[#allocation5 + $0x19] sm:$0x7f] %vm903_vm2, %v3006_v0 }
 0x514   : > { %v3035_v4 = vld [vmem:[#allocation5] sm:$0xff]  ;;  %v3036_v6 = vld [vmem:[#allocation5 + $0x8] sm:$0x7f]  ;;  %3021 = vst.msk [vmem:[#allocation5 + $0x11] sm:$0xff] %vm494_vm0, %v3005_v21  ;;  %v2920_v5 = vpop.permute.xlu0 %2919 }
 0x515   : > { %v3107_v13 = vadd.f32 %v6345_v62, %v3035_v4  ;;  %v3108_v27 = vadd.f32 %v7363_v28, %v3036_v6  ;;  %v2961_v11 = vadd.f32 %v2920_v5, %v2881_v41  ;;  %v7372_v41 = vld [vmem:[#allocation51_spill] sm:$0xff] }
 0x516   : > { %v2922_v18 = vpop.permute.xlu1 %2921 }
 0x517   : > { %3123 = vst.msk [vmem:[#allocation5] sm:$0xff] %vm494_vm0, %v3107_v13  ;;  %2977 = vst.msk [vmem:[#allocation5 + $0x30] sm:$0xff] %vm494_vm0, %v2961_v11  ;;  %v2962_v12 = vadd.f32 %v2922_v18, %v2882_v61  ;;  %v7373_v13 = vld [vmem:[#allocation53_spill] sm:$0xff]  ;;  %v7374_v61 = vld [vmem:[#allocation55_spill] sm:$0xff] }
 0x518   : > { %3124 = vst.msk [vmem:[#allocation5 + $0x8] sm:$0x7f] %vm903_vm2, %v3108_v27  ;;  %v2992_v33 = vld [vmem:[#allocation5 + $0x29] sm:$0x7f]  ;;  %v2991_v55 = vld [vmem:[#allocation5 + $0x21] sm:$0xff] }
 0x519   : > { %v3008_v43 = vadd.f32 %v2992_v33, %v6367_v35  ;;  %2978 = vst.msk [vmem:[#allocation5 + $0x38] sm:$0xff] %vm494_vm0, %v2962_v12  ;;  %v3007_v62 = vadd.f32 %v2991_v55, %v6363_v8  ;;  %v2884_v35 = vld [vmem:[#allocation5 + $0x48] sm:$0xff] }
 0x51a   : > { %v7375_v12 = vld [vmem:[#allocation43_spill] sm:$0xff] }
 0x51b   : > { %v3037_v53 = vld [vmem:[#allocation5 + $0x10] sm:$0xff]  ;;  %v3038_v59 = vld [vmem:[#allocation5 + $0x18] sm:$0x7f]  ;;  %3024 = vst.msk [vmem:[#allocation5 + $0x29] sm:$0x7f] %vm903_vm2, %v3008_v43  ;;  %v7376_v33 = vrot.slane %v7375_v12, 1 }
 0x51c   : > { %v3109_v32 = vadd.f32 %v7364_v22, %v3037_v53  ;;  %v3110_v42 = vadd.f32 %v7366_v38, %v3038_v59  ;;  %3023 = vst.msk [vmem:[#allocation5 + $0x21] sm:$0xff] %vm494_vm0, %v3007_v62  ;;  %v2924_v40 = vpop.permute.xlu0 %2923  ;;  %v2887_v43 = vld [vmem:[#allocation5 + $0x60] sm:$0xff]  ;;  %v2888_v59 = vld [vmem:[#allocation5 + $0x68] sm:$0xff] }
 0x51d   : > { %v2963_v52 = vadd.f32 %v2924_v40, %v2883_v49  ;;  %v7378_v40 = vld [vmem:[#allocation67_spill] sm:$0xff] }
 0x51e   : > { %3125 = vst.msk [vmem:[#allocation5 + $0x10] sm:$0xff] %vm494_vm0, %v3109_v32  ;;  %v2926_v8 = vpop.permute.xlu1 %2925 }
 0x51f   : > { %3126 = vst.msk [vmem:[#allocation5 + $0x18] sm:$0x7f] %vm903_vm2, %v3110_v42  ;;  %v2964_v17 = vadd.f32 %v2926_v8, %v2884_v35  ;;  %v7377_v42 = vld [vmem:[#allocation62_spill] sm:$0xff] }
 0x520   : > { %2979 = vst.msk [vmem:[#allocation5 + $0x40] sm:$0xff] %vm494_vm0, %v2963_v52  ;;  %v2994_v44 = vld [vmem:[#allocation5 + $0x39] sm:$0x7f]  ;;  %v2993_v14 = vld [vmem:[#allocation5 + $0x31] sm:$0xff] }
 0x521   : > { %v3010_v31 = vadd.f32 %v2994_v44, %v7367_v63  ;;  %2980 = vst.msk [vmem:[#allocation5 + $0x48] sm:$0xff] %vm494_vm0, %v2964_v17  ;;  %v3009_v47 = vadd.f32 %v2993_v14, %v7368_v34  ;;  %v7379_v17 = vld [vmem:[#allocation65_spill] sm:$0xff]  ;;  %v7380_v14 = vld [vmem:[#allocation48_spill] sm:$0xff] }
 0x522   : > { %v7381_v63 = vrot.slane %v7380_v14, 1 }
 0x523   : > { %v3039_v56 = vld [vmem:[#allocation5 + $0x20] sm:$0xff]  ;;  %v3040_v2 = vld [vmem:[#allocation5 + $0x28] sm:$0x7f]  ;;  %3026 = vst.msk [vmem:[#allocation5 + $0x39] sm:$0x7f] %vm903_vm2, %v3010_v31 }
 0x524   : > { %v3111_v16 = vadd.f32 %v7369_v23, %v3039_v56  ;;  %v3112_v15 = vadd.f32 %v7371_v10, %v3040_v2  ;;  %3025 = vst.msk [vmem:[#allocation5 + $0x31] sm:$0xff] %vm494_vm0, %v3009_v47  ;;  %v2928_v9 = vpop.permute.xlu0 %2927  ;;  %v2889_v47 = vld [vmem:[#allocation5 + $0x70] sm:$0xff]  ;;  %v2890_v23 = vld [vmem:[#allocation5 + $0x78] sm:$0xff]  ;;  %v3334_v10 = vld [vmem:[#allocation5] sm:$0xff] }
 0x525   : > { %v2965_v30 = vadd.f32 %v2928_v9, %v2885_v1  ;;  %v7382_v9 = vld [vmem:[#allocation58_spill] sm:$0xff]  ;;  %v3336_v12 = vld [vmem:[#allocation5 + $0x10] sm:$0xff] }
 0x526   : > { %3127 = vst.msk [vmem:[#allocation5 + $0x20] sm:$0xff] %vm494_vm0, %v3111_v16  ;;  %v2930_v0 = vpop.permute.xlu1 %2929 }
 0x527   : > { %3128 = vst.msk [vmem:[#allocation5 + $0x28] sm:$0x7f] %vm903_vm2, %v3112_v15  ;;  %v2966_v21 = vadd.f32 %v2930_v0, %v2886_v48  ;;  %v7383_v0 = vld [vmem:[#allocation60_spill] sm:$0xff] }
 0x528   : > { %2981 = vst.msk [vmem:[#allocation5 + $0x50] sm:$0xff] %vm494_vm0, %v2965_v30  ;;  %v2996_v4 = vld [vmem:[#allocation5 + $0x49] sm:$0x7f]  ;;  %v2995_v6 = vld [vmem:[#allocation5 + $0x41] sm:$0xff] }
 0x529   : > { %v3012_v5 = vadd.f32 %v2996_v4, %v7372_v41  ;;  %2982 = vst.msk [vmem:[#allocation5 + $0x58] sm:$0xff] %vm494_vm0, %v2966_v21  ;;  %v3011_v28 = vadd.f32 %v2995_v6, %v7373_v13  ;;  %v3335_v4 = vld [vmem:[#allocation5 + $0x8] sm:$0xff] }
 0x52b   : > { %v3041_v27 = vld [vmem:[#allocation5 + $0x30] sm:$0xff]  ;;  %v3042_v11 = vld [vmem:[#allocation5 + $0x38] sm:$0x7f]  ;;  %3028 = vst.msk [vmem:[#allocation5 + $0x49] sm:$0x7f] %vm903_vm2, %v3012_v5 }
 0x52c   : > { %v3113_v18 = vadd.f32 %v7374_v61, %v3041_v27  ;;  %v3114_v55 = vadd.f32 %v7376_v33, %v3042_v11  ;;  %3027 = vst.msk [vmem:[#allocation5 + $0x41] sm:$0xff] %vm494_vm0, %v3011_v28  ;;  %v2932_v62 = vpop.permute.xlu0 %2931  ;;  %v7384_v28 = vld [vmem:[#allocation71_spill] sm:$0xff]  ;;  %v7385_v11 = vld [vmem:[#allocation70_spill] sm:$0xff] }
 0x52d   : > { %v2967_v53 = vadd.f32 %v2932_v62, %v2887_v43  ;;  %v7386_v61 = vrot.slane %v7385_v11, 1  ;;  %v3337_v43 = vld [vmem:[#allocation5 + $0x18] sm:$0xff] }
 0x52e   : > { %3129 = vst.msk [vmem:[#allocation5 + $0x30] sm:$0xff] %vm494_vm0, %v3113_v18  ;;  %v2934_v22 = vpop.permute.xlu1 %2933 }
 0x52f   : > { %3130 = vst.msk [vmem:[#allocation5 + $0x38] sm:$0x7f] %vm903_vm2, %v3114_v55  ;;  %v2968_v32 = vadd.f32 %v2934_v22, %v2888_v59  ;;  %v3338_v22 = vld [vmem:[#allocation5 + $0x20] sm:$0xff] }
 0x530   : > { %2983 = vst.msk [vmem:[#allocation5 + $0x60] sm:$0xff] %vm494_vm0, %v2967_v53  ;;  %v2998_v51 = vld [vmem:[#allocation5 + $0x59] sm:$0x7f]  ;;  %v2997_v38 = vld [vmem:[#allocation5 + $0x51] sm:$0xff] }
 0x531   : > { %v3014_v49 = vadd.f32 %v2998_v51, %v7377_v42  ;;  %2984 = vst.msk [vmem:[#allocation5 + $0x68] sm:$0xff] %vm494_vm0, %v2968_v32  ;;  %v3013_v52 = vadd.f32 %v2997_v38, %v7378_v40  ;;  %v7387_v38 = vld [vmem:[#allocation69_spill] sm:$0xff]  ;;  %v7388_v40 = vld [vmem:[#allocation75_spill] sm:$0xff] }
 0x533   : > { %v3043_v35 = vld [vmem:[#allocation5 + $0x40] sm:$0xff]  ;;  %v3044_v8 = vld [vmem:[#allocation5 + $0x48] sm:$0x7f]  ;;  %3030 = vst.msk [vmem:[#allocation5 + $0x59] sm:$0x7f] %vm903_vm2, %v3014_v49 }
 0x534   : > { %v3115_v44 = vadd.f32 %v7379_v17, %v3043_v35  ;;  %v3116_v31 = vadd.f32 %v7381_v63, %v3044_v8  ;;  %3029 = vst.msk [vmem:[#allocation5 + $0x51] sm:$0xff] %vm494_vm0, %v3013_v52  ;;  %v2936_v34 = vpop.permute.xlu0 %2935  ;;  %v3339_v35 = vld [vmem:[#allocation5 + $0x28] sm:$0xff]  ;;  %v7389_v63 = vld [vmem:[#allocation74_spill] sm:$0xff] }
 0x535   : > { %v2969_v56 = vadd.f32 %v2936_v34, %v2889_v47  ;;  %v7390_v34 = vld [vmem:[#allocation56_spill] sm:$0xff] }
 0x536   : > { %3131 = vst.msk [vmem:[#allocation5 + $0x40] sm:$0xff] %vm494_vm0, %v3115_v44  ;;  %v2938_v2 = vpop.permute.xlu1 %2937  ;;  %v7391_v47 = vrot.slane %v7390_v34, 1 }
 0x537   : > { %3132 = vst.msk [vmem:[#allocation5 + $0x48] sm:$0x7f] %vm903_vm2, %v3116_v31  ;;  %v2970_v16 = vadd.f32 %v2938_v2, %v2890_v23 }
 0x538   : > { %2985 = vst.msk [vmem:[#allocation5 + $0x70] sm:$0xff] %vm494_vm0, %v2969_v56  ;;  %v3000_v39 = vld [vmem:[#allocation5 + $0x69] sm:$0x7f]  ;;  %v3367_v15 = vpop.permute.xlu0 %3366  ;;  %v2999_v1 = vld [vmem:[#allocation5 + $0x61] sm:$0xff] }
 0x539   : > { %v3016_v30 = vadd.f32 %v3000_v39, %v7382_v9  ;;  %2986 = vst.msk [vmem:[#allocation5 + $0x78] sm:$0xff] %vm494_vm0, %v2970_v16  ;;  %v3414_v48 = vadd.f32 %v3367_v15, %v3334_v10  ;;  %v3015_v21 = vadd.f32 %v2999_v1, %v7383_v0  ;;  %v3340_v16 = vld [vmem:[#allocation5 + $0x30] sm:$0xff]  ;;  %v3341_v9 = vld [vmem:[#allocation5 + $0x38] sm:$0xff] }
 0x53a   : > { %v3369_v6 = vpop.permute.xlu1 %3368 }
 0x53b   : > { %v3045_v41 = vld [vmem:[#allocation5 + $0x50] sm:$0xff]  ;;  %v3046_v5 = vld [vmem:[#allocation5 + $0x58] sm:$0x7f]  ;;  %3032 = vst.msk [vmem:[#allocation5 + $0x69] sm:$0x7f] %vm903_vm2, %v3016_v30  ;;  %v3415_v13 = vadd.f32 %v3369_v6, %v3335_v4 }
 0x53c   : > { %3430 = vst.msk [vmem:[#allocation5] sm:$0xff] %vm494_vm0, %v3414_v48  ;;  %v3117_v27 = vadd.f32 %v7384_v28, %v3045_v41  ;;  %v3118_v18 = vadd.f32 %v7386_v61, %v3046_v5  ;;  %3031 = vst.msk [vmem:[#allocation5 + $0x61] sm:$0xff] %vm494_vm0, %v3015_v21  ;;  %v3371_v33 = vpop.permute.xlu0 %3370  ;;  %v7392_v61 = vld [vmem:[#allocation78_spill] sm:$0xff] }
 0x53d   : > { %3431 = vst.msk [vmem:[#allocation5 + $0x8] sm:$0xff] %vm494_vm0, %v3415_v13  ;;  %v3416_v55 = vadd.f32 %v3371_v33, %v3336_v12  ;;  %v3342_v21 = vld [vmem:[#allocation5 + $0x40] sm:$0xff]  ;;  %v7393_v12 = vld [vmem:[#allocation68_spill] sm:$0xff] }
 0x53e   : > { %3133 = vst.msk [vmem:[#allocation5 + $0x50] sm:$0xff] %vm494_vm0, %v3117_v27  ;;  %v3373_v62 = vpop.permute.xlu1 %3372  ;;  %v3343_v5 = vld [vmem:[#allocation5 + $0x48] sm:$0xff] }
 0x53f   : > { %3134 = vst.msk [vmem:[#allocation5 + $0x58] sm:$0x7f] %vm903_vm2, %v3118_v18  ;;  %v3417_v53 = vadd.f32 %v3373_v62, %v3337_v43 }
 0x540   : > { %3432 = vst.msk [vmem:[#allocation5 + $0x10] sm:$0xff] %vm494_vm0, %v3416_v55  ;;  %v3002_v59 = vld [vmem:[#allocation5 + $0x79] sm:$0x7f]  ;;  %v3375_v32 = vpop.permute.xlu0 %3374  ;;  %v3001_v51 = vld [vmem:[#allocation5 + $0x71] sm:$0xff] }
 0x541   : > { %v3018_v42 = vadd.f32 %v3002_v59, %v7387_v38  ;;  %3433 = vst.msk [vmem:[#allocation5 + $0x18] sm:$0xff] %vm494_vm0, %v3417_v53  ;;  %v3418_v49 = vadd.f32 %v3375_v32, %v3338_v22  ;;  %v3017_v52 = vadd.f32 %v3001_v51, %v7388_v40  ;;  %v7395_v53 = vld [vmem:[#allocation46_spill] sm:$0xff] }
 0x542   : > { %v3377_v8 = vpop.permute.xlu1 %3376  ;;  %v7396_v40 = vld [vmem:[#allocation50_spill] sm:$0xff] }
 0x543   : > { %v3047_v17 = vld [vmem:[#allocation5 + $0x60] sm:$0xff]  ;;  %v3048_v44 = vld [vmem:[#allocation5 + $0x68] sm:$0x7f]  ;;  %3034 = vst.msk [vmem:[#allocation5 + $0x79] sm:$0x7f] %vm903_vm2, %v3018_v42  ;;  %v3419_v14 = vadd.f32 %v3377_v8, %v3339_v35  ;;  %v7397_v35 = vld [vmem:[#allocation37_spill] sm:$0xff] }
 0x544   : > { %3434 = vst.msk [vmem:[#allocation5 + $0x20] sm:$0xff] %vm494_vm0, %v3418_v49  ;;  %v3119_v31 = vadd.f32 %v7389_v63, %v3047_v17  ;;  %v3120_v56 = vadd.f32 %v7391_v47, %v3048_v44  ;;  %3033 = vst.msk [vmem:[#allocation5 + $0x71] sm:$0xff] %vm494_vm0, %v3017_v52  ;;  %v3446_v2 = vld [vmem:[#allocation5 + $0x1] sm:$0xff]  ;;  %v3447_v23 = vld [vmem:[#allocation5 + $0x9] sm:$0x7f]  ;;  %v3379_v39 = vpop.permute.xlu0 %3378  ;;  %v7398_v8 = vrot.slane %v7397_v35, 1 }
 0x545   : > { %v3462_v10 = vadd.f32 %v3446_v2, %v6151_v57  ;;  %v3463_v15 = vadd.f32 %v3447_v23, %v6155_v26  ;;  %3435 = vst.msk [vmem:[#allocation5 + $0x28] sm:$0xff] %vm494_vm0, %v3419_v14  ;;  %v3420_v1 = vadd.f32 %v3379_v39, %v3340_v16  ;;  %v3344_v43 = vld [vmem:[#allocation5 + $0x50] sm:$0xff] }
 0x546   : > { %3135 = vst.msk [vmem:[#allocation5 + $0x60] sm:$0xff] %vm494_vm0, %v3119_v31  ;;  %v3381_v30 = vpop.permute.xlu1 %3380  ;;  %v3345_v42 = vld [vmem:[#allocation5 + $0x58] sm:$0xff] }
 0x547   : > { %3136 = vst.msk [vmem:[#allocation5 + $0x68] sm:$0x7f] %vm903_vm2, %v3120_v56  ;;  %3479 = vst.msk [vmem:[#allocation5 + $0x9] sm:$0x7f] %vm903_vm2, %v3463_v15  ;;  %v3421_v48 = vadd.f32 %v3381_v30, %v3341_v9 }
 0x548   : > { %3478 = vst.msk [vmem:[#allocation5 + $0x1] sm:$0xff] %vm494_vm0, %v3462_v10  ;;  %3436 = vst.msk [vmem:[#allocation5 + $0x30] sm:$0xff] %vm494_vm0, %v3420_v1  ;;  %v3448_v0 = vld [vmem:[#allocation5 + $0x11] sm:$0xff]  ;;  %v3449_v57 = vld [vmem:[#allocation5 + $0x19] sm:$0x7f]  ;;  %v3383_v26 = vpop.permute.xlu0 %3382 }
 0x549   : > { %v3464_v4 = vadd.f32 %v3448_v0, %v6179_v37  ;;  %v3465_v6 = vadd.f32 %v3449_v57, %v6183_v20  ;;  %3437 = vst.msk [vmem:[#allocation5 + $0x38] sm:$0xff] %vm494_vm0, %v3421_v48  ;;  %v3422_v41 = vadd.f32 %v3383_v26, %v3342_v21  ;;  %v7394_v37 = vrot.slane %v7393_v12, 1  ;;  %v7399_v10 = vld [vmem:[#allocation36_spill] sm:$0xff]  ;;  %v7404_v12 = vld [vmem:[#allocation49_spill] sm:$0xff] }
 0x54a   : > { %v3385_v13 = vpop.permute.xlu1 %3384  ;;  %v7400_v1 = vld [vmem:[#allocation52_spill] sm:$0xff] }
 0x54b   : > { %v3049_v28 = vld [vmem:[#allocation5 + $0x70] sm:$0xff]  ;;  %v3050_v27 = vld [vmem:[#allocation5 + $0x78] sm:$0x7f]  ;;  %3480 = vst.msk [vmem:[#allocation5 + $0x11] sm:$0xff] %vm494_vm0, %v3464_v4  ;;  %3438 = vst.msk [vmem:[#allocation5 + $0x40] sm:$0xff] %vm494_vm0, %v3422_v41  ;;  %v3423_v11 = vadd.f32 %v3385_v13, %v3343_v5  ;;  %v7401_v9 = vrot.slane %v7400_v1, 1 }
 0x54c   : > { %3481 = vst.msk [vmem:[#allocation5 + $0x19] sm:$0x7f] %vm903_vm2, %v3465_v6  ;;  %v3121_v18 = vadd.f32 %v7392_v61, %v3049_v28  ;;  %v3122_v33 = vadd.f32 %v7394_v37, %v3050_v27  ;;  %v3450_v20 = vld [vmem:[#allocation5 + $0x21] sm:$0xff]  ;;  %v3451_v55 = vld [vmem:[#allocation5 + $0x29] sm:$0x7f]  ;;  %v3387_v62 = vpop.permute.xlu0 %3386  ;;  %v7405_v37 = vrot.slane %v7404_v12, 1 }
 0x54d   : > { %v3466_v59 = vadd.f32 %v3450_v20, %v7395_v53  ;;  %v3467_v22 = vadd.f32 %v3451_v55, %v6211_v60  ;;  %3439 = vst.msk [vmem:[#allocation5 + $0x48] sm:$0xff] %vm494_vm0, %v3423_v11  ;;  %v3424_v32 = vadd.f32 %v3387_v62, %v3344_v43  ;;  %v3346_v63 = vld [vmem:[#allocation5 + $0x60] sm:$0xff]  ;;  %v6719_v21 = vld [vmem:[%s7402_s1] ss:$0 sm:$0xff]  ;;  %v3638_v11 = vld [vmem:[%s5041_s3 + $0x8] sm:$0xff] }
 0x54e   : > { %3137 = vst.msk [vmem:[#allocation5 + $0x70] sm:$0xff] %vm494_vm0, %v3121_v18  ;;  %v3389_v49 = vpop.permute.xlu1 %3388  ;;  %v3347_v16 = vld [vmem:[#allocation5 + $0x68] sm:$0xff]  ;;  %v3637_v27 = vld [vmem:[%s5041_s3] sm:$0xff] }
 0x54f   : > { %3138 = vst.msk [vmem:[#allocation5 + $0x78] sm:$0x7f] %vm903_vm2, %v3122_v33  ;;  %v3494_v51 = vld [vmem:[#allocation5] sm:$0xff]  ;;  %v3495_v38 = vld [vmem:[#allocation5 + $0x8] sm:$0x7f]  ;;  %v3425_v60 = vadd.f32 %v3389_v49, %v3345_v42  ;;  %v3639_v49 = vld [vmem:[%s5041_s3 + $0x10] sm:$0xff] }
 0x550   : > { %v3566_v52 = vadd.f32 %v7396_v40, %v3494_v51  ;;  %v3567_v17 = vadd.f32 %v7398_v8, %v3495_v38  ;;  %3482 = vst.msk [vmem:[#allocation5 + $0x21] sm:$0xff] %vm494_vm0, %v3466_v59  ;;  %3440 = vst.msk [vmem:[#allocation5 + $0x50] sm:$0xff] %vm494_vm0, %v3424_v32  ;;  %v3452_v44 = vld [vmem:[#allocation5 + $0x31] sm:$0xff]  ;;  %v3453_v14 = vld [vmem:[#allocation5 + $0x39] sm:$0x7f]  ;;  %v3391_v31 = vpop.permute.xlu0 %3390 }
 0x551   : > { %3483 = vst.msk [vmem:[#allocation5 + $0x29] sm:$0x7f] %vm903_vm2, %v3467_v22  ;;  %v3468_v34 = vadd.f32 %v3452_v44, %v6235_v29  ;;  %v3469_v47 = vadd.f32 %v3453_v14, %v6239_v7  ;;  %v3426_v56 = vadd.f32 %v3391_v31, %v3346_v63  ;;  %v7403_v61 = vld [vmem:[#allocation35_spill] sm:$0xff]  ;;  %v3640_v40 = vld [vmem:[%s5041_s3 + $0x18] sm:$0xff]  ;;  %v7407_v8 = vld [vmem:[#allocation34_spill] sm:$0xff] }
 0x552   : > { %3582 = vst.msk [vmem:[#allocation5] sm:$0xff] %vm494_vm0, %v3566_v52  ;;  %3441 = vst.msk [vmem:[#allocation5 + $0x58] sm:$0xff] %vm494_vm0, %v3425_v60  ;;  %v3496_v2 = vld [vmem:[#allocation5 + $0x10] sm:$0xff]  ;;  %v3393_v39 = vpop.permute.xlu1 %3392  ;;  %v7406_v52 = vld [vmem:[#allocation59_spill] sm:$0xff] }
 0x553   : > { %3583 = vst.msk [vmem:[#allocation5 + $0x8] sm:$0x7f] %vm903_vm2, %v3567_v17  ;;  %v3497_v23 = vld [vmem:[#allocation5 + $0x18] sm:$0x7f]  ;;  %v3568_v15 = vadd.f32 %v7399_v10, %v3496_v2  ;;  %3485 = vst.msk [vmem:[#allocation5 + $0x39] sm:$0x7f] %vm903_vm2, %v3469_v47  ;;  %v3427_v29 = vadd.f32 %v3393_v39, %v3347_v16 }
 0x554   : > { %v3569_v30 = vadd.f32 %v7401_v9, %v3497_v23  ;;  %3484 = vst.msk [vmem:[#allocation5 + $0x31] sm:$0xff] %vm494_vm0, %v3468_v34  ;;  %3442 = vst.msk [vmem:[#allocation5 + $0x60] sm:$0xff] %vm494_vm0, %v3426_v56  ;;  %v3454_v7 = vld [vmem:[#allocation5 + $0x41] sm:$0xff]  ;;  %v3455_v48 = vld [vmem:[#allocation5 + $0x49] sm:$0x7f]  ;;  %v3395_v0 = vpop.permute.xlu0 %3394  ;;  %v7408_v17 = vrot.slane %v7407_v8, 1 }
 0x555   : > { %v3348_v57 = vld [vmem:[#allocation5 + $0x70] sm:$0xff]  ;;  %3584 = vst.msk [vmem:[#allocation5 + $0x10] sm:$0xff] %vm494_vm0, %v3568_v15  ;;  %v3470_v26 = vadd.f32 %v3454_v7, %v6263_v54  ;;  %v3471_v4 = vadd.f32 %v3455_v48, %v6267_v58  ;;  %3443 = vst.msk [vmem:[#allocation5 + $0x68] sm:$0xff] %vm494_vm0, %v3427_v29  ;;  %v3641_v39 = vld [vmem:[%s5041_s3 + $0x20] sm:$0xff] }
 0x556   : > { %3585 = vst.msk [vmem:[#allocation5 + $0x18] sm:$0x7f] %vm903_vm2, %v3569_v30  ;;  %v3428_v6 = vadd.f32 %v3395_v0, %v3348_v57  ;;  %v3397_v13 = vpop.permute.xlu1 %3396  ;;  %v3349_v28 = vld [vmem:[#allocation5 + $0x78] sm:$0xff]  ;;  %v3642_v10 = vld [vmem:[%s5041_s3 + $0x28] sm:$0xff]  ;;  %v7410_v9 = vld [vmem:[#allocation54_spill] sm:$0xff] }
 0x557   : > { %v3498_v41 = vld [vmem:[#allocation5 + $0x20] sm:$0xff]  ;;  %3486 = vst.msk [vmem:[#allocation5 + $0x41] sm:$0xff] %vm494_vm0, %v3470_v26  ;;  %v3429_v54 = vadd.f32 %v3397_v13, %v3349_v28  ;;  %v7409_v15 = vld [vmem:[#allocation57_spill] sm:$0xff]  ;;  %v7411_v30 = vrot.slane %v7410_v9, 1  ;;  %v3643_v13 = vld [vmem:[%s5041_s3 + $0x30] sm:$0xff] }
 0x558   : > { %v3499_v5 = vld [vmem:[#allocation5 + $0x28] sm:$0x7f]  ;;  %v3570_v18 = vadd.f32 %v7403_v61, %v3498_v41  ;;  %3487 = vst.msk [vmem:[#allocation5 + $0x49] sm:$0x7f] %vm903_vm2, %v3471_v4  ;;  %v3644_v61 = vld [vmem:[%s5041_s3 + $0x38] sm:$0xff] }
 0x559   : > { %v3571_v33 = vadd.f32 %v7405_v37, %v3499_v5  ;;  %3444 = vst.msk [vmem:[#allocation5 + $0x70] sm:$0xff] %vm494_vm0, %v3428_v6  ;;  %v3598_v58 = vld [vmem:[#allocation5] sm:$0xff]  ;;  %v3456_v55 = vld [vmem:[#allocation5 + $0x51] sm:$0xff]  ;;  %v3457_v53 = vld [vmem:[#allocation5 + $0x59] sm:$0x7f] }
 0x55a   : > { %v3599_v20 = vld [vmem:[#allocation5 + $0x8] sm:$0xff]  ;;  %v3621_v43 = vadd.f32 %v6719_v21, %v3598_v58  ;;  %3586 = vst.msk [vmem:[#allocation5 + $0x20] sm:$0xff] %vm494_vm0, %v3570_v18  ;;  %v3472_v59 = vadd.f32 %v3456_v55, %v6291_v50  ;;  %3445 = vst.msk [vmem:[#allocation5 + $0x78] sm:$0xff] %vm494_vm0, %v3429_v54  ;;  %v3473_v51 = vadd.f32 %v3457_v53, %v6295_v19  ;;  %v7415_v53 = vld [vmem:[#allocation61_spill] sm:$0xff] }
 0x55b   : > { %v3622_v62 = vadd.f32 %v6719_v21, %v3599_v20  ;;  %3587 = vst.msk [vmem:[#allocation5 + $0x28] sm:$0x7f] %vm903_vm2, %v3571_v33  ;;  %v3500_v22 = vld [vmem:[#allocation5 + $0x30] sm:$0xff]  ;;  %v3501_v32 = vld [vmem:[#allocation5 + $0x38] sm:$0x7f]  ;;  %v7413_v37 = vld [vmem:[#allocation39_spill] sm:$0xff] }
 0x55c   : > { %v3653_v38 = vadd.f32 %v3637_v27, %v3621_v43  ;;  %v3572_v35 = vadd.f32 %v7406_v52, %v3500_v22  ;;  %v3573_v60 = vadd.f32 %v7408_v17, %v3501_v32  ;;  %3488 = vst.msk [vmem:[#allocation5 + $0x51] sm:$0xff] %vm494_vm0, %v3472_v59  ;;  %v3600_v50 = vld [vmem:[#allocation5 + $0x10] sm:$0xff]  ;;  %v3458_v14 = vld [vmem:[#allocation5 + $0x61] sm:$0xff]  ;;  %v3459_v31 = vld [vmem:[#allocation5 + $0x69] sm:$0x7f]  ;;  %v7414_v33 = vrot.slane %v7413_v37, 1 }
 0x55d   : > { %v3654_v42 = vadd.f32 %v3638_v11, %v3622_v62  ;;  %v3601_v44 = vld [vmem:[#allocation5 + $0x18] sm:$0xff]  ;;  %3489 = vst.msk [vmem:[#allocation5 + $0x59] sm:$0x7f] %vm903_vm2, %v3473_v51  ;;  %v3623_v19 = vadd.f32 %v6719_v21, %v3600_v50  ;;  %v3474_v34 = vadd.f32 %v3458_v14, %v6319_v3  ;;  %v3475_v2 = vadd.f32 %v3459_v31, %v6323_v24  ;;  %v7412_v27 = vld [vmem:[#allocation38_spill] sm:$0xff]  ;;  %v3646_v22 = vld [vmem:[%s5041_s3 + $0x48] sm:$0xff] }
 0x55e   : > { %3669 = vst.msk [vmem:[%s5092_s15] sm:$0xff] %vm494_vm0, %v3653_v38  ;;  %v3624_v63 = vadd.f32 %v6719_v21, %v3601_v44  ;;  %3588 = vst.msk [vmem:[#allocation5 + $0x30] sm:$0xff] %vm494_vm0, %v3572_v35  ;;  %v3502_v47 = vld [vmem:[#allocation5 + $0x40] sm:$0xff]  ;;  %v7416_v38 = vld [vmem:[#allocation40_spill] sm:$0xff] }
 0x55f   : > { %3670 = vst.msk [vmem:[%s5092_s15 + $0x8] sm:$0xff] %vm494_vm0, %v3654_v42  ;;  %v3503_v56 = vld [vmem:[#allocation5 + $0x48] sm:$0x7f]  ;;  %v3655_v23 = vadd.f32 %v3639_v49, %v3623_v19  ;;  %v3574_v1 = vadd.f32 %v7409_v15, %v3502_v47  ;;  %3490 = vst.msk [vmem:[#allocation5 + $0x61] sm:$0xff] %vm494_vm0, %v3474_v34  ;;  %v3645_v43 = vld [vmem:[%s5041_s3 + $0x40] sm:$0xff]  ;;  %v7417_v42 = vrot.slane %v7416_v38, 1 }
 0x560   : > { %3589 = vst.msk [vmem:[#allocation5 + $0x38] sm:$0x7f] %vm903_vm2, %v3573_v60  ;;  %v3656_v16 = vadd.f32 %v3640_v40, %v3624_v63  ;;  %v3575_v29 = vadd.f32 %v7411_v30, %v3503_v56  ;;  %3491 = vst.msk [vmem:[#allocation5 + $0x69] sm:$0x7f] %vm903_vm2, %v3475_v2  ;;  %v3647_v44 = vld [vmem:[%s5041_s3 + $0x50] sm:$0xff]  ;;  %v3648_v31 = vld [vmem:[%s5041_s3 + $0x58] sm:$0xff] }
 0x561   : > { %v3602_v7 = vld [vmem:[#allocation5 + $0x20] sm:$0xff]  ;;  %v3460_v3 = vld [vmem:[#allocation5 + $0x71] sm:$0xff]  ;;  %3671 = vst.msk [vmem:[%s5092_s15 + $0x10] sm:$0xff] %vm494_vm0, %v3655_v23  ;;  %3590 = vst.msk [vmem:[#allocation5 + $0x40] sm:$0xff] %vm494_vm0, %v3574_v1 }
 0x562   : > { %v3603_v48 = vld [vmem:[#allocation5 + $0x28] sm:$0xff]  ;;  %3672 = vst.msk [vmem:[%s5092_s15 + $0x18] sm:$0xff] %vm494_vm0, %v3656_v16  ;;  %v3625_v24 = vadd.f32 %v6719_v21, %v3602_v7  ;;  %v3461_v57 = vld [vmem:[#allocation5 + $0x79] sm:$0x7f]  ;;  %v3476_v26 = vadd.f32 %v3460_v3, %v6469_v45  ;;  %v3649_v2 = vld [vmem:[%s5041_s3 + $0x60] sm:$0xff] }
 0x563   : > { %v3626_v0 = vadd.f32 %v6719_v21, %v3603_v48  ;;  %3591 = vst.msk [vmem:[#allocation5 + $0x48] sm:$0x7f] %vm903_vm2, %v3575_v29  ;;  %v3504_v4 = vld [vmem:[#allocation5 + $0x50] sm:$0xff]  ;;  %v3477_v6 = vadd.f32 %v3461_v57, %v6475_v36  ;;  %v3650_v16 = vld [vmem:[%s5041_s3 + $0x68] sm:$0xff]  ;;  %v3652_v7 = vld [vmem:[%s5041_s3 + $0x78] sm:$0xff] }
 0x564   : > { %v3657_v41 = vadd.f32 %v3641_v39, %v3625_v24  ;;  %v3505_v28 = vld [vmem:[#allocation5 + $0x58] sm:$0x7f]  ;;  %v3576_v11 = vadd.f32 %v7412_v27, %v3504_v4  ;;  %3492 = vst.msk [vmem:[#allocation5 + $0x71] sm:$0xff] %vm494_vm0, %v3476_v26  ;;  %v3651_v30 = vld [vmem:[%s5041_s3 + $0x70] sm:$0xff]  ;;  %s3686_s3 = scalar_lea.sflag [#allocation8], %s5035_s20 }
 0x565   : > { %v3658_v5 = vadd.f32 %v3642_v10, %v3626_v0  ;;  %v3604_v18 = vld [vmem:[#allocation5 + $0x30] sm:$0xff]  ;;  %v3577_v54 = vadd.f32 %v7414_v33, %v3505_v28  ;;  %3493 = vst.msk [vmem:[#allocation5 + $0x79] sm:$0x7f] %vm903_vm2, %v3477_v6 }
 0x566   : > { %3673 = vst.msk [vmem:[%s5092_s15 + $0x20] sm:$0xff] %vm494_vm0, %v3657_v41  ;;  %v3627_v45 = vadd.f32 %v6719_v21, %v3604_v18  ;;  %3592 = vst.msk [vmem:[#allocation5 + $0x50] sm:$0xff] %vm494_vm0, %v3576_v11  ;;  %v3506_v58 = vld [vmem:[#allocation5 + $0x60] sm:$0xff] }
 0x567   : > { %v3605_v12 = vld [vmem:[#allocation5 + $0x38] sm:$0xff]  ;;  %3674 = vst.msk [vmem:[%s5092_s15 + $0x28] sm:$0xff] %vm494_vm0, %v3658_v5  ;;  %v3507_v62 = vld [vmem:[#allocation5 + $0x68] sm:$0x7f]  ;;  %v3578_v59 = vadd.f32 %v7415_v53, %v3506_v58 }
 0x568   : > { %v3628_v36 = vadd.f32 %v6719_v21, %v3605_v12  ;;  %3593 = vst.msk [vmem:[#allocation5 + $0x58] sm:$0x7f] %vm903_vm2, %v3577_v54  ;;  %v3659_v20 = vadd.f32 %v3643_v13, %v3627_v45  ;;  %v3606_v32 = vld [vmem:[#allocation5 + $0x40] sm:$0xff]  ;;  %v3579_v49 = vadd.f32 %v7417_v42, %v3507_v62 }
 0x569   : > { %v3629_v40 = vadd.f32 %v6719_v21, %v3606_v32  ;;  %3594 = vst.msk [vmem:[#allocation5 + $0x60] sm:$0xff] %vm494_vm0, %v3578_v59 }
 0x56a   : > { %v3660_v55 = vadd.f32 %v3644_v61, %v3628_v36  ;;  %v3607_v51 = vld [vmem:[#allocation5 + $0x48] sm:$0xff]  ;;  %3675 = vst.msk [vmem:[%s5092_s15 + $0x30] sm:$0xff] %vm494_vm0, %v3659_v20 }
 0x56b   : > { %v3630_v52 = vadd.f32 %v6719_v21, %v3607_v51  ;;  %3595 = vst.msk [vmem:[#allocation5 + $0x68] sm:$0x7f] %vm903_vm2, %v3579_v49  ;;  %v3508_v35 = vld [vmem:[#allocation5 + $0x70] sm:$0xff]  ;;  %v3661_v8 = vadd.f32 %v3645_v43, %v3629_v40 }
 0x56c   : > { %3676 = vst.msk [vmem:[%s5092_s15 + $0x38] sm:$0xff] %vm494_vm0, %v3660_v55  ;;  %v3509_v60 = vld [vmem:[#allocation5 + $0x78] sm:$0x7f]  ;;  %v3580_v50 = vadd.f32 %v6489_v25, %v3508_v35 }
 0x56d   : > { %v3662_v17 = vadd.f32 %v3646_v22, %v3630_v52  ;;  %v3608_v14 = vld [vmem:[#allocation5 + $0x50] sm:$0xff]  ;;  %v3581_v63 = vadd.f32 %v3548_v46, %v3509_v60  ;;  %3677 = vst.msk [vmem:[%s5092_s15 + $0x40] sm:$0xff] %vm494_vm0, %v3661_v8 }
 0x56e   : > { %v3631_v47 = vadd.f32 %v6719_v21, %v3608_v14  ;;  %3596 = vst.msk [vmem:[#allocation5 + $0x70] sm:$0xff] %vm494_vm0, %v3580_v50 }
 0x56f   : > { %3678 = vst.msk [vmem:[%s5092_s15 + $0x48] sm:$0xff] %vm494_vm0, %v3662_v17  ;;  %v3609_v34 = vld [vmem:[#allocation5 + $0x58] sm:$0xff] }
 0x570   : > { %v3632_v25 = vadd.f32 %v6719_v21, %v3609_v34  ;;  %3597 = vst.msk [vmem:[#allocation5 + $0x78] sm:$0x7f] %vm903_vm2, %v3581_v63  ;;  %v3663_v46 = vadd.f32 %v3647_v44, %v3631_v47  ;;  %v3610_v23 = vld [vmem:[#allocation5 + $0x60] sm:$0xff] }
 0x571   : > { %v3633_v10 = vadd.f32 %v6719_v21, %v3610_v23 }
 0x572   : > { %v3664_v56 = vadd.f32 %v3648_v31, %v3632_v25  ;;  %3679 = vst.msk [vmem:[%s5092_s15 + $0x50] sm:$0xff] %vm494_vm0, %v3663_v46  ;;  %v3611_v39 = vld [vmem:[#allocation5 + $0x68] sm:$0xff] }
 0x573   : > { %v3634_v15 = vadd.f32 %v6719_v21, %v3611_v39  ;;  %v3665_v1 = vadd.f32 %v3649_v2, %v3633_v10 }
 0x574   : > { %3680 = vst.msk [vmem:[%s5092_s15 + $0x58] sm:$0xff] %vm494_vm0, %v3664_v56 }
 0x575   : > { %v3666_v9 = vadd.f32 %v3650_v16, %v3634_v15  ;;  %v3612_v29 = vld [vmem:[#allocation5 + $0x70] sm:$0xff]  ;;  %3681 = vst.msk [vmem:[%s5092_s15 + $0x60] sm:$0xff] %vm494_vm0, %v3665_v1 }
 0x576   : > { %v3635_v3 = vadd.f32 %v6719_v21, %v3612_v29 }
 0x577   : > { %v3613_v48 = vld [vmem:[#allocation5 + $0x78] sm:$0xff]  ;;  %3682 = vst.msk [vmem:[%s5092_s15 + $0x68] sm:$0xff] %vm494_vm0, %v3666_v9 }
 0x578   : > { %v3636_v24 = vadd.f32 %v6719_v21, %v3613_v48  ;;  %v3667_v0 = vadd.f32 %v3651_v30, %v3635_v3 }
 0x57a   : > { %v3668_v57 = vadd.f32 %v3652_v7, %v3636_v24  ;;  %3683 = vst.msk [vmem:[%s5092_s15 + $0x70] sm:$0xff] %vm494_vm0, %v3667_v0 }
 0x57c   : > { %3684 = vst.msk [vmem:[%s5092_s15 + $0x78] sm:$0xff] %vm494_vm0, %v3668_v57 }
 0x57d   : > { %4430 = shalt.err (!%p4427_p3)
}
 0x57e   : > { %s4431_s15 = scalar_lea.hbm %s6838_s0, 2048  ;;  %s4435_s16 = scalar_lea.hbm %s7421_s19, 8192 }
 0x57f   : > { %p4432_p7 = scmp.ne.s32.totalorder %s6838_s0, %s4431_s15  ;;  %p4436_p12 = scmp.lt.u32.totalorder %s6838_s0, %s7421_s19 }
 0x580   : > { %p4437_p2 = scmp.lt.u32.totalorder %s4435_s16, %s4431_s15  ;;  %p4439_p13 = scmp.lt.u32.totalorder %s4431_s15, %s6838_s0 }
 0x581   : > { %p4433_p4 = pnand %p4432_p7, %p7422_p1 }
 0x582   : > { %p4438_p0 = por %p4437_p2, %p4436_p12 }
 0x583   : > { %p4434_p10 = pneg %p4433_p4 }
 0x584   : > { %p4440_p8 = por %p4439_p13, %p4438_p0 }
 0x586   : > { %p4441_p5 = pnand %p4440_p8, %p4434_p10 }
 0x588   : > { %4444 = shalt.err (!%p4441_p5)
}
 0x589   : > { %s4591_s28 = smov 128   ;;  %s4592_s11 = smov 8  }
 0x58a   : > { %4046 = dma.vmem_to_hbm [thread:$0]  (%p7422_p1), %s6840_s18, 2048, %s6838_s0, %s3686_s3, %s4591_s28, %s4591_s28, %s4592_s11  }
 0x58b PF: > { %p4074_p6 = scmp.ge.s32.totalorder %s4575_s14, 2  ;;  %s3717_s4 = sand.u32 1, %s4547_s30  }
 0x58c   : > { %p7423_p9 = scmp.ne.s32.totalorder %s7124_s2, 0  ;;  %s3718_s26 = scalar_lea.sflag [#allocation8], %s3717_s4 }
 0x58e   : > { %p4066_p11 = pnand %p4074_p6, %p7423_p9 }
 0x590   : > { %4518 = dma.done.wait (!%p4066_p11), %s3718_s26, 2048  }
 0x591   : > { %4520 = vsyncadd (!%p4066_p11), %s3718_s26, 4294965248  ;;  %s27_s14 = sadd.s32 1, %s4575_s14   ;;  %s7425_s24 = sld [smem:[#allocation22_spill]] }
 0x592   : > { %p6875_p3 = scmp.ge.s32.totalorder %s27_s14, 6   ;;  %s7426_s25 = sld [smem:[#allocation23_spill]] }
 0x593   : > { %s7427_s17 = sld [smem:[#allocation24_spill]]  ;;  %s7428_s20 = smov %s4793_s27 }
 0x594   : > { %s7429_s10 = sld [smem:[#allocation27_spill]]  ;;  %s7430_s11 = sld [smem:[#allocation28_spill]] }
 0x595   : > { %s7431_s12 = sld [smem:[#allocation30_spill]]  ;;  %s7432_s2 = sld [smem:[#allocation31_spill]] }
 0x596   : > { %s7434_s26 = smov %s7457_s22  ;;  %s7436_s28 = smov %s4543_s29 }
 0x597   : > { %s7437_s29 = smov %s7428_s20  ;;  %s7438_s30 = smov %s4551_s8 }
 0x598   : > { %s7439_s8 = smov %s4555_s9  ;;  %s7440_s9 = smov %s4884_s23 }
 0x599   : > { %s7435_s27 = smov %s7427_s17  ;;  %26 = sbr.rel (!%p6875_p3) target bundleno = 22 (0x16), region = 160 }
 0x59b   : > { %s7441_s13 = smov %s7432_s2 }
 0x5a0   :  { %3723 = vsyncpa [#allocation7], 1 }
 0x5a1   :  { %3725 = vsyncpa [#allocation7 + $0x1], 1 }
 0x5a2   :  { %3726 = vsyncpa [#allocation10], 1 }
 0x5a3   :  { %3728 = vsyncpa [#allocation10 + $0x1], 1 }
 0x5a4   :  { %3729 = vsyncpa [#allocation13], 1 }
 0x5a5   :  { %3730 = vsyncpa [#allocation8], 1 }
 0x5a6   :  { %3732 = vsyncpa [#allocation8 + $0x1], 1 }

</bundles_post_ra>
